<compile_context>
chip_gen: v7x
topology: tpu7x:2x2x1
jax: 0.10.0
libtpu: 0.0.40
codegen_flags: <defaults>
</compile_context>

<pallas_src>
import jax
import jax.numpy as jnp
import numpy as np
from jax.experimental import pallas as pl
from jax.experimental.pallas import tpu as pltpu

_LOG2 = 0.6931471805599453

_DATASET_MAP = {0: 0, 1: 0, 2: 0, 3: 0, 4: 1, 5: 1, 6: 1, 7: 1}
_LOSS_RECIPE = [(0, 4, 4), (0, 6, 4), (1, 5, 5), (1, 6, 5), (2, 4, 4), (2, 5, 5),
                (2, 6, 6), (2, 7, 7), (4, 0, 4), (4, 2, 4), (5, 1, 5), (5, 2, 5),
                (6, 2, 6), (7, 2, 7)]
_NEG_LOSS_RECIPE = [(0, 4, 1), (0, 4, 2), (0, 6, 1), (0, 6, 2), (1, 5, 0), (1, 5, 2),
                    (1, 6, 0), (1, 6, 2), (2, 4, 1), (2, 4, 2), (2, 5, 0), (2, 5, 2),
                    (4, 0, 1), (4, 0, 2), (4, 2, 1), (4, 2, 2), (5, 1, 0), (5, 1, 2),
                    (5, 2, 0), (5, 2, 2), (2, 7, 2), (7, 2, 2)]


def _log1mexp(x):
    """Numerically stable log(1 - exp(x)) for x <= 0.

    Uses only exp/log (EUP ops that always lower in Mosaic).  1 - exp(x) is
    computed with Kahan's expm1 correction, so there is no catastrophic
    cancellation for x -> 0-; exp underflow (x << 0) is handled explicitly.
    """
    u = jnp.exp(x)
    near_one = u == 1.0
    denom = jnp.where(near_one, 1.0, jnp.log(u))
    m = (1.0 - u) * (x / denom)          # accurate 1 - exp(x)  (== -expm1(x))
    m = jnp.where(near_one, -x, m)       # x ~ 0-:  1 - exp(x) ~ -x
    m = jnp.where(u == 0.0, 1.0, m)      # exp underflow: 1 - exp(x) == 1
    return jnp.log(m)


def _box_cross_kernel(vols_ref, out_ref):
    # vols_ref : (12, 8, TILE_LANES) f32 block in VMEM (layout in file header).
    # out_ref  : (1,) f32 SMEM scalar accumulator (same block every grid step).
    @pl.when(pl.program_id(0) == 0)
    def _init():
        out_ref[0] = 0.0

    v = vols_ref[...]                    # (12, 8, T)
    lv = _log1mexp(v)                    # log(1 - exp(v)) for all 12 rows

    v1, v2 = v[0:6], v[6:12]             # first / second volume of each pair
    l1, l2 = lv[0:6], lv[6:12]

    # Class log-probabilities per (pair, column): row = 2 * pair + column,
    # pair order [AB, BC, AC].  Each has shape (6, 8, T).
    probs = (
        v1 + l2,   # PC
        l1 + v2,   # CP
        v1 + v2,   # CR
        l1 + l2,   # NR
    )

    def p(idx, pair):
        # Probability slab referenced by recipe index `idx` (0..7) at `pair`.
        return probs[idx % 4][2 * pair + _DATASET_MAP[idx]]

    ab_cache = {}

    def ab(xy, yz):
        if (xy, yz) not in ab_cache:
            ab_cache[(xy, yz)] = p(xy, 0) + p(yz, 1)
        return ab_cache[(xy, yz)]

    negc_cache = {}

    def neg_c(xz):
        if xz not in negc_cache:
            negc_cache[xz] = _log1mexp(p(xz, 2))
        return negc_cache[xz]

    # Fold all 36 recipe terms into one per-element accumulator, then do a
    # single cross-lane/sublane reduction per grid step.
    acc = jnp.zeros_like(probs[0][0])    # (8, T)
    for xy, yz, xz in _LOSS_RECIPE:
        acc += jnp.maximum(ab(xy, yz) - p(xz, 2), 0.0)
    for xy, yz, xz in _NEG_LOSS_RECIPE:
        acc += jnp.maximum(ab(xy, yz) - neg_c(xz), 0.0)

    out_ref[0] += jnp.sum(acc)


class BoxCrossCategoryLoss:
    """Pallas TPU port of the PyTorch BoxCrossCategoryLoss forward pass."""

    # NOTE: get_rel_map() in the PyTorch module is never called by forward()
    # (and references undefined masks), so it is intentionally not ported.

    def __init__(self, tile_lanes: int = 512):
        # Rows processed per grid step = 8 * tile_lanes (lane-dense tiles).
        assert tile_lanes % 128 == 0
        self.tile_lanes = int(tile_lanes)

    def __call__(self, vol_AB, vol_BA, vol_BC, vol_CB, vol_AC, vol_CA):
        vols = [jnp.asarray(v, jnp.float32) for v in
                (vol_AB, vol_BA, vol_BC, vol_CB, vol_AC, vol_CA)]
        n = vols[0].shape[0]
        vols = [v.reshape(n, 2) for v in vols]
        vol_AB, vol_BA, vol_BC, vol_CB, vol_AC, vol_CA = vols

        # Lane-dense repack: rows 0..5 = first volume per pair x column,
        # rows 6..11 = second volume per pair x column; N on the trailing axis.
        stacked = jnp.stack(
            [vol_AB, vol_BC, vol_AC, vol_BA, vol_CB, vol_CA], axis=0)  # (6,N,2)
        rows = stacked.transpose(0, 2, 1).reshape(12, n)               # (12,N)

        chunk = 8 * self.tile_lanes
        n_pad = ((n + chunk - 1) // chunk) * chunk
        # -log(2) padding makes every recipe term exactly 0 on padded entries
        # (all class log-probs collapse to -2*log2, so each relu argument is
        # <= -log2 with a wide margin) -> no validity mask needed.
        rows = jnp.pad(rows, ((0, 0), (0, n_pad - n)), constant_values=-_LOG2)
        lanes = n_pad // 8
        vols_tiled = rows.reshape(12, 8, lanes)

        tile = self.tile_lanes
        out = pl.pallas_call(
            _box_cross_kernel,
            out_shape=jax.ShapeDtypeStruct((1,), jnp.float32),
            grid=(lanes // tile,),
            in_specs=[pl.BlockSpec((12, 8, tile), lambda t: (0, 0, t))],
            out_specs=pl.BlockSpec((1,), lambda t: (0,),
                                   memory_space=pltpu.MemorySpace.SMEM),
            compiler_params=pltpu.CompilerParams(
                dimension_semantics=("arbitrary",)),
        )(vols_tiled)
        return out[0]


# ---------------------------------------------------------------------------
# Pure numpy (float64) reference, mirroring the PyTorch forward exactly.
# ---------------------------------------------------------------------------
def _log1mexp_np(x):
    x = np.asarray(x, np.float64)
    return np.where(x > -np.log(2.0), np.log(-np.expm1(x)), np.log1p(-np.exp(x)))


def _ref_loss(vol_AB, vol_BA, vol_BC, vol_CB, vol_AC, vol_CA):
    def probs(v1, v2):
        v1 = np.asarray(v1, np.float64)
        v2 = np.asarray(v2, np.float64)
        return [v1 + _log1mexp_np(v2), _log1mexp_np(v1) + v2,
                v1 + v2, _log1mexp_np(v1) + _log1mexp_np(v2)]

    p_lists = [probs(vol_AB, vol_BA), probs(vol_BC, vol_CB), probs(vol_AC, vol_CA)]
    total = 0.0
    for xy, yz, xz in _LOSS_RECIPE:
        a = p_lists[0][xy % 4][:, _DATASET_MAP[xy]]
        b = p_lists[1][yz % 4][:, _DATASET_MAP[yz]]
        c = p_lists[2][xz % 4][:, _DATASET_MAP[xz]]
        total += np.maximum(a + b - c, 0.0).sum()
    for xy, yz, xz in _NEG_LOSS_RECIPE:
        a = p_lists[0][xy % 4][:, _DATASET_MAP[xy]]
        b = p_lists[1][yz % 4][:, _DATASET_MAP[yz]]
        c = _log1mexp_np(p_lists[2][xz % 4][:, _DATASET_MAP[xz]])
        total += np.maximum(a + b - c, 0.0).sum()
    return float(total)


if __name__ == "__main__":
    def make_vols(key, n):
        ks = jax.random.split(key, 6)
        # log conditional probabilities: strictly negative, some close to 0.
        return [-(jnp.abs(jax.random.normal(k, (n, 2), jnp.float32)) + 1e-3)
                for k in ks]

    # Small batch of (A, B, C) triples -> single grid step.
    vols_small = make_vols(jax.random.PRNGKey(0), 37)
    out_small = BoxCrossCategoryLoss()(*vols_small)

    # Larger batch with a small lane tile so the grid + SMEM accumulator path
    # (multiple grid steps) is exercised.
    vols_big = make_vols(jax.random.PRNGKey(1), 2500)
    out_big = BoxCrossCategoryLoss(tile_lanes=128)(*vols_big)

    jax.block_until_ready((out_small, out_big))

    ref_small = _ref_loss(*[np.asarray(v) for v in vols_small])
    ref_big = _ref_loss(*[np.asarray(v) for v in vols_big])
    np.testing.assert_allclose(float(out_small), ref_small, rtol=5e-4, atol=1e-3)
    np.testing.assert_allclose(float(out_big), ref_big, rtol=5e-4, atol=1e-2)
    print("KERNEL_OK")
</pallas_src>

<mosaic_0001>
module attributes {stable_mosaic.version = 11 : i64} {
  func.func @_box_cross_kernel(%arg0: i32, %arg1: memref<12x8x512xf32, #tpu.memory_space<vmem>>, %arg2: memref<1xf32, #tpu.memory_space<smem>>) attributes {dimension_semantics = [#tpu.dimension_semantics<arbitrary>], iteration_bounds = array<i64: 1>, scalar_prefetch = 0 : i64, scratch_operands = 0 : i64, tpu.core_type = #tpu.core_type<tc>, window_params = [{transform_indices = @transform_0, window_bounds = array<i64: 12, 8, 512>}, {transform_indices = @transform_1, window_bounds = array<i64: 1>}]} {
    %c0_i32 = arith.constant 0 : i32
    %0 = arith.cmpi eq, %arg0, %c0_i32 : i32
    %1 = arith.extui %0 : i1 to i32
    %c0_i32_0 = arith.constant 0 : i32
    %2 = arith.cmpi ne, %1, %c0_i32_0 : i32
    scf.if %2 {
      %cst_66 = arith.constant 0.000000e+00 : f32
      %c0_67 = arith.constant 0 : index
      %340 = memref.load %arg2[%c0_67] : memref<1xf32, #tpu.memory_space<smem>>
      memref.store %cst_66, %arg2[%c0_67] : memref<1xf32, #tpu.memory_space<smem>>
    } else {
    }
    %c0 = arith.constant 0 : index
    %c0_1 = arith.constant 0 : index
    %c0_2 = arith.constant 0 : index
    %3 = vector.load %arg1[%c0, %c0_1, %c0_2] : memref<12x8x512xf32, #tpu.memory_space<vmem>>, vector<12x8x512xf32>
    %4 = math.exp %3 : vector<12x8x512xf32>
    %cst = arith.constant 1.000000e+00 : f32
    %5 = vector.broadcast %cst : f32 to vector<12x8x512xf32>
    %6 = arith.cmpf oeq, %4, %5 : vector<12x8x512xf32>
    %7 = math.log %4 : vector<12x8x512xf32>
    %cst_3 = arith.constant 1.000000e+00 : f32
    %8 = vector.broadcast %cst_3 : f32 to vector<12x8x512xf32>
    %9 = arith.select %6, %8, %7 : vector<12x8x512xi1>, vector<12x8x512xf32>
    %cst_4 = arith.constant 1.000000e+00 : f32
    %10 = vector.broadcast %cst_4 : f32 to vector<12x8x512xf32>
    %11 = arith.subf %10, %4 : vector<12x8x512xf32>
    %12 = arith.divf %3, %9 : vector<12x8x512xf32>
    %13 = arith.mulf %11, %12 : vector<12x8x512xf32>
    %cst_5 = arith.constant 0.000000e+00 : f32
    %14 = vector.broadcast %cst_5 : f32 to vector<12x8x512xf32>
    %15 = arith.subf %14, %3 : vector<12x8x512xf32>
    %16 = arith.select %6, %15, %13 : vector<12x8x512xi1>, vector<12x8x512xf32>
    %cst_6 = arith.constant 0.000000e+00 : f32
    %17 = vector.broadcast %cst_6 : f32 to vector<12x8x512xf32>
    %18 = arith.cmpf oeq, %4, %17 : vector<12x8x512xf32>
    %cst_7 = arith.constant 1.000000e+00 : f32
    %19 = vector.broadcast %cst_7 : f32 to vector<12x8x512xf32>
    %20 = arith.select %18, %19, %16 : vector<12x8x512xi1>, vector<12x8x512xf32>
    %21 = math.log %20 : vector<12x8x512xf32>
    %22 = vector.extract_strided_slice %3 {offsets = [0, 0, 0], sizes = [6, 8, 512], strides = [1, 1, 1]} : vector<12x8x512xf32> to vector<6x8x512xf32>
    %23 = vector.extract_strided_slice %3 {offsets = [6, 0, 0], sizes = [6, 8, 512], strides = [1, 1, 1]} : vector<12x8x512xf32> to vector<6x8x512xf32>
    %24 = vector.extract_strided_slice %21 {offsets = [0, 0, 0], sizes = [6, 8, 512], strides = [1, 1, 1]} : vector<12x8x512xf32> to vector<6x8x512xf32>
    %25 = vector.extract_strided_slice %21 {offsets = [6, 0, 0], sizes = [6, 8, 512], strides = [1, 1, 1]} : vector<12x8x512xf32> to vector<6x8x512xf32>
    %26 = arith.addf %22, %25 : vector<6x8x512xf32>
    %27 = arith.addf %24, %23 : vector<6x8x512xf32>
    %28 = arith.addf %22, %23 : vector<6x8x512xf32>
    %29 = arith.addf %24, %25 : vector<6x8x512xf32>
    %cst_8 = arith.constant 0.000000e+00 : f32
    %30 = vector.broadcast %cst_8 : f32 to vector<8x512xf32>
    %31 = vector.extract_strided_slice %26 {offsets = [0, 0, 0], sizes = [1, 8, 512], strides = [1, 1, 1]} : vector<6x8x512xf32> to vector<1x8x512xf32>
    %32 = vector.shape_cast %31 : vector<1x8x512xf32> to vector<8x512xf32>
    %33 = vector.extract_strided_slice %26 {offsets = [3, 0, 0], sizes = [1, 8, 512], strides = [1, 1, 1]} : vector<6x8x512xf32> to vector<1x8x512xf32>
    %34 = vector.shape_cast %33 : vector<1x8x512xf32> to vector<8x512xf32>
    %35 = arith.addf %32, %34 : vector<8x512xf32>
    %36 = vector.extract_strided_slice %26 {offsets = [5, 0, 0], sizes = [1, 8, 512], strides = [1, 1, 1]} : vector<6x8x512xf32> to vector<1x8x512xf32>
    %37 = vector.shape_cast %36 : vector<1x8x512xf32> to vector<8x512xf32>
    %38 = arith.subf %35, %37 : vector<8x512xf32>
    %cst_9 = arith.constant 0.000000e+00 : f32
    %39 = vector.broadcast %cst_9 : f32 to vector<8x512xf32>
    %40 = arith.maximumf %38, %39 : vector<8x512xf32>
    %41 = arith.addf %30, %40 : vector<8x512xf32>
    %42 = vector.extract_strided_slice %26 {offsets = [0, 0, 0], sizes = [1, 8, 512], strides = [1, 1, 1]} : vector<6x8x512xf32> to vector<1x8x512xf32>
    %43 = vector.shape_cast %42 : vector<1x8x512xf32> to vector<8x512xf32>
    %44 = vector.extract_strided_slice %28 {offsets = [3, 0, 0], sizes = [1, 8, 512], strides = [1, 1, 1]} : vector<6x8x512xf32> to vector<1x8x512xf32>
    %45 = vector.shape_cast %44 : vector<1x8x512xf32> to vector<8x512xf32>
    %46 = arith.addf %43, %45 : vector<8x512xf32>
    %47 = vector.extract_strided_slice %26 {offsets = [5, 0, 0], sizes = [1, 8, 512], strides = [1, 1, 1]} : vector<6x8x512xf32> to vector<1x8x512xf32>
    %48 = vector.shape_cast %47 : vector<1x8x512xf32> to vector<8x512xf32>
    %49 = arith.subf %46, %48 : vector<8x512xf32>
    %cst_10 = arith.constant 0.000000e+00 : f32
    %50 = vector.broadcast %cst_10 : f32 to vector<8x512xf32>
    %51 = arith.maximumf %49, %50 : vector<8x512xf32>
    %52 = arith.addf %41, %51 : vector<8x512xf32>
    %53 = vector.extract_strided_slice %27 {offsets = [0, 0, 0], sizes = [1, 8, 512], strides = [1, 1, 1]} : vector<6x8x512xf32> to vector<1x8x512xf32>
    %54 = vector.shape_cast %53 : vector<1x8x512xf32> to vector<8x512xf32>
    %55 = vector.extract_strided_slice %27 {offsets = [3, 0, 0], sizes = [1, 8, 512], strides = [1, 1, 1]} : vector<6x8x512xf32> to vector<1x8x512xf32>
    %56 = vector.shape_cast %55 : vector<1x8x512xf32> to vector<8x512xf32>
    %57 = arith.addf %54, %56 : vector<8x512xf32>
    %58 = vector.extract_strided_slice %27 {offsets = [5, 0, 0], sizes = [1, 8, 512], strides = [1, 1, 1]} : vector<6x8x512xf32> to vector<1x8x512xf32>
    %59 = vector.shape_cast %58 : vector<1x8x512xf32> to vector<8x512xf32>
    %60 = arith.subf %57, %59 : vector<8x512xf32>
    %cst_11 = arith.constant 0.000000e+00 : f32
    %61 = vector.broadcast %cst_11 : f32 to vector<8x512xf32>
    %62 = arith.maximumf %60, %61 : vector<8x512xf32>
    %63 = arith.addf %52, %62 : vector<8x512xf32>
    %64 = vector.extract_strided_slice %27 {offsets = [0, 0, 0], sizes = [1, 8, 512], strides = [1, 1, 1]} : vector<6x8x512xf32> to vector<1x8x512xf32>
    %65 = vector.shape_cast %64 : vector<1x8x512xf32> to vector<8x512xf32>
    %66 = vector.extract_strided_slice %28 {offsets = [3, 0, 0], sizes = [1, 8, 512], strides = [1, 1, 1]} : vector<6x8x512xf32> to vector<1x8x512xf32>
    %67 = vector.shape_cast %66 : vector<1x8x512xf32> to vector<8x512xf32>
    %68 = arith.addf %65, %67 : vector<8x512xf32>
    %69 = vector.extract_strided_slice %27 {offsets = [5, 0, 0], sizes = [1, 8, 512], strides = [1, 1, 1]} : vector<6x8x512xf32> to vector<1x8x512xf32>
    %70 = vector.shape_cast %69 : vector<1x8x512xf32> to vector<8x512xf32>
    %71 = arith.subf %68, %70 : vector<8x512xf32>
    %cst_12 = arith.constant 0.000000e+00 : f32
    %72 = vector.broadcast %cst_12 : f32 to vector<8x512xf32>
    %73 = arith.maximumf %71, %72 : vector<8x512xf32>
    %74 = arith.addf %63, %73 : vector<8x512xf32>
    %75 = vector.extract_strided_slice %28 {offsets = [0, 0, 0], sizes = [1, 8, 512], strides = [1, 1, 1]} : vector<6x8x512xf32> to vector<1x8x512xf32>
    %76 = vector.shape_cast %75 : vector<1x8x512xf32> to vector<8x512xf32>
    %77 = vector.extract_strided_slice %26 {offsets = [3, 0, 0], sizes = [1, 8, 512], strides = [1, 1, 1]} : vector<6x8x512xf32> to vector<1x8x512xf32>
    %78 = vector.shape_cast %77 : vector<1x8x512xf32> to vector<8x512xf32>
    %79 = arith.addf %76, %78 : vector<8x512xf32>
    %80 = vector.extract_strided_slice %26 {offsets = [5, 0, 0], sizes = [1, 8, 512], strides = [1, 1, 1]} : vector<6x8x512xf32> to vector<1x8x512xf32>
    %81 = vector.shape_cast %80 : vector<1x8x512xf32> to vector<8x512xf32>
    %82 = arith.subf %79, %81 : vector<8x512xf32>
    %cst_13 = arith.constant 0.000000e+00 : f32
    %83 = vector.broadcast %cst_13 : f32 to vector<8x512xf32>
    %84 = arith.maximumf %82, %83 : vector<8x512xf32>
    %85 = arith.addf %74, %84 : vector<8x512xf32>
    %86 = vector.extract_strided_slice %28 {offsets = [0, 0, 0], sizes = [1, 8, 512], strides = [1, 1, 1]} : vector<6x8x512xf32> to vector<1x8x512xf32>
    %87 = vector.shape_cast %86 : vector<1x8x512xf32> to vector<8x512xf32>
    %88 = vector.extract_strided_slice %27 {offsets = [3, 0, 0], sizes = [1, 8, 512], strides = [1, 1, 1]} : vector<6x8x512xf32> to vector<1x8x512xf32>
    %89 = vector.shape_cast %88 : vector<1x8x512xf32> to vector<8x512xf32>
    %90 = arith.addf %87, %89 : vector<8x512xf32>
    %91 = vector.extract_strided_slice %27 {offsets = [5, 0, 0], sizes = [1, 8, 512], strides = [1, 1, 1]} : vector<6x8x512xf32> to vector<1x8x512xf32>
    %92 = vector.shape_cast %91 : vector<1x8x512xf32> to vector<8x512xf32>
    %93 = arith.subf %90, %92 : vector<8x512xf32>
    %cst_14 = arith.constant 0.000000e+00 : f32
    %94 = vector.broadcast %cst_14 : f32 to vector<8x512xf32>
    %95 = arith.maximumf %93, %94 : vector<8x512xf32>
    %96 = arith.addf %85, %95 : vector<8x512xf32>
    %97 = vector.extract_strided_slice %28 {offsets = [0, 0, 0], sizes = [1, 8, 512], strides = [1, 1, 1]} : vector<6x8x512xf32> to vector<1x8x512xf32>
    %98 = vector.shape_cast %97 : vector<1x8x512xf32> to vector<8x512xf32>
    %99 = vector.extract_strided_slice %28 {offsets = [3, 0, 0], sizes = [1, 8, 512], strides = [1, 1, 1]} : vector<6x8x512xf32> to vector<1x8x512xf32>
    %100 = vector.shape_cast %99 : vector<1x8x512xf32> to vector<8x512xf32>
    %101 = arith.addf %98, %100 : vector<8x512xf32>
    %102 = vector.extract_strided_slice %28 {offsets = [5, 0, 0], sizes = [1, 8, 512], strides = [1, 1, 1]} : vector<6x8x512xf32> to vector<1x8x512xf32>
    %103 = vector.shape_cast %102 : vector<1x8x512xf32> to vector<8x512xf32>
    %104 = arith.subf %101, %103 : vector<8x512xf32>
    %cst_15 = arith.constant 0.000000e+00 : f32
    %105 = vector.broadcast %cst_15 : f32 to vector<8x512xf32>
    %106 = arith.maximumf %104, %105 : vector<8x512xf32>
    %107 = arith.addf %96, %106 : vector<8x512xf32>
    %108 = vector.extract_strided_slice %28 {offsets = [0, 0, 0], sizes = [1, 8, 512], strides = [1, 1, 1]} : vector<6x8x512xf32> to vector<1x8x512xf32>
    %109 = vector.shape_cast %108 : vector<1x8x512xf32> to vector<8x512xf32>
    %110 = vector.extract_strided_slice %29 {offsets = [3, 0, 0], sizes = [1, 8, 512], strides = [1, 1, 1]} : vector<6x8x512xf32> to vector<1x8x512xf32>
    %111 = vector.shape_cast %110 : vector<1x8x512xf32> to vector<8x512xf32>
    %112 = arith.addf %109, %111 : vector<8x512xf32>
    %113 = vector.extract_strided_slice %29 {offsets = [5, 0, 0], sizes = [1, 8, 512], strides = [1, 1, 1]} : vector<6x8x512xf32> to vector<1x8x512xf32>
    %114 = vector.shape_cast %113 : vector<1x8x512xf32> to vector<8x512xf32>
    %115 = arith.subf %112, %114 : vector<8x512xf32>
    %cst_16 = arith.constant 0.000000e+00 : f32
    %116 = vector.broadcast %cst_16 : f32 to vector<8x512xf32>
    %117 = arith.maximumf %115, %116 : vector<8x512xf32>
    %118 = arith.addf %107, %117 : vector<8x512xf32>
    %119 = vector.extract_strided_slice %26 {offsets = [1, 0, 0], sizes = [1, 8, 512], strides = [1, 1, 1]} : vector<6x8x512xf32> to vector<1x8x512xf32>
    %120 = vector.shape_cast %119 : vector<1x8x512xf32> to vector<8x512xf32>
    %121 = vector.extract_strided_slice %26 {offsets = [2, 0, 0], sizes = [1, 8, 512], strides = [1, 1, 1]} : vector<6x8x512xf32> to vector<1x8x512xf32>
    %122 = vector.shape_cast %121 : vector<1x8x512xf32> to vector<8x512xf32>
    %123 = arith.addf %120, %122 : vector<8x512xf32>
    %124 = vector.extract_strided_slice %26 {offsets = [5, 0, 0], sizes = [1, 8, 512], strides = [1, 1, 1]} : vector<6x8x512xf32> to vector<1x8x512xf32>
    %125 = vector.shape_cast %124 : vector<1x8x512xf32> to vector<8x512xf32>
    %126 = arith.subf %123, %125 : vector<8x512xf32>
    %cst_17 = arith.constant 0.000000e+00 : f32
    %127 = vector.broadcast %cst_17 : f32 to vector<8x512xf32>
    %128 = arith.maximumf %126, %127 : vector<8x512xf32>
    %129 = arith.addf %118, %128 : vector<8x512xf32>
    %130 = vector.extract_strided_slice %26 {offsets = [1, 0, 0], sizes = [1, 8, 512], strides = [1, 1, 1]} : vector<6x8x512xf32> to vector<1x8x512xf32>
    %131 = vector.shape_cast %130 : vector<1x8x512xf32> to vector<8x512xf32>
    %132 = vector.extract_strided_slice %28 {offsets = [2, 0, 0], sizes = [1, 8, 512], strides = [1, 1, 1]} : vector<6x8x512xf32> to vector<1x8x512xf32>
    %133 = vector.shape_cast %132 : vector<1x8x512xf32> to vector<8x512xf32>
    %134 = arith.addf %131, %133 : vector<8x512xf32>
    %135 = vector.extract_strided_slice %26 {offsets = [5, 0, 0], sizes = [1, 8, 512], strides = [1, 1, 1]} : vector<6x8x512xf32> to vector<1x8x512xf32>
    %136 = vector.shape_cast %135 : vector<1x8x512xf32> to vector<8x512xf32>
    %137 = arith.subf %134, %136 : vector<8x512xf32>
    %cst_18 = arith.constant 0.000000e+00 : f32
    %138 = vector.broadcast %cst_18 : f32 to vector<8x512xf32>
    %139 = arith.maximumf %137, %138 : vector<8x512xf32>
    %140 = arith.addf %129, %139 : vector<8x512xf32>
    %141 = vector.extract_strided_slice %27 {offsets = [1, 0, 0], sizes = [1, 8, 512], strides = [1, 1, 1]} : vector<6x8x512xf32> to vector<1x8x512xf32>
    %142 = vector.shape_cast %141 : vector<1x8x512xf32> to vector<8x512xf32>
    %143 = vector.extract_strided_slice %27 {offsets = [2, 0, 0], sizes = [1, 8, 512], strides = [1, 1, 1]} : vector<6x8x512xf32> to vector<1x8x512xf32>
    %144 = vector.shape_cast %143 : vector<1x8x512xf32> to vector<8x512xf32>
    %145 = arith.addf %142, %144 : vector<8x512xf32>
    %146 = vector.extract_strided_slice %27 {offsets = [5, 0, 0], sizes = [1, 8, 512], strides = [1, 1, 1]} : vector<6x8x512xf32> to vector<1x8x512xf32>
    %147 = vector.shape_cast %146 : vector<1x8x512xf32> to vector<8x512xf32>
    %148 = arith.subf %145, %147 : vector<8x512xf32>
    %cst_19 = arith.constant 0.000000e+00 : f32
    %149 = vector.broadcast %cst_19 : f32 to vector<8x512xf32>
    %150 = arith.maximumf %148, %149 : vector<8x512xf32>
    %151 = arith.addf %140, %150 : vector<8x512xf32>
    %152 = vector.extract_strided_slice %27 {offsets = [1, 0, 0], sizes = [1, 8, 512], strides = [1, 1, 1]} : vector<6x8x512xf32> to vector<1x8x512xf32>
    %153 = vector.shape_cast %152 : vector<1x8x512xf32> to vector<8x512xf32>
    %154 = vector.extract_strided_slice %28 {offsets = [2, 0, 0], sizes = [1, 8, 512], strides = [1, 1, 1]} : vector<6x8x512xf32> to vector<1x8x512xf32>
    %155 = vector.shape_cast %154 : vector<1x8x512xf32> to vector<8x512xf32>
    %156 = arith.addf %153, %155 : vector<8x512xf32>
    %157 = vector.extract_strided_slice %27 {offsets = [5, 0, 0], sizes = [1, 8, 512], strides = [1, 1, 1]} : vector<6x8x512xf32> to vector<1x8x512xf32>
    %158 = vector.shape_cast %157 : vector<1x8x512xf32> to vector<8x512xf32>
    %159 = arith.subf %156, %158 : vector<8x512xf32>
    %cst_20 = arith.constant 0.000000e+00 : f32
    %160 = vector.broadcast %cst_20 : f32 to vector<8x512xf32>
    %161 = arith.maximumf %159, %160 : vector<8x512xf32>
    %162 = arith.addf %151, %161 : vector<8x512xf32>
    %163 = vector.extract_strided_slice %28 {offsets = [1, 0, 0], sizes = [1, 8, 512], strides = [1, 1, 1]} : vector<6x8x512xf32> to vector<1x8x512xf32>
    %164 = vector.shape_cast %163 : vector<1x8x512xf32> to vector<8x512xf32>
    %165 = vector.extract_strided_slice %28 {offsets = [2, 0, 0], sizes = [1, 8, 512], strides = [1, 1, 1]} : vector<6x8x512xf32> to vector<1x8x512xf32>
    %166 = vector.shape_cast %165 : vector<1x8x512xf32> to vector<8x512xf32>
    %167 = arith.addf %164, %166 : vector<8x512xf32>
    %168 = vector.extract_strided_slice %28 {offsets = [5, 0, 0], sizes = [1, 8, 512], strides = [1, 1, 1]} : vector<6x8x512xf32> to vector<1x8x512xf32>
    %169 = vector.shape_cast %168 : vector<1x8x512xf32> to vector<8x512xf32>
    %170 = arith.subf %167, %169 : vector<8x512xf32>
    %cst_21 = arith.constant 0.000000e+00 : f32
    %171 = vector.broadcast %cst_21 : f32 to vector<8x512xf32>
    %172 = arith.maximumf %170, %171 : vector<8x512xf32>
    %173 = arith.addf %162, %172 : vector<8x512xf32>
    %174 = vector.extract_strided_slice %29 {offsets = [1, 0, 0], sizes = [1, 8, 512], strides = [1, 1, 1]} : vector<6x8x512xf32> to vector<1x8x512xf32>
    %175 = vector.shape_cast %174 : vector<1x8x512xf32> to vector<8x512xf32>
    %176 = vector.extract_strided_slice %28 {offsets = [2, 0, 0], sizes = [1, 8, 512], strides = [1, 1, 1]} : vector<6x8x512xf32> to vector<1x8x512xf32>
    %177 = vector.shape_cast %176 : vector<1x8x512xf32> to vector<8x512xf32>
    %178 = arith.addf %175, %177 : vector<8x512xf32>
    %179 = vector.extract_strided_slice %29 {offsets = [5, 0, 0], sizes = [1, 8, 512], strides = [1, 1, 1]} : vector<6x8x512xf32> to vector<1x8x512xf32>
    %180 = vector.shape_cast %179 : vector<1x8x512xf32> to vector<8x512xf32>
    %181 = arith.subf %178, %180 : vector<8x512xf32>
    %cst_22 = arith.constant 0.000000e+00 : f32
    %182 = vector.broadcast %cst_22 : f32 to vector<8x512xf32>
    %183 = arith.maximumf %181, %182 : vector<8x512xf32>
    %184 = arith.addf %173, %183 : vector<8x512xf32>
    %185 = vector.extract_strided_slice %27 {offsets = [4, 0, 0], sizes = [1, 8, 512], strides = [1, 1, 1]} : vector<6x8x512xf32> to vector<1x8x512xf32>
    %186 = vector.shape_cast %185 : vector<1x8x512xf32> to vector<8x512xf32>
    %187 = math.exp %186 : vector<8x512xf32>
    %cst_23 = arith.constant 1.000000e+00 : f32
    %188 = vector.broadcast %cst_23 : f32 to vector<8x512xf32>
    %189 = arith.cmpf oeq, %187, %188 : vector<8x512xf32>
    %190 = math.log %187 : vector<8x512xf32>
    %cst_24 = arith.constant 1.000000e+00 : f32
    %191 = vector.broadcast %cst_24 : f32 to vector<8x512xf32>
    %192 = arith.select %189, %191, %190 : vector<8x512xi1>, vector<8x512xf32>
    %cst_25 = arith.constant 1.000000e+00 : f32
    %193 = vector.broadcast %cst_25 : f32 to vector<8x512xf32>
    %194 = arith.subf %193, %187 : vector<8x512xf32>
    %195 = arith.divf %186, %192 : vector<8x512xf32>
    %196 = arith.mulf %194, %195 : vector<8x512xf32>
    %cst_26 = arith.constant 0.000000e+00 : f32
    %197 = vector.broadcast %cst_26 : f32 to vector<8x512xf32>
    %198 = arith.subf %197, %186 : vector<8x512xf32>
    %199 = arith.select %189, %198, %196 : vector<8x512xi1>, vector<8x512xf32>
    %cst_27 = arith.constant 0.000000e+00 : f32
    %200 = vector.broadcast %cst_27 : f32 to vector<8x512xf32>
    %201 = arith.cmpf oeq, %187, %200 : vector<8x512xf32>
    %cst_28 = arith.constant 1.000000e+00 : f32
    %202 = vector.broadcast %cst_28 : f32 to vector<8x512xf32>
    %203 = arith.select %201, %202, %199 : vector<8x512xi1>, vector<8x512xf32>
    %204 = math.log %203 : vector<8x512xf32>
    %205 = arith.subf %35, %204 : vector<8x512xf32>
    %cst_29 = arith.constant 0.000000e+00 : f32
    %206 = vector.broadcast %cst_29 : f32 to vector<8x512xf32>
    %207 = arith.maximumf %205, %206 : vector<8x512xf32>
    %208 = arith.addf %184, %207 : vector<8x512xf32>
    %209 = vector.extract_strided_slice %28 {offsets = [4, 0, 0], sizes = [1, 8, 512], strides = [1, 1, 1]} : vector<6x8x512xf32> to vector<1x8x512xf32>
    %210 = vector.shape_cast %209 : vector<1x8x512xf32> to vector<8x512xf32>
    %211 = math.exp %210 : vector<8x512xf32>
    %cst_30 = arith.constant 1.000000e+00 : f32
    %212 = vector.broadcast %cst_30 : f32 to vector<8x512xf32>
    %213 = arith.cmpf oeq, %211, %212 : vector<8x512xf32>
    %214 = math.log %211 : vector<8x512xf32>
    %cst_31 = arith.constant 1.000000e+00 : f32
    %215 = vector.broadcast %cst_31 : f32 to vector<8x512xf32>
    %216 = arith.select %213, %215, %214 : vector<8x512xi1>, vector<8x512xf32>
    %cst_32 = arith.constant 1.000000e+00 : f32
    %217 = vector.broadcast %cst_32 : f32 to vector<8x512xf32>
    %218 = arith.subf %217, %211 : vector<8x512xf32>
    %219 = arith.divf %210, %216 : vector<8x512xf32>
    %220 = arith.mulf %218, %219 : vector<8x512xf32>
    %cst_33 = arith.constant 0.000000e+00 : f32
    %221 = vector.broadcast %cst_33 : f32 to vector<8x512xf32>
    %222 = arith.subf %221, %210 : vector<8x512xf32>
    %223 = arith.select %213, %222, %220 : vector<8x512xi1>, vector<8x512xf32>
    %cst_34 = arith.constant 0.000000e+00 : f32
    %224 = vector.broadcast %cst_34 : f32 to vector<8x512xf32>
    %225 = arith.cmpf oeq, %211, %224 : vector<8x512xf32>
    %cst_35 = arith.constant 1.000000e+00 : f32
    %226 = vector.broadcast %cst_35 : f32 to vector<8x512xf32>
    %227 = arith.select %225, %226, %223 : vector<8x512xi1>, vector<8x512xf32>
    %228 = math.log %227 : vector<8x512xf32>
    %229 = arith.subf %35, %228 : vector<8x512xf32>
    %cst_36 = arith.constant 0.000000e+00 : f32
    %230 = vector.broadcast %cst_36 : f32 to vector<8x512xf32>
    %231 = arith.maximumf %229, %230 : vector<8x512xf32>
    %232 = arith.addf %208, %231 : vector<8x512xf32>
    %233 = arith.subf %46, %204 : vector<8x512xf32>
    %cst_37 = arith.constant 0.000000e+00 : f32
    %234 = vector.broadcast %cst_37 : f32 to vector<8x512xf32>
    %235 = arith.maximumf %233, %234 : vector<8x512xf32>
    %236 = arith.addf %232, %235 : vector<8x512xf32>
    %237 = arith.subf %46, %228 : vector<8x512xf32>
    %cst_38 = arith.constant 0.000000e+00 : f32
    %238 = vector.broadcast %cst_38 : f32 to vector<8x512xf32>
    %239 = arith.maximumf %237, %238 : vector<8x512xf32>
    %240 = arith.addf %236, %239 : vector<8x512xf32>
    %241 = vector.extract_strided_slice %26 {offsets = [4, 0, 0], sizes = [1, 8, 512], strides = [1, 1, 1]} : vector<6x8x512xf32> to vector<1x8x512xf32>
    %242 = vector.shape_cast %241 : vector<1x8x512xf32> to vector<8x512xf32>
    %243 = math.exp %242 : vector<8x512xf32>
    %cst_39 = arith.constant 1.000000e+00 : f32
    %244 = vector.broadcast %cst_39 : f32 to vector<8x512xf32>
    %245 = arith.cmpf oeq, %243, %244 : vector<8x512xf32>
    %246 = math.log %243 : vector<8x512xf32>
    %cst_40 = arith.constant 1.000000e+00 : f32
    %247 = vector.broadcast %cst_40 : f32 to vector<8x512xf32>
    %248 = arith.select %245, %247, %246 : vector<8x512xi1>, vector<8x512xf32>
    %cst_41 = arith.constant 1.000000e+00 : f32
    %249 = vector.broadcast %cst_41 : f32 to vector<8x512xf32>
    %250 = arith.subf %249, %243 : vector<8x512xf32>
    %251 = arith.divf %242, %248 : vector<8x512xf32>
    %252 = arith.mulf %250, %251 : vector<8x512xf32>
    %cst_42 = arith.constant 0.000000e+00 : f32
    %253 = vector.broadcast %cst_42 : f32 to vector<8x512xf32>
    %254 = arith.subf %253, %242 : vector<8x512xf32>
    %255 = arith.select %245, %254, %252 : vector<8x512xi1>, vector<8x512xf32>
    %cst_43 = arith.constant 0.000000e+00 : f32
    %256 = vector.broadcast %cst_43 : f32 to vector<8x512xf32>
    %257 = arith.cmpf oeq, %243, %256 : vector<8x512xf32>
    %cst_44 = arith.constant 1.000000e+00 : f32
    %258 = vector.broadcast %cst_44 : f32 to vector<8x512xf32>
    %259 = arith.select %257, %258, %255 : vector<8x512xi1>, vector<8x512xf32>
    %260 = math.log %259 : vector<8x512xf32>
    %261 = arith.subf %57, %260 : vector<8x512xf32>
    %cst_45 = arith.constant 0.000000e+00 : f32
    %262 = vector.broadcast %cst_45 : f32 to vector<8x512xf32>
    %263 = arith.maximumf %261, %262 : vector<8x512xf32>
    %264 = arith.addf %240, %263 : vector<8x512xf32>
    %265 = arith.subf %57, %228 : vector<8x512xf32>
    %cst_46 = arith.constant 0.000000e+00 : f32
    %266 = vector.broadcast %cst_46 : f32 to vector<8x512xf32>
    %267 = arith.maximumf %265, %266 : vector<8x512xf32>
    %268 = arith.addf %264, %267 : vector<8x512xf32>
    %269 = arith.subf %68, %260 : vector<8x512xf32>
    %cst_47 = arith.constant 0.000000e+00 : f32
    %270 = vector.broadcast %cst_47 : f32 to vector<8x512xf32>
    %271 = arith.maximumf %269, %270 : vector<8x512xf32>
    %272 = arith.addf %268, %271 : vector<8x512xf32>
    %273 = arith.subf %68, %228 : vector<8x512xf32>
    %cst_48 = arith.constant 0.000000e+00 : f32
    %274 = vector.broadcast %cst_48 : f32 to vector<8x512xf32>
    %275 = arith.maximumf %273, %274 : vector<8x512xf32>
    %276 = arith.addf %272, %275 : vector<8x512xf32>
    %277 = arith.subf %79, %204 : vector<8x512xf32>
    %cst_49 = arith.constant 0.000000e+00 : f32
    %278 = vector.broadcast %cst_49 : f32 to vector<8x512xf32>
    %279 = arith.maximumf %277, %278 : vector<8x512xf32>
    %280 = arith.addf %276, %279 : vector<8x512xf32>
    %281 = arith.subf %79, %228 : vector<8x512xf32>
    %cst_50 = arith.constant 0.000000e+00 : f32
    %282 = vector.broadcast %cst_50 : f32 to vector<8x512xf32>
    %283 = arith.maximumf %281, %282 : vector<8x512xf32>
    %284 = arith.addf %280, %283 : vector<8x512xf32>
    %285 = arith.subf %90, %260 : vector<8x512xf32>
    %cst_51 = arith.constant 0.000000e+00 : f32
    %286 = vector.broadcast %cst_51 : f32 to vector<8x512xf32>
    %287 = arith.maximumf %285, %286 : vector<8x512xf32>
    %288 = arith.addf %284, %287 : vector<8x512xf32>
    %289 = arith.subf %90, %228 : vector<8x512xf32>
    %cst_52 = arith.constant 0.000000e+00 : f32
    %290 = vector.broadcast %cst_52 : f32 to vector<8x512xf32>
    %291 = arith.maximumf %289, %290 : vector<8x512xf32>
    %292 = arith.addf %288, %291 : vector<8x512xf32>
    %293 = arith.subf %123, %204 : vector<8x512xf32>
    %cst_53 = arith.constant 0.000000e+00 : f32
    %294 = vector.broadcast %cst_53 : f32 to vector<8x512xf32>
    %295 = arith.maximumf %293, %294 : vector<8x512xf32>
    %296 = arith.addf %292, %295 : vector<8x512xf32>
    %297 = arith.subf %123, %228 : vector<8x512xf32>
    %cst_54 = arith.constant 0.000000e+00 : f32
    %298 = vector.broadcast %cst_54 : f32 to vector<8x512xf32>
    %299 = arith.maximumf %297, %298 : vector<8x512xf32>
    %300 = arith.addf %296, %299 : vector<8x512xf32>
    %301 = arith.subf %134, %204 : vector<8x512xf32>
    %cst_55 = arith.constant 0.000000e+00 : f32
    %302 = vector.broadcast %cst_55 : f32 to vector<8x512xf32>
    %303 = arith.maximumf %301, %302 : vector<8x512xf32>
    %304 = arith.addf %300, %303 : vector<8x512xf32>
    %305 = arith.subf %134, %228 : vector<8x512xf32>
    %cst_56 = arith.constant 0.000000e+00 : f32
    %306 = vector.broadcast %cst_56 : f32 to vector<8x512xf32>
    %307 = arith.maximumf %305, %306 : vector<8x512xf32>
    %308 = arith.addf %304, %307 : vector<8x512xf32>
    %309 = arith.subf %145, %260 : vector<8x512xf32>
    %cst_57 = arith.constant 0.000000e+00 : f32
    %310 = vector.broadcast %cst_57 : f32 to vector<8x512xf32>
    %311 = arith.maximumf %309, %310 : vector<8x512xf32>
    %312 = arith.addf %308, %311 : vector<8x512xf32>
    %313 = arith.subf %145, %228 : vector<8x512xf32>
    %cst_58 = arith.constant 0.000000e+00 : f32
    %314 = vector.broadcast %cst_58 : f32 to vector<8x512xf32>
    %315 = arith.maximumf %313, %314 : vector<8x512xf32>
    %316 = arith.addf %312, %315 : vector<8x512xf32>
    %317 = arith.subf %156, %260 : vector<8x512xf32>
    %cst_59 = arith.constant 0.000000e+00 : f32
    %318 = vector.broadcast %cst_59 : f32 to vector<8x512xf32>
    %319 = arith.maximumf %317, %318 : vector<8x512xf32>
    %320 = arith.addf %316, %319 : vector<8x512xf32>
    %321 = arith.subf %156, %228 : vector<8x512xf32>
    %cst_60 = arith.constant 0.000000e+00 : f32
    %322 = vector.broadcast %cst_60 : f32 to vector<8x512xf32>
    %323 = arith.maximumf %321, %322 : vector<8x512xf32>
    %324 = arith.addf %320, %323 : vector<8x512xf32>
    %325 = arith.subf %112, %228 : vector<8x512xf32>
    %cst_61 = arith.constant 0.000000e+00 : f32
    %326 = vector.broadcast %cst_61 : f32 to vector<8x512xf32>
    %327 = arith.maximumf %325, %326 : vector<8x512xf32>
    %328 = arith.addf %324, %327 : vector<8x512xf32>
    %329 = arith.subf %178, %228 : vector<8x512xf32>
    %cst_62 = arith.constant 0.000000e+00 : f32
    %330 = vector.broadcast %cst_62 : f32 to vector<8x512xf32>
    %331 = arith.maximumf %329, %330 : vector<8x512xf32>
    %332 = arith.addf %328, %331 : vector<8x512xf32>
    %c0_63 = arith.constant 0 : index
    %333 = memref.load %arg2[%c0_63] : memref<1xf32, #tpu.memory_space<smem>>
    %334 = vector.shape_cast %332 : vector<8x512xf32> to vector<1x8x512xf32>
    %cst_64 = arith.constant dense<0.000000e+00> : vector<1xf32>
    %335 = vector.multi_reduction <add>, %334, %cst_64 [1, 2] : vector<1x8x512xf32> to vector<1xf32>
    %336 = vector.shape_cast %335 : vector<1xf32> to vector<1x1x1xf32>
    %337 = vector.extract %336[0, 0, 0] : f32 from vector<1x1x1xf32>
    %338 = arith.addf %333, %337 : f32
    %c0_65 = arith.constant 0 : index
    %339 = memref.load %arg2[%c0_65] : memref<1xf32, #tpu.memory_space<smem>>
    memref.store %338, %arg2[%c0_65] : memref<1xf32, #tpu.memory_space<smem>>
    return
  }
  func.func @transform_0(%arg0: i32) -> (i32, i32, i32) {
    %c0_i32 = arith.constant 0 : i32
    %c0_i32_0 = arith.constant 0 : i32
    %c0_i32_1 = arith.constant 0 : i32
    return %c0_i32, %c0_i32_0, %arg0 : i32, i32, i32
  }
  func.func @transform_1(%arg0: i32) -> i32 {
    %c0_i32 = arith.constant 0 : i32
    %c0_i32_0 = arith.constant 0 : i32
    return %c0_i32 : i32
  }
}

</mosaic_0001>

<bundles_post_ra>
// kernel: tpu_custom_call.1
= control target key start
LH: loop header
LB: loop body
LE: loop exit
PB: predicated region body
PF: predicated region fallthrough
CT: control target
= control target key end

     0   :  { %6 = vsyncpa [#allocation3], 0  ;;  %s5001_s0 = inlined_call_operand.hbm [shape: f32[12,8,512], index: 0, kind: input, shape index: {}]   ;;  %s5002_s1 = inlined_call_operand.hbm [shape: f32[1], index: 1, kind: output, shape index: {}]  }
   0x1   :  { %7 = vsyncpa [#allocation4], 0  ;;  %s2222_s6 = smov [#allocation2]   ;;  %s2186_s10 = scalar_lea.hbm %s5001_s0, 6144 }
   0x2   :  { %s13_s7 = sshll.u32 %s2222_s6, 4  ;;  %p2187_p0 = scmp.ne.s32.totalorder %s5001_s0, %s2186_s10  ;;  %s14_s7 = int_to_ptr.vmem [resolvable:$true] %s13_s7 }
   0x3   :  { %p2190_p1 = scmp.lt.u32.totalorder %s2186_s10, %s5001_s0 }
   0x5   :  { %p2192_p2 = pnand %p2190_p1, %p2187_p0 }
   0x7   :  { %2195 = shalt.err (!%p2192_p2)
}
   0x8   :  { %s2196_s15 = scalar_lea.vmem %s14_s7, 6144  ;;  %p2201_p4 = scmp.lt.s32.totalorder %s14_s7, %s14_s7 }
   0x9   :  { %p2197_p3 = scmp.ne.s32.totalorder %s14_s7, %s2196_s15  ;;  %p2202_p5 = scmp.lt.s32.totalorder %s2196_s15, %s2196_s15 }
   0xb   :  { %p2203_p6 = por %p2202_p5, %p2201_p4 }
   0xd   :  { %p2204_p7 = pnand %p2203_p6, %p2197_p3 }
   0xf   :  { %2207 = shalt.err (!%p2204_p7)
}
  0x10   :  { %s2223_s16 = smov 512   ;;  %s2224_s17 = smov 32  }
  0x11   :  { %19 = dma.hbm_to_vmem [thread:$0]  %s5001_s0, 6144, %s14_s7, [#allocation3], %s2223_s16, %s2223_s16, %s2224_s17  }
  0x12   :  { %2218 = dma.done.wait [#allocation3], 6144  }
  0x13   :  { %2219 = vsyncadd [#allocation3], 4294961152  ;;  %s2225_s20 = smov 0.0   ;;  %v2249_v0 = vld [vmem:[#allocation2] sm:$0xff]  ;;  %v2251_v1 = vld [vmem:[#allocation2 + $0x8] sm:$0xff]  ;;  %s2208_s25 = scalar_lea.hbm %s5002_s1, 16 }
  0x14   :  { %28 = sst [smem:[#allocation5]] %s2225_s20  ;;  %5434 = vst [vmem:[#allocation8_spill] sm:$0xff] %v2249_v0  ;;  %5435 = vst [vmem:[#allocation9_spill] sm:$0xff] %v2251_v1  ;;  %v2253_v2 = vld [vmem:[#allocation2 + $0x10] sm:$0xff]  ;;  %v2255_v3 = vld [vmem:[#allocation2 + $0x18] sm:$0xff]  ;;  %p2209_p8 = scmp.ne.s32.totalorder %s5002_s1, %s2208_s25 }
  0x15   :  { %5436 = vst [vmem:[#allocation10_spill] sm:$0xff] %v2253_v2  ;;  %5437 = vst [vmem:[#allocation11_spill] sm:$0xff] %v2255_v3  ;;  %v77_v4 = vmul.f32 1.442695, %v2249_v0  ;;  %v2258_v5 = vld [vmem:[#allocation2 + $0x20] sm:$0xff]  ;;  %v2261_v7 = vld [vmem:[#allocation2 + $0x28] sm:$0xff]  ;;  %p2212_p9 = scmp.lt.u32.totalorder %s2208_s25, %s5002_s1 }
  0x16   :  { %5438 = vst [vmem:[#allocation12_spill] sm:$0xff] %v2258_v5  ;;  %v79_v6 = vmul.f32 1.442695, %v2251_v1  ;;  %5439 = vst [vmem:[#allocation13_spill] sm:$0xff] %v2261_v7  ;;  %v81_v8 = vmul.f32 1.442695, %v2253_v2 }
  0x17   :  { %v2264_v9 = vld [vmem:[#allocation2 + $0x30] sm:$0xff]  ;;  %v83_v10 = vmul.f32 1.442695, %v2255_v3  ;;  %v2267_v11 = vld [vmem:[#allocation2 + $0x38] sm:$0xff]  ;;  %1646 = vpow2.f32 %v77_v4  ;;  %v85_v12 = vmul.f32 1.442695, %v2258_v5  ;;  %p2214_p10 = pnand %p2212_p9, %p2209_p8 }
  0x18   :  { %5440 = vst [vmem:[#allocation14_spill] sm:$0xff] %v2264_v9  ;;  %5441 = vst [vmem:[#allocation15_spill] sm:$0xff] %v2267_v11  ;;  %v2270_v13 = vld [vmem:[#allocation2 + $0x40] sm:$0xff]  ;;  %1648 = vpow2.f32 %v79_v6  ;;  %v87_v14 = vmul.f32 1.442695, %v2261_v7  ;;  %v2273_v15 = vld [vmem:[#allocation2 + $0x48] sm:$0xff] }
  0x19   :  { %5442 = vst [vmem:[#allocation16_spill] sm:$0xff] %v2270_v13  ;;  %5443 = vst [vmem:[#allocation17_spill] sm:$0xff] %v2273_v15  ;;  %1650 = vpow2.f32 %v81_v8  ;;  %v89_v16 = vmul.f32 1.442695, %v2264_v9  ;;  %v2276_v17 = vld [vmem:[#allocation2 + $0x50] sm:$0xff]  ;;  %v2279_v19 = vld [vmem:[#allocation2 + $0x58] sm:$0xff] }
  0x1a   :  { %5444 = vst [vmem:[#allocation18_spill] sm:$0xff] %v2276_v17  ;;  %1652 = vpow2.f32 %v83_v10  ;;  %v91_v18 = vmul.f32 1.442695, %v2267_v11  ;;  %5445 = vst [vmem:[#allocation19_spill] sm:$0xff] %v2279_v19  ;;  %v93_v20 = vmul.f32 1.442695, %v2270_v13 }
  0x1b   :  { %1654 = vpow2.f32 %v85_v12  ;;  %v2282_v21 = vld [vmem:[#allocation2 + $0x60] sm:$0xff]  ;;  %v95_v22 = vmul.f32 1.442695, %v2273_v15  ;;  %v2285_v23 = vld [vmem:[#allocation2 + $0x68] sm:$0xff]  ;;  %v97_v24 = vmul.f32 1.442695, %v2276_v17 }
  0x1c   :  { %5446 = vst [vmem:[#allocation20_spill] sm:$0xff] %v2282_v21  ;;  %1656 = vpow2.f32 %v87_v14  ;;  %5447 = vst [vmem:[#allocation21_spill] sm:$0xff] %v2285_v23  ;;  %v2288_v25 = vld [vmem:[#allocation2 + $0x70] sm:$0xff]  ;;  %v99_v26 = vmul.f32 1.442695, %v2279_v19  ;;  %v2291_v27 = vld [vmem:[#allocation2 + $0x78] sm:$0xff] }
  0x1d   :  { %1658 = vpow2.f32 %v89_v16  ;;  %5448 = vst [vmem:[#allocation22_spill] sm:$0xff] %v2288_v25  ;;  %5449 = vst [vmem:[#allocation23_spill] sm:$0xff] %v2291_v27  ;;  %v101_v28 = vmul.f32 1.442695, %v2282_v21  ;;  %v2294_v29 = vld [vmem:[#allocation2 + $0x80] sm:$0xff]  ;;  %v2299_v32 = vld [vmem:[#allocation2 + $0x88] sm:$0xff] }
  0x1e   :  { %1660 = vpow2.f32 %v91_v18  ;;  %5450 = vst [vmem:[#allocation24_spill] sm:$0xff] %v2294_v29  ;;  %v103_v30 = vmul.f32 1.442695, %v2285_v23  ;;  %5452 = vst [vmem:[#allocation26_spill] sm:$0xff] %v2299_v32  ;;  %v105_v33 = vmul.f32 1.442695, %v2288_v25 }
  0x1f   :  { %1662 = vpow2.f32 %v93_v20  ;;  %v2304_v35 = vld [vmem:[#allocation2 + $0x90] sm:$0xff]  ;;  %v107_v36 = vmul.f32 1.442695, %v2291_v27  ;;  %v2309_v38 = vld [vmem:[#allocation2 + $0x98] sm:$0xff]  ;;  %v109_v39 = vmul.f32 1.442695, %v2294_v29 }
  0x20   :  { %1664 = vpow2.f32 %v95_v22  ;;  %5454 = vst [vmem:[#allocation28_spill] sm:$0xff] %v2304_v35  ;;  %5456 = vst [vmem:[#allocation30_spill] sm:$0xff] %v2309_v38  ;;  %v2314_v41 = vld [vmem:[#allocation2 + $0xa0] sm:$0xff]  ;;  %v111_v42 = vmul.f32 1.442695, %v2299_v32  ;;  %v2319_v44 = vld [vmem:[#allocation2 + $0xa8] sm:$0xff] }
  0x21   :  { %v2297_v31 = vpop.eup %1646  ;;  %1666 = vpow2.f32 %v97_v24  ;;  %5458 = vst [vmem:[#allocation32_spill] sm:$0xff] %v2314_v41  ;;  %5460 = vst [vmem:[#allocation34_spill] sm:$0xff] %v2319_v44  ;;  %v113_v45 = vmul.f32 1.442695, %v2304_v35  ;;  %v2324_v47 = vld [vmem:[#allocation2 + $0xb0] sm:$0xff]  ;;  %v2329_v50 = vld [vmem:[#allocation2 + $0xb8] sm:$0xff] }
  0x22   :  { %5451 = vst [vmem:[#allocation25_spill] sm:$0xff] %v2297_v31  ;;  %v2302_v34 = vpop.eup %1648  ;;  %1668 = vpow2.f32 %v99_v26  ;;  %5462 = vst [vmem:[#allocation36_spill] sm:$0xff] %v2324_v47  ;;  %v115_v48 = vmul.f32 1.442695, %v2309_v38  ;;  %v117_v51 = vmul.f32 1.442695, %v2314_v41 }
  0x23   :  { %5453 = vst [vmem:[#allocation27_spill] sm:$0xff] %v2302_v34  ;;  %v2307_v37 = vpop.eup %1650  ;;  %1670 = vpow2.f32 %v101_v28  ;;  %5464 = vst [vmem:[#allocation38_spill] sm:$0xff] %v2329_v50  ;;  %v2334_v53 = vld [vmem:[#allocation2 + $0xc0] sm:$0xff]  ;;  %v119_v54 = vmul.f32 1.442695, %v2319_v44  ;;  %v2339_v56 = vld [vmem:[#allocation2 + $0xc8] sm:$0xff] }
  0x24   :  { %5455 = vst [vmem:[#allocation29_spill] sm:$0xff] %v2307_v37  ;;  %v2312_v40 = vpop.eup %1652  ;;  %1672 = vpow2.f32 %v103_v30  ;;  %5466 = vst [vmem:[#allocation40_spill] sm:$0xff] %v2334_v53  ;;  %v121_v57 = vmul.f32 1.442695, %v2324_v47  ;;  %v2344_v59 = vld [vmem:[#allocation2 + $0xd0] sm:$0xff]  ;;  %v2349_v62 = vld [vmem:[#allocation2 + $0xd8] sm:$0xff] }
  0x25   :  { %5457 = vst [vmem:[#allocation31_spill] sm:$0xff] %v2312_v40  ;;  %v2317_v43 = vpop.eup %1654  ;;  %1674 = vpow2.f32 %v105_v33  ;;  %5468 = vst [vmem:[#allocation42_spill] sm:$0xff] %v2339_v56  ;;  %v123_v60 = vmul.f32 1.442695, %v2329_v50  ;;  %v125_v63 = vmul.f32 1.442695, %v2334_v53 }
  0x26   :  { %5459 = vst [vmem:[#allocation33_spill] sm:$0xff] %v2317_v43  ;;  %v2322_v46 = vpop.eup %1656  ;;  %1676 = vpow2.f32 %v107_v36  ;;  %5470 = vst [vmem:[#allocation44_spill] sm:$0xff] %v2344_v59  ;;  %v2354_v6 = vld [vmem:[#allocation2 + $0xe0] sm:$0xff]  ;;  %v127_v8 = vmul.f32 1.442695, %v2339_v56  ;;  %v2359_v12 = vld [vmem:[#allocation2 + $0xe8] sm:$0xff] }
  0x27   :  { %5461 = vst [vmem:[#allocation35_spill] sm:$0xff] %v2322_v46  ;;  %v2327_v49 = vpop.eup %1658  ;;  %1678 = vpow2.f32 %v109_v39  ;;  %5472 = vst [vmem:[#allocation46_spill] sm:$0xff] %v2349_v62  ;;  %v129_v14 = vmul.f32 1.442695, %v2344_v59  ;;  %v2364_v18 = vld [vmem:[#allocation2 + $0xf0] sm:$0xff]  ;;  %v2369_v24 = vld [vmem:[#allocation2 + $0xf8] sm:$0xff] }
  0x28   :  { %5463 = vst [vmem:[#allocation37_spill] sm:$0xff] %v2327_v49  ;;  %v2332_v52 = vpop.eup %1660  ;;  %1680 = vpow2.f32 %v111_v42  ;;  %5474 = vst [vmem:[#allocation48_spill] sm:$0xff] %v2354_v6  ;;  %v131_v20 = vmul.f32 1.442695, %v2349_v62  ;;  %v133_v26 = vmul.f32 1.442695, %v2354_v6 }
  0x29   :  { %5465 = vst [vmem:[#allocation39_spill] sm:$0xff] %v2332_v52  ;;  %v2337_v55 = vpop.eup %1662  ;;  %1682 = vpow2.f32 %v113_v45  ;;  %5476 = vst [vmem:[#allocation50_spill] sm:$0xff] %v2359_v12  ;;  %v2374_v30 = vld [vmem:[#allocation2 + $0x100] sm:$0xff]  ;;  %v135_v33 = vmul.f32 1.442695, %v2359_v12  ;;  %v2379_v39 = vld [vmem:[#allocation2 + $0x108] sm:$0xff] }
  0x2a   :  { %5467 = vst [vmem:[#allocation41_spill] sm:$0xff] %v2337_v55  ;;  %v2342_v58 = vpop.eup %1664  ;;  %1684 = vpow2.f32 %v115_v48  ;;  %5478 = vst [vmem:[#allocation52_spill] sm:$0xff] %v2364_v18  ;;  %v137_v42 = vmul.f32 1.442695, %v2364_v18  ;;  %v2384_v48 = vld [vmem:[#allocation2 + $0x110] sm:$0xff]  ;;  %v2399_v12 = vld [vmem:[#allocation2 + $0x128] sm:$0xff] }
  0x2b   :  { %5469 = vst [vmem:[#allocation43_spill] sm:$0xff] %v2342_v58  ;;  %v2347_v61 = vpop.eup %1666  ;;  %1686 = vpow2.f32 %v117_v51  ;;  %5480 = vst [vmem:[#allocation54_spill] sm:$0xff] %v2369_v24  ;;  %v139_v51 = vmul.f32 1.442695, %v2369_v24  ;;  %v2404_v6 = vld [vmem:[#allocation2 + $0x130] sm:$0xff]  ;;  %v2409_v62 = vld [vmem:[#allocation2 + $0x138] sm:$0xff] }
  0x2c   :  { %5471 = vst [vmem:[#allocation45_spill] sm:$0xff] %v2347_v61  ;;  %v2352_v4 = vpop.eup %1668  ;;  %1688 = vpow2.f32 %v119_v54  ;;  %5482 = vst [vmem:[#allocation56_spill] sm:$0xff] %v2374_v30  ;;  %v2414_v59 = vld [vmem:[#allocation2 + $0x140] sm:$0xff]  ;;  %v2419_v56 = vld [vmem:[#allocation2 + $0x148] sm:$0xff]  ;;  %vm5216_vm0 = vcmp.eq.f32.partialorder %v2297_v31, 1.0  ;;  %vm5202_vm1 = vcmp.eq.f32.partialorder %v2302_v34, 1.0 }
  0x2d   :  { %5473 = vst [vmem:[#allocation47_spill] sm:$0xff] %v2352_v4  ;;  %v2357_v10 = vpop.eup %1670  ;;  %1690 = vpow2.f32 %v121_v57  ;;  %5484 = vst [vmem:[#allocation58_spill] sm:$0xff] %v2379_v39  ;;  %v2389_v57 = vld [vmem:[#allocation2 + $0x118] sm:$0xff]  ;;  %v2424_v53 = vld [vmem:[#allocation2 + $0x150] sm:$0xff]  ;;  %vm5196_vm2 = vcmp.eq.f32.partialorder %v2307_v37, 1.0  ;;  %vm5136_vm3 = vcmp.eq.f32.partialorder %v2312_v40, 1.0 }
  0x2e   :  { %5475 = vst [vmem:[#allocation49_spill] sm:$0xff] %v2357_v10  ;;  %v2362_v16 = vpop.eup %1672  ;;  %1692 = vpow2.f32 %v123_v60  ;;  %5486 = vst [vmem:[#allocation60_spill] sm:$0xff] %v2384_v48  ;;  %v141_v60 = vmul.f32 1.442695, %v2374_v30  ;;  %v2429_v50 = vld [vmem:[#allocation2 + $0x158] sm:$0xff]  ;;  %v2434_v47 = vld [vmem:[#allocation2 + $0x160] sm:$0xff] }
  0x2f   :  { %5477 = vst [vmem:[#allocation51_spill] sm:$0xff] %v2362_v16  ;;  %v2367_v22 = vpop.eup %1674  ;;  %1694 = vpow2.f32 %v125_v63  ;;  %5488 = vst [vmem:[#allocation62_spill] sm:$0xff] %v2389_v57  ;;  %v2439_v44 = vld [vmem:[#allocation2 + $0x168] sm:$0xff]  ;;  %v2444_v41 = vld [vmem:[#allocation2 + $0x170] sm:$0xff]  ;;  %vm5141_vm4 = vcmp.eq.f32.partialorder %v2317_v43, 1.0  ;;  %vm5146_vm5 = vcmp.eq.f32.partialorder %v2322_v46, 1.0 }
  0x30   :  { %5479 = vst [vmem:[#allocation53_spill] sm:$0xff] %v2367_v22  ;;  %v2372_v28 = vpop.eup %1676  ;;  %1696 = vpow2.f32 %v127_v8  ;;  %v2394_v8 = vld [vmem:[#allocation2 + $0x120] sm:$0xff]  ;;  %5492 = vst [vmem:[#allocation66_spill] sm:$0xff] %v2399_v12  ;;  %v2449_v38 = vld [vmem:[#allocation2 + $0x178] sm:$0xff]  ;;  %v169_v35 = vmul.f32 1.442695, %v2444_v41 }
  0x31   :  { %5481 = vst [vmem:[#allocation55_spill] sm:$0xff] %v2372_v28  ;;  %v2377_v36 = vpop.eup %1678  ;;  %1698 = vpow2.f32 %v129_v14  ;;  %5490 = vst [vmem:[#allocation64_spill] sm:$0xff] %v2394_v8  ;;  %v143_v14 = vmul.f32 1.442695, %v2379_v39  ;;  %vm5151_vm6 = vcmp.eq.f32.partialorder %v2327_v49, 1.0  ;;  %vm5156_vm7 = vcmp.eq.f32.partialorder %v2332_v52, 1.0 }
  0x32   :  { %5483 = vst [vmem:[#allocation57_spill] sm:$0xff] %v2377_v36  ;;  %v2382_v45 = vpop.eup %1680  ;;  %1700 = vpow2.f32 %v131_v20  ;;  %v145_v20 = vmul.f32 1.442695, %v2384_v48  ;;  %5494 = vst [vmem:[#allocation68_spill] sm:$0xff] %v2404_v6  ;;  %v5530_v2 = vld [vmem:[#allocation41_spill] sm:$0xff]  ;;  %vm5161_vm9 = vcmp.eq.f32.partialorder %v2342_v58, 1.0 }
  0x33   :  { %5485 = vst [vmem:[#allocation59_spill] sm:$0xff] %v2382_v45  ;;  %v2387_v54 = vpop.eup %1682  ;;  %1702 = vpow2.f32 %v133_v26  ;;  %v147_v26 = vmul.f32 1.442695, %v2389_v57  ;;  %5496 = vst [vmem:[#allocation70_spill] sm:$0xff] %v2409_v62  ;;  %vm5159_vm8 = vcmp.eq.f32.partialorder %v5530_v2, 1.0  ;;  %vm5164_vm10 = vcmp.eq.f32.partialorder %v2347_v61, 1.0 }
  0x34   :  { %5487 = vst [vmem:[#allocation61_spill] sm:$0xff] %v2387_v54  ;;  %v2392_v63 = vpop.eup %1684  ;;  %1704 = vpow2.f32 %v135_v33  ;;  %v149_v33 = vmul.f32 1.442695, %v2394_v8  ;;  %5498 = vst [vmem:[#allocation72_spill] sm:$0xff] %v2414_v59  ;;  %s1609_s0 = sld [smem:[#allocation5]] }
  0x35   :  { %5489 = vst [vmem:[#allocation63_spill] sm:$0xff] %v2392_v63  ;;  %v2397_v18 = vpop.eup %1686  ;;  %1706 = vpow2.f32 %v137_v42  ;;  %v151_v42 = vmul.f32 1.442695, %v2399_v12  ;;  %5500 = vst [vmem:[#allocation74_spill] sm:$0xff] %v2419_v56 }
  0x36   :  { %5491 = vst [vmem:[#allocation65_spill] sm:$0xff] %v2397_v18  ;;  %v2402_v24 = vpop.eup %1688  ;;  %1708 = vpow2.f32 %v139_v51  ;;  %v153_v51 = vmul.f32 1.442695, %v2404_v6  ;;  %5501 = vst [vmem:[#allocation75_spill] sm:$0xff] %v2424_v53 }
  0x37   :  { %5493 = vst [vmem:[#allocation67_spill] sm:$0xff] %v2402_v24  ;;  %v2407_v30 = vpop.eup %1690  ;;  %1710 = vpow2.f32 %v141_v60  ;;  %v155_v60 = vmul.f32 1.442695, %v2409_v62  ;;  %5503 = vst [vmem:[#allocation77_spill] sm:$0xff] %v2429_v50 }
  0x38   :  { %5495 = vst [vmem:[#allocation69_spill] sm:$0xff] %v2407_v30  ;;  %v2412_v39 = vpop.eup %1692  ;;  %1712 = vpow2.f32 %v143_v14  ;;  %v157_v14 = vmul.f32 1.442695, %v2414_v59  ;;  %5505 = vst [vmem:[#allocation79_spill] sm:$0xff] %v2434_v47 }
  0x39   :  { %5497 = vst [vmem:[#allocation71_spill] sm:$0xff] %v2412_v39  ;;  %v2417_v48 = vpop.eup %1694  ;;  %1714 = vpow2.f32 %v145_v20  ;;  %v159_v20 = vmul.f32 1.442695, %v2419_v56  ;;  %5507 = vst [vmem:[#allocation81_spill] sm:$0xff] %v2439_v44 }
  0x3a   :  { %5499 = vst [vmem:[#allocation73_spill] sm:$0xff] %v2417_v48  ;;  %v2422_v57 = vpop.eup %1696  ;;  %1716 = vpow2.f32 %v147_v26  ;;  %v161_v26 = vmul.f32 1.442695, %v2424_v53  ;;  %5509 = vst [vmem:[#allocation83_spill] sm:$0xff] %v2444_v41 }
  0x3b   :  { %v2427_v8 = vpop.eup %1698  ;;  %1718 = vpow2.f32 %v149_v33  ;;  %v163_v33 = vmul.f32 1.442695, %v2429_v50  ;;  %5511 = vst [vmem:[#allocation85_spill] sm:$0xff] %v2449_v38  ;;  %v171_v50 = vmul.f32 1.442695, %v2449_v38 }
  0x3c   :  { %5502 = vst [vmem:[#allocation76_spill] sm:$0xff] %v2427_v8  ;;  %v2432_v12 = vpop.eup %1700  ;;  %1720 = vpow2.f32 %v151_v42  ;;  %v165_v42 = vmul.f32 1.442695, %v2434_v47 }
  0x3d   :  { %5504 = vst [vmem:[#allocation78_spill] sm:$0xff] %v2432_v12  ;;  %v2437_v6 = vpop.eup %1702  ;;  %1722 = vpow2.f32 %v153_v51  ;;  %v167_v51 = vmul.f32 1.442695, %v2439_v44 }
  0x3e   :  { %5506 = vst [vmem:[#allocation80_spill] sm:$0xff] %v2437_v6  ;;  %v2442_v62 = vpop.eup %1704  ;;  %1724 = vpow2.f32 %v155_v60 }
  0x3f   :  { %5508 = vst [vmem:[#allocation82_spill] sm:$0xff] %v2442_v62  ;;  %v2447_v59 = vpop.eup %1706  ;;  %1726 = vpow2.f32 %v157_v14 }
  0x40   :  { %5510 = vst [vmem:[#allocation84_spill] sm:$0xff] %v2447_v59  ;;  %v2452_v56 = vpop.eup %1708  ;;  %1728 = vpow2.f32 %v159_v20 }
  0x41   :  { %5512 = vst [vmem:[#allocation86_spill] sm:$0xff] %v2452_v56  ;;  %v2455_v53 = vpop.eup %1710  ;;  %1730 = vpow2.f32 %v161_v26 }
  0x42   :  { %5513 = vst [vmem:[#allocation87_spill] sm:$0xff] %v2455_v53  ;;  %v2458_v60 = vpop.eup %1712  ;;  %1732 = vpow2.f32 %v163_v33 }
  0x43   :  { %5514 = vst [vmem:[#allocation88_spill] sm:$0xff] %v2458_v60  ;;  %v2461_v32 = vpop.eup %1714  ;;  %1734 = vpow2.f32 %v165_v42 }
  0x44   :  { %5515 = vst [vmem:[#allocation89_spill] sm:$0xff] %v2461_v32  ;;  %v2463_v14 = vpop.eup %1716  ;;  %1736 = vpow2.f32 %v167_v51 }
  0x45   :  { %5516 = vst [vmem:[#allocation90_spill] sm:$0xff] %v2463_v14  ;;  %v2465_v47 = vpop.eup %1718  ;;  %1738 = vpow2.f32 %v169_v35 }
  0x46   :  { %5517 = vst [vmem:[#allocation91_spill] sm:$0xff] %v2465_v47  ;;  %v2467_v20 = vpop.eup %1720  ;;  %1740 = vpow2.f32 %v171_v50 }
  0x47   :  { %5518 = vst [vmem:[#allocation92_spill] sm:$0xff] %v2467_v20  ;;  %v2469_v26 = vpop.eup %1722  ;;  %1742 = vlog2.f32 %v2297_v31 }
  0x48   :  { %5519 = vst [vmem:[#allocation93_spill] sm:$0xff] %v2469_v26  ;;  %v2472_v41 = vpop.eup %1724  ;;  %1744 = vlog2.f32 %v2302_v34 }
  0x49   :  { %5520 = vst [vmem:[#allocation94_spill] sm:$0xff] %v2472_v41  ;;  %v2475_v33 = vpop.eup %1726  ;;  %1746 = vlog2.f32 %v2307_v37 }
  0x4a   :  { %5521 = vst [vmem:[#allocation95_spill] sm:$0xff] %v2475_v33  ;;  %v2478_v42 = vpop.eup %1728  ;;  %1748 = vlog2.f32 %v2312_v40 }
  0x4b   :  { %5522 = vst [vmem:[#allocation96_spill] sm:$0xff] %v2478_v42  ;;  %v2481_v35 = vpop.eup %1730  ;;  %1750 = vlog2.f32 %v2317_v43 }
  0x4c   :  { %5523 = vst [vmem:[#allocation97_spill] sm:$0xff] %v2481_v35  ;;  %v2484_v50 = vpop.eup %1732  ;;  %1752 = vlog2.f32 %v2322_v46 }
  0x4d   :  { %5524 = vst [vmem:[#allocation98_spill] sm:$0xff] %v2484_v50  ;;  %v2487_v51 = vpop.eup %1734  ;;  %1754 = vlog2.f32 %v2327_v49 }
  0x4e   :  { %5525 = vst [vmem:[#allocation99_spill] sm:$0xff] %v2487_v51  ;;  %v2490_v38 = vpop.eup %1736  ;;  %1756 = vlog2.f32 %v2332_v52 }
  0x4f   :  { %5526 = vst [vmem:[#allocation100_spill] sm:$0xff] %v2490_v38  ;;  %v2493_v44 = vpop.eup %1738  ;;  %1758 = vlog2.f32 %v2337_v55 }
  0x50   :  { %5527 = vst [vmem:[#allocation101_spill] sm:$0xff] %v2493_v44  ;;  %v2499_v23 = vpop.eup %1740  ;;  %1760 = vlog2.f32 %v2342_v58 }
  0x51   :  { %5528 = vst [vmem:[#allocation102_spill] sm:$0xff] %v2499_v23  ;;  %v2505_v15 = vpop.eup %1742  ;;  %1762 = vlog2.f32 %v2347_v61 }
  0x52   :  { %v2511_v13 = vpop.eup %1744  ;;  %1764 = vlog2.f32 %v2352_v4  ;;  %v222_v27 = vmul.f32 0.6931472, %v2505_v15 }
  0x53   :  { %v2517_v23 = vpop.eup %1746  ;;  %1766 = vlog2.f32 %v2357_v10  ;;  %v224_v17 = vmul.f32 0.6931472, %v2511_v13 }
  0x54   :  { %v2523_v55 = vpop.eup %1748  ;;  %1768 = vlog2.f32 %v2362_v16  ;;  %v226_v15 = vmul.f32 0.6931472, %v2517_v23  ;;  %v5537_v23 = vld [vmem:[#allocation47_spill] sm:$0xff]  ;;  %v2643_v44 = vsel %vm5216_vm0, 1.0, %v222_v27 }
  0x55   :  { %v2529_v4 = vpop.eup %1750  ;;  %1770 = vlog2.f32 %v2367_v22  ;;  %v228_v13 = vmul.f32 0.6931472, %v2523_v55  ;;  %vm5167_vm11 = vcmp.eq.f32.partialorder %v5537_v23, 1.0  ;;  %v2653_v38 = vsel %vm5202_vm1, 1.0, %v224_v17  ;;  %v5541_v27 = vld [vmem:[#allocation51_spill] sm:$0xff]  ;;  %v5543_v17 = vld [vmem:[#allocation53_spill] sm:$0xff] }
  0x56   :  { %v2535_v10 = vpop.eup %1752  ;;  %1772 = vlog2.f32 %v2372_v28  ;;  %v230_v9 = vmul.f32 0.6931472, %v2529_v4  ;;  %vm5173_vm13 = vcmp.eq.f32.partialorder %v5541_v27, 1.0  ;;  %v2663_v29 = vsel %vm5196_vm2, 1.0, %v226_v15  ;;  %v5545_v15 = vld [vmem:[#allocation55_spill] sm:$0xff] }
  0x57   :  { %v2541_v16 = vpop.eup %1754  ;;  %1774 = vlog2.f32 %v2377_v36  ;;  %v232_v21 = vmul.f32 0.6931472, %v2535_v10  ;;  %vm5175_vm14 = vcmp.eq.f32.partialorder %v5543_v17, 1.0  ;;  %v2673_v4 = vsel %vm5136_vm3, 1.0, %v228_v13  ;;  %v5547_v13 = vld [vmem:[#allocation57_spill] sm:$0xff] }
  0x58   :  { %v2547_v22 = vpop.eup %1756  ;;  %1776 = vlog2.f32 %v2382_v45  ;;  %v234_v55 = vmul.f32 0.6931472, %v2541_v16  ;;  %vm5177_vm15 = vcmp.eq.f32.partialorder %v5545_v15, 1.0  ;;  %v2683_v10 = vsel %vm5141_vm4, 1.0, %v230_v9  ;;  %v5549_v9 = vld [vmem:[#allocation59_spill] sm:$0xff] }
  0x59   :  { %v2553_v28 = vpop.eup %1758  ;;  %1778 = vlog2.f32 %v2387_v54  ;;  %v236_v11 = vmul.f32 0.6931472, %v2547_v22  ;;  %vm5179_vm3 = vcmp.eq.f32.partialorder %v5547_v13, 1.0  ;;  %v2693_v16 = vsel %vm5146_vm5, 1.0, %v232_v21  ;;  %v5551_v21 = vld [vmem:[#allocation61_spill] sm:$0xff] }
  0x5a   :  { %v2559_v36 = vpop.eup %1760  ;;  %1780 = vlog2.f32 %v2392_v63  ;;  %v238_v31 = vmul.f32 0.6931472, %v2553_v28  ;;  %vm5181_vm4 = vcmp.eq.f32.partialorder %v5549_v9, 1.0  ;;  %v2703_v22 = vsel %vm5151_vm6, 1.0, %v234_v55  ;;  %v5553_v55 = vld [vmem:[#allocation63_spill] sm:$0xff] }
  0x5b   :  { %v2566_v45 = vpop.eup %1762  ;;  %1782 = vlog2.f32 %v2397_v18  ;;  %v240_v34 = vmul.f32 0.6931472, %v2559_v36  ;;  %vm5183_vm5 = vcmp.eq.f32.partialorder %v5551_v21, 1.0  ;;  %v2713_v28 = vsel %vm5156_vm7, 1.0, %v236_v11  ;;  %v5576_v21 = vld [vmem:[#allocation86_spill] sm:$0xff] }
  0x5c   :  { %v2573_v54 = vpop.eup %1764  ;;  %1784 = vlog2.f32 %v2402_v24  ;;  %v242_v37 = vmul.f32 0.6931472, %v2566_v45  ;;  %vm5192_vm6 = vcmp.eq.f32.partialorder %v5553_v55, 1.0  ;;  %v2723_v36 = vsel %vm5159_vm8, 1.0, %v238_v31 }
  0x5d   :  { %v2580_v63 = vpop.eup %1766  ;;  %1786 = vlog2.f32 %v2407_v30  ;;  %v244_v40 = vmul.f32 0.6931472, %v2573_v54  ;;  %vm5185_vm7 = vcmp.eq.f32.partialorder %v2397_v18, 1.0  ;;  %v2733_v46 = vsel %vm5161_vm9, 1.0, %v240_v34 }
  0x5e   :  { %v2587_v0 = vpop.eup %1768  ;;  %1788 = vlog2.f32 %v2412_v39  ;;  %v246_v43 = vmul.f32 0.6931472, %v2580_v63  ;;  %vm5188_vm8 = vcmp.eq.f32.partialorder %v2402_v24, 1.0  ;;  %v2743_v49 = vsel %vm5164_vm10, 1.0, %v242_v37  ;;  %v5581_v24 = vld [vmem:[#allocation88_spill] sm:$0xff] }
  0x5f   :  { %v2594_v1 = vpop.eup %1770  ;;  %1790 = vlog2.f32 %v2417_v48  ;;  %v248_v11 = vmul.f32 0.6931472, %v2587_v0  ;;  %vm5191_vm9 = vcmp.eq.f32.partialorder %v2407_v30, 1.0  ;;  %v2753_v45 = vsel %vm5167_vm11, 1.0, %v244_v40  ;;  %v5561_v0 = vld [vmem:[#allocation99_spill] sm:$0xff]  ;;  %v5583_v30 = vld [vmem:[#allocation89_spill] sm:$0xff] }
  0x60   :  { %v2601_v3 = vpop.eup %1772  ;;  %1792 = vlog2.f32 %v2422_v57  ;;  %v250_v31 = vmul.f32 0.6931472, %v2594_v1  ;;  %vm5195_vm10 = vcmp.eq.f32.partialorder %v2412_v39, 1.0  ;;  %vm5201_vm11 = vcmp.eq.f32.partialorder %v2417_v48, 1.0 }
  0x61   :  { %v2608_v5 = vpop.eup %1774  ;;  %1794 = vlog2.f32 %v2427_v8  ;;  %v252_v34 = vmul.f32 0.6931472, %v2601_v3  ;;  %v2773_v63 = vsel %vm5173_vm13, 1.0, %v248_v11  ;;  %v5564_v11 = vld [vmem:[#allocation76_spill] sm:$0xff]  ;;  %vm212_vm1 = vcmp.eq.f32.partialorder %v2472_v41, 1.0 }
  0x62   :  { %v2615_v7 = vpop.eup %1776  ;;  %1796 = vlog2.f32 %v2432_v12  ;;  %v254_v37 = vmul.f32 0.6931472, %v2608_v5  ;;  %5559 = vst [vmem:[#allocation103_spill] sm:$0xff] %v2773_v63  ;;  %v2783_v3 = vsel %vm5175_vm14, 1.0, %v250_v31  ;;  %vm5204_vm13 = vcmp.eq.f32.partialorder %v5564_v11, 1.0  ;;  %v5565_v5 = vld [vmem:[#allocation100_spill] sm:$0xff] }
  0x63   :  { %v2622_v51 = vpop.eup %1778  ;;  %1798 = vlog2.f32 %v2437_v6  ;;  %v256_v40 = vmul.f32 0.6931472, %v2615_v7  ;;  %5562 = vst [vmem:[#allocation104_spill] sm:$0xff] %v2783_v3  ;;  %v2793_v27 = vsel %vm5177_vm15, 1.0, %v252_v34  ;;  %v5567_v31 = vld [vmem:[#allocation78_spill] sm:$0xff]  ;;  %v5568_v7 = vld [vmem:[#allocation101_spill] sm:$0xff] }
  0x64   :  { %v2629_v8 = vpop.eup %1780  ;;  %1800 = vlog2.f32 %v2442_v62  ;;  %v5539_v62 = vld [vmem:[#allocation49_spill] sm:$0xff]  ;;  %vm5207_vm14 = vcmp.eq.f32.partialorder %v5567_v31, 1.0  ;;  %v2803_v17 = vsel %vm5179_vm3, 1.0, %v254_v37  ;;  %vm5213_vm15 = vcmp.eq.f32.partialorder %v2437_v6, 1.0  ;;  %v5573_v37 = vld [vmem:[#allocation82_spill] sm:$0xff] }
  0x65   :  { %v2636_v12 = vpop.eup %1782  ;;  %1802 = vlog2.f32 %v2447_v59  ;;  %vm5169_vm12 = vcmp.eq.f32.partialorder %v5539_v62, 1.0  ;;  %v260_v1 = vmul.f32 0.6931472, %v2629_v8  ;;  %5569 = vst [vmem:[#allocation105_spill] sm:$0xff] %v2803_v17  ;;  %vm5208_vm3 = vcmp.eq.f32.partialorder %v5573_v37, 1.0  ;;  %v5599_v37 = vld [vmem:[#allocation99_spill] sm:$0xff] }
  0x66   :  { %v2646_v25 = vpop.eup %1784  ;;  %1804 = vlog2.f32 %v2452_v56  ;;  %v2763_v54 = vsel %vm5169_vm12, 1.0, %v246_v43  ;;  %vm5203_vm12 = vcmp.eq.f32.partialorder %v2422_v57, 1.0  ;;  %v258_v43 = vmul.f32 0.6931472, %v2622_v51 }
  0x67   :  { %v2656_v19 = vpop.eup %1786  ;;  %1806 = vlog2.f32 %v2455_v53  ;;  %v262_v62 = vmul.f32 0.6931472, %v2636_v12  ;;  %v264_v34 = vmul.f32 0.6931472, %v2646_v25  ;;  %v2813_v51 = vsel %vm5181_vm4, 1.0, %v256_v40 }
  0x68   :  { %v2666_v56 = vpop.eup %1788  ;;  %1808 = vlog2.f32 %v2458_v60  ;;  %v2822_v8 = vsel %vm5183_vm5, 1.0, %v258_v43  ;;  %vm5212_vm4 = vcmp.eq.f32.partialorder %v2447_v59, 1.0  ;;  %v2832_v15 = vsel %vm5192_vm6, 1.0, %v260_v1 }
  0x69   :  { %v2676_v53 = vpop.eup %1790  ;;  %1810 = vlog2.f32 %v2461_v32  ;;  %v268_v40 = vmul.f32 0.6931472, %v2666_v56  ;;  %vm5215_vm5 = vcmp.eq.f32.partialorder %v5576_v21, 1.0  ;;  %v2842_v13 = vsel %vm5185_vm7, 1.0, %v262_v62  ;;  %v5579_v62 = vld [vmem:[#allocation87_spill] sm:$0xff] }
  0x6a   :  { %v2686_v60 = vpop.eup %1792  ;;  %1812 = vlog2.f32 %v2463_v14  ;;  %v2851_v12 = vsel %vm5188_vm8, 1.0, %v264_v34  ;;  %vm205_vm7 = vcmp.eq.f32.partialorder %v5579_v62, 1.0  ;;  %vm206_vm8 = vcmp.eq.f32.partialorder %v5581_v24, 1.0  ;;  %v5597_v59 = vld [vmem:[#allocation104_spill] sm:$0xff] }
  0x6b   :  { %v2696_v32 = vpop.eup %1794  ;;  %1814 = vlog2.f32 %v2465_v47 }
  0x6c   :  { %v2706_v14 = vpop.eup %1796  ;;  %1816 = vlog2.f32 %v2467_v20 }
  0x6d   :  { %v2716_v47 = vpop.eup %1798  ;;  %1818 = vlog2.f32 %v2469_v26 }
  0x6e   :  { %v2726_v20 = vpop.eup %1800  ;;  %1820 = vlog2.f32 %v2472_v41  ;;  %v278_v56 = vmul.f32 0.6931472, %v2716_v47  ;;  %v5596_v47 = vld [vmem:[#allocation98_spill] sm:$0xff] }
  0x6f   :  { %v2736_v52 = vpop.eup %1802  ;;  %1822 = vlog2.f32 %v2475_v33 }
  0x70   :  { %v2746_v2 = vpop.eup %1804  ;;  %1824 = vlog2.f32 %v2478_v42 }
  0x71   :  { %v2756_v58 = vpop.eup %1806  ;;  %1826 = vlog2.f32 %v2481_v35 }
  0x72   :  { %v2766_v61 = vpop.eup %1808  ;;  %1828 = vlog2.f32 %v2484_v50 }
  0x73   :  { %v2776_v23 = vpop.eup %1810  ;;  %1830 = vlog2.f32 %v5561_v0  ;;  %v5571_v0 = vld [vmem:[#allocation102_spill] sm:$0xff] }
  0x74   :  { %v2786_v50 = vpop.eup %1812  ;;  %1832 = vlog2.f32 %v5565_v5  ;;  %v266_v5 = vmul.f32 0.6931472, %v2656_v19  ;;  %v5587_v19 = vld [vmem:[#allocation92_spill] sm:$0xff]  ;;  %vm5243_vm0 = vcmp.eq.f32.partialorder %v5571_v0, 1.0 }
  0x75   :  { %v2796_v63 = vpop.eup %1814  ;;  %1834 = vlog2.f32 %v5568_v7  ;;  %vm210_vm2 = vcmp.eq.f32.partialorder %v5587_v19, 1.0 }
  0x76   :  { %v2806_v3 = vpop.eup %1816  ;;  %1836 = vlog2.f32 %v5571_v0  ;;  %v2861_v25 = vsel %vm5191_vm9, 1.0, %v266_v5  ;;  %vm207_vm9 = vcmp.eq.f32.partialorder %v5583_v30, 1.0 }
  0x77   :  { %v2816_v7 = vpop.eup %1818  ;;  %1838 = vrcp.f32 %v2643_v44  ;;  %v270_v44 = vmul.f32 0.6931472, %v2676_v53  ;;  %v2871_v53 = vsel %vm5195_vm10, 1.0, %v268_v40 }
  0x78   :  { %v2826_v17 = vpop.eup %1820  ;;  %1840 = vrcp.f32 %v2653_v38  ;;  %v272_v38 = vmul.f32 0.6931472, %v2686_v60 }
  0x79   :  { %v2836_v43 = vpop.eup %1822  ;;  %1842 = vrcp.f32 %v2663_v29  ;;  %v274_v29 = vmul.f32 0.6931472, %v2696_v32  ;;  %v2882_v60 = vsel %vm5201_vm11, 1.0, %v270_v44  ;;  %v280_v32 = vmul.f32 0.6931472, %v2726_v20 }
  0x7a   :  { %v2846_v1 = vpop.eup %1824  ;;  %1844 = vrcp.f32 %v2673_v4  ;;  %v276_v4 = vmul.f32 0.6931472, %v2706_v14  ;;  %v2893_v18 = vsel %vm5203_vm12, 1.0, %v272_v38  ;;  %vm211_vm11 = vcmp.eq.f32.partialorder %v2469_v26, 1.0 }
  0x7b   :  { %v2855_v55 = vpop.eup %1826  ;;  %1846 = vrcp.f32 %v2683_v10  ;;  %v5584_v10 = vld [vmem:[#allocation90_spill] sm:$0xff]  ;;  %v2904_v40 = vsel %vm5204_vm13, 1.0, %v274_v29  ;;  %vm213_vm12 = vcmp.eq.f32.partialorder %v2475_v33, 1.0  ;;  %vm214_vm13 = vcmp.eq.f32.partialorder %v2478_v42, 1.0  ;;  %v5613_v33 = vld [vmem:[#allocation29_spill] sm:$0xff] }
  0x7c   :  { %v2865_v34 = vpop.eup %1828  ;;  %1848 = vrcp.f32 %v2693_v16  ;;  %vm208_vm6 = vcmp.eq.f32.partialorder %v5584_v10, 1.0  ;;  %v5586_v16 = vld [vmem:[#allocation91_spill] sm:$0xff]  ;;  %v2914_v44 = vsel %vm5207_vm14, 1.0, %v276_v4  ;;  %vm215_vm14 = vcmp.eq.f32.partialorder %v2481_v35, 1.0 }
  0x7d   :  { %v2875_v5 = vpop.eup %1830  ;;  %1850 = vrcp.f32 %v2703_v22  ;;  %vm209_vm10 = vcmp.eq.f32.partialorder %v5586_v16, 1.0  ;;  %v282_v22 = vmul.f32 0.6931472, %v2736_v52  ;;  %v2930_v4 = vsel %vm5208_vm3, 1.0, %v280_v32 }
  0x7e   :  { %v2886_v39 = vpop.eup %1832  ;;  %1852 = vrcp.f32 %v2713_v28  ;;  %v284_v28 = vmul.f32 0.6931472, %v2746_v2  ;;  %v290_v38 = vmul.f32 0.6931472, %v2776_v23  ;;  %v292_v32 = vmul.f32 0.6931472, %v2786_v50 }
  0x7f   :  { %v2897_v48 = vpop.eup %1834  ;;  %1854 = vrcp.f32 %v2723_v36  ;;  %v2921_v36 = vsel %vm5213_vm15, 1.0, %v278_v56  ;;  %v2937_v20 = vsel %vm5212_vm4, 1.0, %v282_v22  ;;  %v5595_v56 = vld [vmem:[#allocation103_spill] sm:$0xff]  ;;  %vm216_vm3 = vcmp.eq.f32.partialorder %v5596_v47, 1.0  ;;  %v5600_v50 = vld [vmem:[#allocation100_spill] sm:$0xff]  ;;  %v3015_v2 = vld [vmem:[#allocation2 + $0x8] sm:$0xff] }
  0x80   :  { %v2908_v14 = vpop.eup %1836  ;;  %1856 = vrcp.f32 %v2733_v46  ;;  %v286_v46 = vmul.f32 0.6931472, %v2756_v58  ;;  %v294_v22 = vmul.f32 0.6931472, %v2796_v63  ;;  %vm5325_vm4 = vcmp.eq.f32.partialorder %v5599_v37, 1.0  ;;  %5605 = vst [vmem:[#allocation89_spill] sm:$0xff] %v3015_v2 }
  0x81   :  { %v1839_v29 = vpop.eup %1838  ;;  %1858 = vrcp.f32 %v2743_v49  ;;  %v288_v49 = vmul.f32 0.6931472, %v2766_v61  ;;  %vm5239_vm15 = vcmp.eq.f32.partialorder %v5600_v50, 1.0  ;;  %v2980_v6 = vsel %vm208_vm6, 1.0, %v292_v32  ;;  %v5672_v37 = vld [vmem:[#allocation49_spill] sm:$0xff] }
  0x82   :  { %v1841_v31 = vpop.eup %1840  ;;  %1860 = vrcp.f32 %v2753_v45  ;;  %v2945_v45 = vsel %vm5215_vm5, 1.0, %v284_v28  ;;  %v298_v28 = vmul.f32 0.6931472, %v2816_v7  ;;  %v2959_v21 = vsel %vm205_vm7, 1.0, %v286_v46  ;;  %v5602_v7 = vld [vmem:[#allocation105_spill] sm:$0xff] }
  0x83   :  { %v1843_v52 = vpop.eup %1842  ;;  %1862 = vrcp.f32 %v2763_v54  ;;  %v296_v54 = vmul.f32 0.6931472, %v2806_v3  ;;  %v5601_v3 = vld [vmem:[#allocation101_spill] sm:$0xff]  ;;  %v2967_v11 = vsel %vm206_vm8, 1.0, %v288_v49  ;;  %v304_v46 = vmul.f32 0.6931472, %v2846_v1 }
  0x84   :  { %v1845_v58 = vpop.eup %1844  ;;  %1864 = vrcp.f32 %v5595_v56  ;;  %v300_v56 = vmul.f32 0.6931472, %v2826_v17  ;;  %vm5245_vm5 = vcmp.eq.f32.partialorder %v5601_v3, 1.0  ;;  %v306_v49 = vmul.f32 0.6931472, %v2855_v55  ;;  %v3005_v55 = vld [vmem:[#allocation2] sm:$0xff] }
  0x85   :  { %v1847_v61 = vpop.eup %1846  ;;  %1866 = vrcp.f32 %v5597_v59  ;;  %v302_v59 = vmul.f32 0.6931472, %v2836_v43  ;;  %v2992_v1 = vsel %vm210_vm2, 1.0, %v296_v54  ;;  %v2999_v32 = vsel %vm211_vm11, 1.0, %v298_v28  ;;  %5604 = vst [vmem:[#allocation88_spill] sm:$0xff] %v3005_v55  ;;  %v3018_v17 = vld [vmem:[#allocation2 + $0x10] sm:$0xff] }
  0x86   :  { %v1849_v23 = vpop.eup %1848  ;;  %1868 = vrcp.f32 %v2793_v27  ;;  %v2976_v27 = vsel %vm207_vm9, 1.0, %v290_v38  ;;  %v416_v28 = vmul.f32 %v3015_v2, %v1841_v31  ;;  %5606 = vst [vmem:[#allocation90_spill] sm:$0xff] %v3018_v17  ;;  %v310_v2 = vmul.f32 0.6931472, %v2875_v5  ;;  %v3043_v5 = vld [vmem:[#allocation2 + $0x20] sm:$0xff] }
  0x87   :  { %v1851_v63 = vpop.eup %1850  ;;  %1870 = vrcp.f32 %v5602_v7  ;;  %v2988_v7 = vsel %vm209_vm10, 1.0, %v294_v22  ;;  %v414_v22 = vmul.f32 %v3005_v55, %v1839_v29  ;;  %v308_v29 = vmul.f32 0.6931472, %v2865_v34  ;;  %v3027_v55 = vld [vmem:[#allocation2 + $0x18] sm:$0xff]  ;;  %5610 = vst [vmem:[#allocation103_spill] sm:$0xff] %v3043_v5 }
  0x88   :  { %v2971_v62 = vpop.eup %1852  ;;  %1872 = vrcp.f32 %v2813_v51  ;;  %v3003_v51 = vsel %vm212_vm1, 1.0, %v300_v56  ;;  %v418_v56 = vmul.f32 %v3018_v17, %v1843_v52  ;;  %5607 = vst [vmem:[#allocation91_spill] sm:$0xff] %v3027_v55  ;;  %v312_v52 = vmul.f32 0.6931472, %v2886_v39 }
  0x89   :  { %v2983_v43 = vpop.eup %1854  ;;  %1874 = vrcp.f32 %v2822_v8  ;;  %v3013_v8 = vsel %vm213_vm12, 1.0, %v302_v59  ;;  %v420_v59 = vmul.f32 %v3027_v55, %v1845_v58  ;;  %v316_v17 = vmul.f32 0.6931472, %v2908_v14  ;;  %v5608_v58 = vld [vmem:[#allocation25_spill] sm:$0xff] }
  0x8a   :  { %v2995_v38 = vpop.eup %1856  ;;  %1876 = vrcp.f32 %v2832_v15  ;;  %v3025_v15 = vsel %vm214_vm13, 1.0, %v304_v46  ;;  %v314_v46 = vmul.f32 0.6931472, %v2897_v48  ;;  %v422_v39 = vmul.f32 %v3043_v5, %v1847_v61  ;;  %v3055_v14 = vld [vmem:[#allocation2 + $0x28] sm:$0xff]  ;;  %v5616_v61 = vld [vmem:[#allocation31_spill] sm:$0xff] }
  0x8b   :  { %v3009_v54 = vpop.eup %1858  ;;  %1878 = vrcp.f32 %v2842_v13  ;;  %v3035_v13 = vsel %vm215_vm14, 1.0, %v306_v49  ;;  %v5611_v49 = vld [vmem:[#allocation27_spill] sm:$0xff]  ;;  %v5614_v26 = vsub.f32 1.0, %v5613_v33  ;;  %5615 = vst [vmem:[#allocation104_spill] sm:$0xff] %v3055_v14 }
  0x8c   :  { %v1861_v41 = vpop.eup %1860  ;;  %1880 = vrcp.f32 %v2851_v12  ;;  %v5609_v12 = vsub.f32 1.0, %v5608_v58  ;;  %v5612_v35 = vsub.f32 1.0, %v5611_v49 }
  0x8d   :  { %v1863_v31 = vpop.eup %1862  ;;  %1882 = vrcp.f32 %v2861_v25  ;;  %v511_v48 = vmul.f32 %v418_v56, %v5614_v26  ;;  %v3067_v26 = vsel %vm5239_vm15, 1.0, %v312_v52  ;;  %vm5621_vm15 = vcmp.eq.f32.partialorder %v5608_v58, 1.0 }
  0x8e   :  { %v1865_v34 = vpop.eup %1864  ;;  %1884 = vrcp.f32 %v2871_v53  ;;  %v509_v55 = vmul.f32 %v414_v22, %v5609_v12  ;;  %v510_v25 = vmul.f32 %v416_v28, %v5612_v35  ;;  %v3053_v53 = vsel %vm216_vm3, 1.0, %v308_v29  ;;  %v3069_v28 = vld [vmem:[#allocation2 + $0x30] sm:$0xff] }
  0x8f   :  { %v1867_v42 = vpop.eup %1866  ;;  %1886 = vrcp.f32 %v2882_v60  ;;  %v424_v22 = vmul.f32 %v3055_v14, %v1849_v23  ;;  %v5617_v12 = vsub.f32 1.0, %v5616_v61  ;;  %v3063_v35 = vsel %vm5325_vm4, 1.0, %v310_v2  ;;  %5618 = vst [vmem:[#allocation105_spill] sm:$0xff] %v3069_v28  ;;  %v5619_v2 = vld [vmem:[#allocation8_spill] sm:$0xff] }
  0x90   :  { %v1869_v19 = vpop.eup %1868  ;;  %1888 = vrcp.f32 %v2893_v18  ;;  %v426_v56 = vmul.f32 %v3069_v28, %v1851_v63  ;;  %v3075_v18 = vsel %vm5245_vm5, 1.0, %v314_v46  ;;  %v3079_v29 = vsel %vm5243_vm0, 1.0, %v316_v17  ;;  %v5625_v28 = vld [vmem:[#allocation9_spill] sm:$0xff] }
  0x91   :  { %v512_v60 = vmul.f32 %v420_v59, %v5617_v12  ;;  %v1871_v5 = vpop.eup %1870  ;;  %1890 = vrcp.f32 %v2904_v40  ;;  %v5620_v59 = vsub.f32 0.0, %v5619_v2  ;;  %v5623_v40 = vld [vmem:[#allocation33_spill] sm:$0xff]  ;;  %v5626_v14 = vsub.f32 0.0, %v5625_v28 }
  0x92   :  { %v1873_v23 = vpop.eup %1872  ;;  %1892 = vrcp.f32 %v2914_v44  ;;  %v5624_v12 = vsub.f32 1.0, %v5623_v40  ;;  %vm5627_vm0 = vcmp.eq.f32.partialorder %v5611_v49, 1.0  ;;  %v5629_v44 = vld [vmem:[#allocation10_spill] sm:$0xff]  ;;  %vm5631_vm5 = vcmp.eq.f32.partialorder %v5613_v33, 1.0 }
  0x93   :  { %v3086_v52 = vsel %vm5621_vm15, %v5620_v59, %v509_v55  ;;  %v3088_v63 = vpop.eup %1874  ;;  %1894 = vrcp.f32 %v2921_v36  ;;  %v3097_v17 = vsel %vm5627_vm0, %v5626_v14, %v510_v25  ;;  %v5630_v0 = vsub.f32 0.0, %v5629_v44  ;;  %v3107_v59 = vld [vmem:[#allocation2 + $0x38] sm:$0xff] }
  0x94   :  { %5622 = vst [vmem:[#allocation25_spill] sm:$0xff] %v3086_v52  ;;  %v513_v46 = vmul.f32 %v422_v39, %v5624_v12  ;;  %5628 = vst [vmem:[#allocation27_spill] sm:$0xff] %v3097_v17  ;;  %v3105_v55 = vpop.eup %1876  ;;  %v428_v36 = vmul.f32 %v3107_v59, %v2971_v62  ;;  %1896 = vrcp.f32 %v2930_v4  ;;  %v5634_v39 = vld [vmem:[#allocation35_spill] sm:$0xff]  ;;  %vm5638_vm0 = vcmp.eq.f32.partialorder %v5616_v61, 1.0  ;;  %v3126_v17 = vld [vmem:[#allocation2 + $0x48] sm:$0xff] }
  0x95   :  { %v3103_v2 = vsel %vm5631_vm5, %v5630_v0, %v511_v48  ;;  %5633 = vst [vmem:[#allocation31_spill] sm:$0xff] %v3107_v59  ;;  %v5635_v28 = vsub.f32 1.0, %v5634_v39  ;;  %v5636_v25 = vld [vmem:[#allocation11_spill] sm:$0xff]  ;;  %v3120_v0 = vpop.eup %1878  ;;  %v3122_v48 = vld [vmem:[#allocation2 + $0x40] sm:$0xff]  ;;  %5641 = vst [vmem:[#allocation10_spill] sm:$0xff] %v3126_v17  ;;  %v432_v62 = vmul.f32 %v3126_v17, %v2995_v38  ;;  %1898 = vrcp.f32 %v2937_v20 }
  0x96   :  { %5632 = vst [vmem:[#allocation29_spill] sm:$0xff] %v3103_v2  ;;  %v5637_v14 = vsub.f32 0.0, %v5636_v25  ;;  %5640 = vst [vmem:[#allocation9_spill] sm:$0xff] %v3122_v48  ;;  %v430_v2 = vmul.f32 %v3122_v48, %v2983_v43  ;;  %v5642_v4 = vld [vmem:[#allocation37_spill] sm:$0xff]  ;;  %v3133_v25 = vpop.eup %1880  ;;  %v3139_v59 = vld [vmem:[#allocation2 + $0x58] sm:$0xff]  ;;  %1900 = vrcp.f32 %v2945_v45  ;;  %vm5651_vm5 = vcmp.eq.f32.partialorder %v5623_v40, 1.0 }
  0x97   :  { %v514_v12 = vmul.f32 %v424_v22, %v5635_v28  ;;  %v5643_v22 = vsub.f32 1.0, %v5642_v4  ;;  %5645 = vst [vmem:[#allocation106_spill] sm:$0xff] %v3139_v59  ;;  %v436_v43 = vmul.f32 %v3139_v59, %v1861_v41  ;;  %v3142_v48 = vld [vmem:[#allocation2 + $0x60] sm:$0xff]  ;;  %v3146_v20 = vpop.eup %1882  ;;  %v3151_v17 = vld [vmem:[#allocation2 + $0x70] sm:$0xff]  ;;  %1902 = vrcp.f32 %v2959_v21  ;;  %v3161_v45 = vld [vmem:[#allocation2 + $0x78] sm:$0xff] }
  0x98   :  { %v3118_v44 = vsel %vm5638_vm0, %v5637_v14, %v512_v60  ;;  %v3135_v60 = vld [vmem:[#allocation2 + $0x50] sm:$0xff]  ;;  %5646 = vst [vmem:[#allocation107_spill] sm:$0xff] %v3142_v48  ;;  %v438_v38 = vmul.f32 %v3142_v48, %v1863_v31  ;;  %5648 = vst [vmem:[#allocation109_spill] sm:$0xff] %v3151_v17  ;;  %v1885_v31 = vpop.eup %1884  ;;  %v444_v48 = vmul.f32 %v3161_v45, %v1869_v19  ;;  %1904 = vrcp.f32 %v2967_v11  ;;  %v5656_v52 = vld [vmem:[#allocation13_spill] sm:$0xff] }
  0x99   :  { %5639 = vst [vmem:[#allocation8_spill] sm:$0xff] %v3118_v44  ;;  %v515_v28 = vmul.f32 %v426_v56, %v5643_v22  ;;  %5644 = vst [vmem:[#allocation11_spill] sm:$0xff] %v3135_v60  ;;  %v434_v14 = vmul.f32 %v3135_v60, %v3009_v54  ;;  %v3148_v56 = vld [vmem:[#allocation2 + $0x68] sm:$0xff]  ;;  %v442_v54 = vmul.f32 %v3151_v17, %v1867_v42  ;;  %v5649_v60 = vld [vmem:[#allocation12_spill] sm:$0xff]  ;;  %v5657_v42 = vsub.f32 0.0, %v5656_v52 }
  0x9a   :  { %5647 = vst [vmem:[#allocation108_spill] sm:$0xff] %v3148_v56  ;;  %v440_v22 = vmul.f32 %v3148_v56, %v1865_v34  ;;  %v5650_v41 = vsub.f32 0.0, %v5649_v60  ;;  %5653 = vst [vmem:[#allocation110_spill] sm:$0xff] %v3161_v45  ;;  %v5654_v34 = vld [vmem:[#allocation39_spill] sm:$0xff]  ;;  %vm5658_vm15 = vcmp.eq.f32.partialorder %v5634_v39, 1.0  ;;  %v1887_v60 = vpop.eup %1886  ;;  %1906 = vrcp.f32 %v2976_v27  ;;  %v5664_v45 = vld [vmem:[#allocation14_spill] sm:$0xff] }
  0x9b   :  { %v5655_v56 = vsub.f32 1.0, %v5654_v34  ;;  %v3171_v21 = vsel %vm5658_vm15, %v5657_v42, %v514_v12  ;;  %v5665_v11 = vsub.f32 0.0, %v5664_v45  ;;  %vm5666_vm0 = vcmp.eq.f32.partialorder %v5642_v4, 1.0  ;;  %v1889_v52 = vpop.eup %1888  ;;  %v5668_v12 = vld [vmem:[#allocation45_spill] sm:$0xff]  ;;  %v5682_v39 = vld [vmem:[#allocation15_spill] sm:$0xff] }
  0x9c   :  { %v3159_v59 = vsel %vm5651_vm5, %v5650_v41, %v513_v46  ;;  %5659 = vst [vmem:[#allocation39_spill] sm:$0xff] %v3171_v21  ;;  %v5660_v46 = vld [vmem:[#allocation41_spill] sm:$0xff]  ;;  %1908 = vrcp.f32 %v2980_v6  ;;  %v5670_v21 = vld [vmem:[#allocation47_spill] sm:$0xff]  ;;  %v1891_v47 = vpop.eup %1890  ;;  %vm5684_vm5 = vcmp.eq.f32.partialorder %v5654_v34, 1.0 }
  0x9d   :  { %5652 = vst [vmem:[#allocation12_spill] sm:$0xff] %v3159_v59  ;;  %v516_v44 = vmul.f32 %v428_v36, %v5655_v56  ;;  %v5661_v41 = vsub.f32 1.0, %v5660_v46  ;;  %v5662_v59 = vld [vmem:[#allocation43_spill] sm:$0xff]  ;;  %v3182_v36 = vsel %vm5666_vm0, %v5665_v11, %v515_v28  ;;  %v5669_v56 = vsub.f32 1.0, %v5668_v12  ;;  %v5677_v6 = vld [vmem:[#allocation53_spill] sm:$0xff] }
  0x9e   :  { %v5663_v3 = vsub.f32 1.0, %v5662_v59  ;;  %5667 = vst [vmem:[#allocation13_spill] sm:$0xff] %v3182_v36  ;;  %v5671_v27 = vsub.f32 1.0, %v5670_v21  ;;  %1910 = vrcp.f32 %v2988_v7  ;;  %v5675_v28 = vld [vmem:[#allocation51_spill] sm:$0xff]  ;;  %v5678_v36 = vsub.f32 1.0, %v5677_v6 }
  0x9f   :  { %v517_v17 = vmul.f32 %v430_v2, %v5661_v41  ;;  %v519_v42 = vmul.f32 %v434_v14, %v5669_v56  ;;  %v5673_v2 = vsub.f32 1.0, %v5672_v37  ;;  %v5676_v45 = vsub.f32 1.0, %v5675_v28  ;;  %v1893_v14 = vpop.eup %1892  ;;  %v3199_v56 = vld [vmem:[#allocation2 + $0x88] sm:$0xff] }
  0xa0   :  { %v518_v19 = vmul.f32 %v432_v62, %v5663_v3  ;;  %v520_v50 = vmul.f32 %v436_v43, %v5671_v27  ;;  %v3191_v3 = vld [vmem:[#allocation2 + $0x80] sm:$0xff]  ;;  %v523_v4 = vmul.f32 %v442_v54, %v5678_v36  ;;  %5679 = vst [vmem:[#allocation43_spill] sm:$0xff] %v3199_v56  ;;  %v448_v43 = vmul.f32 %v3199_v56, %v1873_v23 }
  0xa1   :  { %v521_v41 = vmul.f32 %v438_v38, %v5673_v2  ;;  %5674 = vst [vmem:[#allocation41_spill] sm:$0xff] %v3191_v3  ;;  %v446_v62 = vmul.f32 %v3191_v3, %v1871_v5  ;;  %v522_v11 = vmul.f32 %v440_v22, %v5676_v45  ;;  %1912 = vrcp.f32 %v2992_v1  ;;  %v5680_v38 = vld [vmem:[#allocation55_spill] sm:$0xff]  ;;  %v1895_v22 = vpop.eup %1894  ;;  %v3211_v45 = vld [vmem:[#allocation2 + $0x90] sm:$0xff]  ;;  %v5687_v23 = vld [vmem:[#allocation16_spill] sm:$0xff] }
  0xa2   :  { %v5681_v27 = vsub.f32 1.0, %v5680_v38  ;;  %v5683_v5 = vsub.f32 0.0, %v5682_v39  ;;  %5686 = vst [vmem:[#allocation45_spill] sm:$0xff] %v3211_v45  ;;  %v450_v54 = vmul.f32 %v3211_v45, %v3088_v63  ;;  %1914 = vrcp.f32 %v2999_v32  ;;  %v5699_v63 = vld [vmem:[#allocation19_spill] sm:$0xff]  ;;  %v3279_v3 = vld [vmem:[#allocation2 + $0xa8] sm:$0xff] }
  0xa3   :  { %v5688_v36 = vsub.f32 0.0, %v5687_v23  ;;  %vm5689_vm15 = vcmp.eq.f32.partialorder %v5660_v46, 1.0  ;;  %vm5693_vm0 = vcmp.eq.f32.partialorder %v5662_v59, 1.0  ;;  %1916 = vrcp.f32 %v3003_v51  ;;  %v5707_v51 = vld [vmem:[#allocation57_spill] sm:$0xff] }
  0xa4   :  { %v524_v2 = vmul.f32 %v444_v48, %v5681_v27  ;;  %v3209_v7 = vsel %vm5684_vm5, %v5683_v5, %v516_v44  ;;  %v5691_v48 = vld [vmem:[#allocation17_spill] sm:$0xff]  ;;  %v1897_v27 = vpop.eup %1896  ;;  %v5695_v5 = vld [vmem:[#allocation18_spill] sm:$0xff]  ;;  %vm5697_vm5 = vcmp.eq.f32.partialorder %v5668_v12, 1.0  ;;  %v5700_v23 = vsub.f32 0.0, %v5699_v63 }
  0xa5   :  { %5685 = vst [vmem:[#allocation14_spill] sm:$0xff] %v3209_v7  ;;  %v3220_v1 = vsel %vm5689_vm15, %v5688_v36, %v517_v17  ;;  %v5692_v39 = vsub.f32 0.0, %v5691_v48  ;;  %v5696_v56 = vsub.f32 0.0, %v5695_v5  ;;  %vm5701_vm15 = vcmp.eq.f32.partialorder %v5670_v21, 1.0  ;;  %v5703_v36 = vld [vmem:[#allocation20_spill] sm:$0xff]  ;;  %v5755_v7 = vld [vmem:[#allocation26_spill] sm:$0xff] }
  0xa6   :  { %5690 = vst [vmem:[#allocation47_spill] sm:$0xff] %v3220_v1  ;;  %v3239_v17 = vsel %vm5701_vm15, %v5700_v23, %v520_v50  ;;  %v5704_v48 = vsub.f32 0.0, %v5703_v36  ;;  %1918 = vrcp.f32 %v3013_v8  ;;  %v5708_v5 = vsub.f32 1.0, %v5707_v51  ;;  %v5713_v50 = vld [vmem:[#allocation22_spill] sm:$0xff] }
  0xa7   :  { %v3226_v44 = vsel %vm5693_vm0, %v5692_v39, %v518_v19  ;;  %v3233_v32 = vsel %vm5697_vm5, %v5696_v56, %v519_v42  ;;  %5702 = vst [vmem:[#allocation15_spill] sm:$0xff] %v3239_v17  ;;  %vm5705_vm0 = vcmp.eq.f32.partialorder %v5672_v37, 1.0  ;;  %v1899_v39 = vpop.eup %1898  ;;  %v5709_v42 = vld [vmem:[#allocation21_spill] sm:$0xff]  ;;  %vm5711_vm5 = vcmp.eq.f32.partialorder %v5675_v28, 1.0  ;;  %5724 = vst [vmem:[#allocation22_spill] sm:$0xff] %v3279_v3 }
  0xa8   :  { %5694 = vst [vmem:[#allocation49_spill] sm:$0xff] %v3226_v44  ;;  %5698 = vst [vmem:[#allocation51_spill] sm:$0xff] %v3233_v32  ;;  %v3245_v19 = vsel %vm5705_vm0, %v5704_v48, %v521_v41  ;;  %v525_v45 = vmul.f32 %v446_v62, %v5708_v5  ;;  %v5710_v56 = vsub.f32 0.0, %v5709_v42  ;;  %v5714_v23 = vsub.f32 0.0, %v5713_v50  ;;  %v1901_v41 = vpop.eup %1900  ;;  %v3262_v48 = vld [vmem:[#allocation2 + $0x98] sm:$0xff]  ;;  %v5749_v32 = vld [vmem:[#allocation73_spill] sm:$0xff] }
  0xa9   :  { %5706 = vst [vmem:[#allocation16_spill] sm:$0xff] %v3245_v19  ;;  %vm5715_vm15 = vcmp.eq.f32.partialorder %v5677_v6, 1.0  ;;  %5717 = vst [vmem:[#allocation19_spill] sm:$0xff] %v3262_v48  ;;  %v452_v8 = vmul.f32 %v3262_v48, %v3105_v55  ;;  %1920 = vrcp.f32 %v3025_v15  ;;  %v5718_v62 = vsub.f32 1.0, %v5549_v9  ;;  %v5719_v42 = vld [vmem:[#allocation23_spill] sm:$0xff]  ;;  %v1903_v50 = vpop.eup %1902  ;;  %v5725_v55 = vld [vmem:[#allocation61_spill] sm:$0xff] }
  0xaa   :  { %v3254_v63 = vsel %vm5711_vm5, %v5710_v56, %v522_v11  ;;  %v3260_v36 = vsel %vm5715_vm15, %v5714_v23, %v523_v4  ;;  %v5720_v11 = vsub.f32 0.0, %v5719_v42  ;;  %vm5721_vm0 = vcmp.eq.f32.partialorder %v5680_v38, 1.0  ;;  %v3275_v4 = vld [vmem:[#allocation2 + $0xa0] sm:$0xff]  ;;  %v1905_v42 = vpop.eup %1904  ;;  %v3286_v48 = vld [vmem:[#allocation2 + $0xb0] sm:$0xff] }
  0xab   :  { %5712 = vst [vmem:[#allocation17_spill] sm:$0xff] %v3254_v63  ;;  %5716 = vst [vmem:[#allocation18_spill] sm:$0xff] %v3260_v36  ;;  %v526_v5 = vmul.f32 %v448_v43, %v5718_v62  ;;  %v454_v23 = vmul.f32 %v3275_v4, %v3120_v0  ;;  %v456_v15 = vmul.f32 %v3279_v3, %v3133_v25  ;;  %1922 = vrcp.f32 %v3035_v13  ;;  %v1907_v13 = vpop.eup %1906  ;;  %v3297_v25 = vld [vmem:[#allocation2 + $0xc8] sm:$0xff] }
  0xac   :  { %v3273_v56 = vsel %vm5721_vm0, %v5720_v11, %v524_v2  ;;  %5723 = vst [vmem:[#allocation21_spill] sm:$0xff] %v3275_v4  ;;  %v5726_v43 = vsub.f32 1.0, %v5725_v55  ;;  %5727 = vst [vmem:[#allocation23_spill] sm:$0xff] %v3286_v48  ;;  %v458_v2 = vmul.f32 %v3286_v48, %v3146_v20  ;;  %v3290_v11 = vld [vmem:[#allocation2 + $0xb8] sm:$0xff]  ;;  %v3293_v4 = vld [vmem:[#allocation2 + $0xc0] sm:$0xff]  ;;  %1924 = vrcp.f32 %v3053_v53 }
  0xad   :  { %5722 = vst [vmem:[#allocation20_spill] sm:$0xff] %v3273_v56  ;;  %5728 = vst [vmem:[#allocation61_spill] sm:$0xff] %v3290_v11  ;;  %v460_v0 = vmul.f32 %v3290_v11, %v1885_v31  ;;  %v462_v56 = vmul.f32 %v3293_v4, %v1887_v60  ;;  %1926 = vrcp.f32 %v3063_v35  ;;  %v5732_v20 = vld [vmem:[#allocation24_spill] sm:$0xff]  ;;  %vm5734_vm5 = vcmp.eq.f32.partialorder %v5707_v51, 1.0  ;;  %v1909_v60 = vpop.eup %1908  ;;  %v3310_v11 = vld [vmem:[#allocation2 + $0xd8] sm:$0xff] }
  0xae   :  { %v527_v62 = vmul.f32 %v450_v54, %v5726_v43  ;;  %5729 = vst [vmem:[#allocation111_spill] sm:$0xff] %v3293_v4  ;;  %5730 = vst [vmem:[#allocation112_spill] sm:$0xff] %v3297_v25  ;;  %v464_v54 = vmul.f32 %v3297_v25, %v1889_v52  ;;  %v3300_v43 = vld [vmem:[#allocation2 + $0xd0] sm:$0xff]  ;;  %v5733_v48 = vsub.f32 0.0, %v5732_v20  ;;  %v468_v53 = vmul.f32 %v3310_v11, %v1893_v14  ;;  %v3313_v4 = vld [vmem:[#allocation2 + $0xe0] sm:$0xff]  ;;  %v1911_v25 = vpop.eup %1910 }
  0xaf   :  { %5731 = vst [vmem:[#allocation113_spill] sm:$0xff] %v3300_v43  ;;  %v466_v3 = vmul.f32 %v3300_v43, %v1891_v47  ;;  %5736 = vst [vmem:[#allocation114_spill] sm:$0xff] %v3310_v11  ;;  %v470_v52 = vmul.f32 %v3313_v4, %v1895_v22  ;;  %1928 = vrcp.f32 %v3067_v26  ;;  %v5738_v47 = vld [vmem:[#allocation63_spill] sm:$0xff]  ;;  %v3319_v20 = vld [vmem:[#allocation2 + $0xe8] sm:$0xff]  ;;  %v1913_v19 = vpop.eup %1912  ;;  %v5750_v44 = vsub.f32 1.0, %v5749_v32 }
  0xb0   :  { %v3308_v31 = vsel %vm5734_vm5, %v5733_v48, %v525_v45  ;;  %5737 = vst [vmem:[#allocation115_spill] sm:$0xff] %v3313_v4  ;;  %v5739_v43 = vsub.f32 1.0, %v5738_v47  ;;  %5740 = vst [vmem:[#allocation63_spill] sm:$0xff] %v3319_v20  ;;  %v472_v45 = vmul.f32 %v3319_v20, %v1897_v27  ;;  %1930 = vrcp.f32 %v3075_v18  ;;  %v5741_v48 = vld [vmem:[#allocation65_spill] sm:$0xff]  ;;  %v5743_v14 = vld [vmem:[#allocation67_spill] sm:$0xff]  ;;  %v1915_v20 = vpop.eup %1914 }
  0xb1   :  { %5735 = vst [vmem:[#allocation24_spill] sm:$0xff] %v3308_v31  ;;  %v5742_v31 = vsub.f32 1.0, %v5741_v48  ;;  %v5744_v11 = vsub.f32 1.0, %v5743_v14  ;;  %1932 = vrcp.f32 %v3079_v29  ;;  %v5745_v26 = vld [vmem:[#allocation69_spill] sm:$0xff]  ;;  %v533_v27 = vmul.f32 %v462_v56, %v5750_v44  ;;  %v3334_v18 = vld [vmem:[#allocation2 + $0xf0] sm:$0xff] }
  0xb2   :  { %v528_v35 = vmul.f32 %v452_v8, %v5739_v43  ;;  %v5746_v22 = vsub.f32 1.0, %v5745_v26  ;;  %v5747_v8 = vld [vmem:[#allocation71_spill] sm:$0xff]  ;;  %5751 = vst [vmem:[#allocation65_spill] sm:$0xff] %v3334_v18  ;;  %v5756_v51 = vsub.f32 0.0, %v5755_v7  ;;  %vm5757_vm15 = vcmp.eq.f32.partialorder %v5549_v9, 1.0  ;;  %v5760_v56 = vld [vmem:[#allocation78_spill] sm:$0xff] }
  0xb3   :  { %v529_v36 = vmul.f32 %v454_v23, %v5742_v31  ;;  %v530_v63 = vmul.f32 %v456_v15, %v5744_v11  ;;  %v5748_v43 = vsub.f32 1.0, %v5747_v8  ;;  %v474_v23 = vmul.f32 %v3334_v18, %v1899_v39  ;;  %v5753_v11 = vld [vmem:[#allocation76_spill] sm:$0xff] }
  0xb4   :  { %v531_v4 = vmul.f32 %v458_v2, %v5746_v22  ;;  %v5752_v31 = vsub.f32 1.0, %v2422_v57  ;;  %v5754_v1 = vsub.f32 1.0, %v5753_v11  ;;  %v3345_v2 = vsel %vm5757_vm15, %v5756_v51, %v526_v5  ;;  %v3347_v22 = vld [vmem:[#allocation2 + $0xf8] sm:$0xff]  ;;  %v5762_v18 = vld [vmem:[#allocation80_spill] sm:$0xff] }
  0xb5   :  { %v532_v17 = vmul.f32 %v460_v0, %v5748_v43  ;;  %5758 = vst [vmem:[#allocation67_spill] sm:$0xff] %v3345_v2  ;;  %v1917_v0 = vpop.eup %1916  ;;  %5759 = vst [vmem:[#allocation69_spill] sm:$0xff] %v3347_v22  ;;  %v476_v44 = vmul.f32 %v3347_v22, %v1901_v41  ;;  %v5761_v43 = vsub.f32 1.0, %v5760_v56  ;;  %v5763_v38 = vsub.f32 1.0, %v5762_v18  ;;  %v5770_v2 = vld [vmem:[#allocation30_spill] sm:$0xff] }
  0xb6   :  { %v534_v15 = vmul.f32 %v464_v54, %v5752_v31  ;;  %v535_v29 = vmul.f32 %v466_v3, %v5754_v1  ;;  %v5764_v31 = vld [vmem:[#allocation28_spill] sm:$0xff]  ;;  %vm5766_vm0 = vcmp.eq.f32.partialorder %v5725_v55, 1.0  ;;  %v1919_v7 = vpop.eup %1918  ;;  %v5768_v1 = vld [vmem:[#allocation82_spill] sm:$0xff]  ;;  %v5771_v9 = vsub.f32 0.0, %v5770_v2 }
  0xb7   :  { %v536_v39 = vmul.f32 %v468_v53, %v5761_v43  ;;  %v537_v54 = vmul.f32 %v470_v52, %v5763_v38  ;;  %v5765_v6 = vsub.f32 0.0, %v5764_v31  ;;  %v5769_v51 = vsub.f32 1.0, %v5768_v1  ;;  %v5774_v53 = vld [vmem:[#allocation32_spill] sm:$0xff]  ;;  %v5778_v52 = vld [vmem:[#allocation34_spill] sm:$0xff] }
  0xb8   :  { %vm5772_vm5 = vcmp.eq.f32.partialorder %v5738_v47, 1.0  ;;  %v5775_v43 = vsub.f32 0.0, %v5774_v53  ;;  %vm5776_vm15 = vcmp.eq.f32.partialorder %v5741_v48, 1.0  ;;  %v5779_v31 = vsub.f32 0.0, %v5778_v52  ;;  %v5787_v53 = vld [vmem:[#allocation38_spill] sm:$0xff]  ;;  %v5791_v52 = vld [vmem:[#allocation40_spill] sm:$0xff] }
  0xb9   :  { %v3358_v3 = vsel %vm5766_vm0, %v5765_v6, %v527_v62  ;;  %v538_v5 = vmul.f32 %v472_v45, %v5769_v51  ;;  %v3366_v41 = vsel %vm5772_vm5, %v5771_v9, %v528_v35  ;;  %vm5780_vm0 = vcmp.eq.f32.partialorder %v5743_v14, 1.0  ;;  %v1921_v62 = vpop.eup %1920  ;;  %v3380_v45 = vld [vmem:[#allocation2 + $0x100] sm:$0xff] }
  0xba   :  { %5767 = vst [vmem:[#allocation71_spill] sm:$0xff] %v3358_v3  ;;  %5773 = vst [vmem:[#allocation73_spill] sm:$0xff] %v3366_v41  ;;  %v3372_v38 = vsel %vm5776_vm15, %v5775_v43, %v529_v36  ;;  %v3378_v6 = vsel %vm5780_vm0, %v5779_v31, %v530_v63  ;;  %v478_v2 = vmul.f32 %v3380_v45, %v1903_v50  ;;  %v5783_v51 = vld [vmem:[#allocation36_spill] sm:$0xff]  ;;  %vm5785_vm5 = vcmp.eq.f32.partialorder %v5745_v26, 1.0  ;;  %v1923_v22 = vpop.eup %1922  ;;  %v3401_v50 = vld [vmem:[#allocation2 + $0x108] sm:$0xff] }
  0xbb   :  { %5777 = vst [vmem:[#allocation76_spill] sm:$0xff] %v3372_v38  ;;  %5781 = vst [vmem:[#allocation26_spill] sm:$0xff] %v3378_v6  ;;  %v5784_v9 = vsub.f32 0.0, %v5783_v51  ;;  %v5788_v36 = vsub.f32 0.0, %v5787_v53  ;;  %vm5789_vm15 = vcmp.eq.f32.partialorder %v5747_v8, 1.0  ;;  %v5792_v63 = vsub.f32 0.0, %v5791_v52 }
  0xbc   :  { %5782 = vst [vmem:[#allocation78_spill] sm:$0xff] %v3380_v45  ;;  %vm5793_vm0 = vcmp.eq.f32.partialorder %v5749_v32, 1.0  ;;  %5795 = vst [vmem:[#allocation30_spill] sm:$0xff] %v3401_v50  ;;  %v480_v51 = vmul.f32 %v3401_v50, %v1905_v42  ;;  %v5796_v45 = vld [vmem:[#allocation84_spill] sm:$0xff]  ;;  %v5807_v50 = vld [vmem:[#allocation86_spill] sm:$0xff] }
  0xbd   :  { %v3387_v35 = vsel %vm5785_vm5, %v5784_v9, %v531_v4  ;;  %v3393_v43 = vsel %vm5789_vm15, %v5788_v36, %v532_v17  ;;  %v3399_v31 = vsel %vm5793_vm0, %v5792_v63, %v533_v27  ;;  %v5797_v4 = vsub.f32 1.0, %v5796_v45  ;;  %v5802_v36 = vld [vmem:[#allocation44_spill] sm:$0xff]  ;;  %v1925_v63 = vpop.eup %1924  ;;  %v5853_v41 = vld [vmem:[#allocation95_spill] sm:$0xff] }
  0xbe   :  { %5786 = vst [vmem:[#allocation80_spill] sm:$0xff] %v3387_v35  ;;  %5790 = vst [vmem:[#allocation28_spill] sm:$0xff] %v3393_v43  ;;  %v5798_v35 = vld [vmem:[#allocation42_spill] sm:$0xff]  ;;  %vm5800_vm5 = vcmp.eq.f32.partialorder %v2422_v57, 1.0  ;;  %v5803_v52 = vsub.f32 0.0, %v5802_v36  ;;  %vm5804_vm15 = vcmp.eq.f32.partialorder %v5753_v11, 1.0 }
  0xbf   :  { %5794 = vst [vmem:[#allocation82_spill] sm:$0xff] %v3399_v31  ;;  %v539_v9 = vmul.f32 %v474_v23, %v5797_v4  ;;  %v5799_v53 = vsub.f32 0.0, %v5798_v35  ;;  %v3418_v31 = vld [vmem:[#allocation2 + $0x110] sm:$0xff]  ;;  %v5808_v43 = vsub.f32 1.0, %v5807_v50  ;;  %vm5811_vm0 = vcmp.eq.f32.partialorder %v5760_v56, 1.0  ;;  %v3478_v6 = vld [vmem:[#allocation2 + $0x160] sm:$0xff] }
  0xc0   :  { %v3416_v27 = vsel %vm5804_vm15, %v5803_v52, %v535_v29  ;;  %5806 = vst [vmem:[#allocation36_spill] sm:$0xff] %v3418_v31  ;;  %v482_v42 = vmul.f32 %v3418_v31, %v1907_v13  ;;  %v5809_v4 = vld [vmem:[#allocation46_spill] sm:$0xff]  ;;  %v1927_v52 = vpop.eup %1926  ;;  %v3438_v31 = vld [vmem:[#allocation2 + $0x120] sm:$0xff]  ;;  %vm5822_vm15 = vcmp.eq.f32.partialorder %v5768_v1, 1.0  ;;  %5837 = vst [vmem:[#allocation118_spill] sm:$0xff] %v3478_v6 }
  0xc1   :  { %v3410_v17 = vsel %vm5800_vm5, %v5799_v53, %v534_v15  ;;  %5805 = vst [vmem:[#allocation34_spill] sm:$0xff] %v3416_v27  ;;  %v540_v23 = vmul.f32 %v476_v44, %v5808_v43  ;;  %v5810_v35 = vsub.f32 0.0, %v5809_v4  ;;  %v5813_v53 = vld [vmem:[#allocation48_spill] sm:$0xff]  ;;  %vm5815_vm5 = vcmp.eq.f32.partialorder %v5762_v18, 1.0  ;;  %v3435_v27 = vld [vmem:[#allocation2 + $0x118] sm:$0xff]  ;;  %5818 = vst [vmem:[#allocation42_spill] sm:$0xff] %v3438_v31 }
  0xc2   :  { %5801 = vst [vmem:[#allocation32_spill] sm:$0xff] %v3410_v17  ;;  %v5814_v36 = vsub.f32 0.0, %v5813_v53  ;;  %5817 = vst [vmem:[#allocation84_spill] sm:$0xff] %v3435_v27  ;;  %v484_v13 = vmul.f32 %v3435_v27, %v1909_v60  ;;  %v486_v44 = vmul.f32 %v3438_v31, %v1911_v25  ;;  %v3441_v43 = vld [vmem:[#allocation2 + $0x128] sm:$0xff]  ;;  %v5820_v4 = vld [vmem:[#allocation50_spill] sm:$0xff] }
  0xc3   :  { %v3427_v15 = vsel %vm5811_vm0, %v5810_v35, %v536_v39  ;;  %5819 = vst [vmem:[#allocation44_spill] sm:$0xff] %v3441_v43  ;;  %v488_v39 = vmul.f32 %v3441_v43, %v1913_v19  ;;  %v5821_v35 = vsub.f32 0.0, %v5820_v4  ;;  %v3453_v60 = vld [vmem:[#allocation2 + $0x138] sm:$0xff]  ;;  %v3456_v25 = vld [vmem:[#allocation2 + $0x140] sm:$0xff]  ;;  %v3461_v17 = vld [vmem:[#allocation2 + $0x148] sm:$0xff]  ;;  %vm5834_vm0 = vcmp.eq.f32.partialorder %v5796_v45, 1.0 }
  0xc4   :  { %5812 = vst [vmem:[#allocation38_spill] sm:$0xff] %v3427_v15  ;;  %v3433_v29 = vsel %vm5815_vm5, %v5814_v36, %v537_v54  ;;  %v1929_v54 = vpop.eup %1928  ;;  %v3450_v36 = vld [vmem:[#allocation2 + $0x130] sm:$0xff]  ;;  %5825 = vst [vmem:[#allocation48_spill] sm:$0xff] %v3453_v60  ;;  %v492_v27 = vmul.f32 %v3453_v60, %v1917_v0  ;;  %v494_v31 = vmul.f32 %v3456_v25, %v1919_v7  ;;  %v5827_v19 = vld [vmem:[#allocation87_spill] sm:$0xff]  ;;  %vm5841_vm5 = vcmp.eq.f32.partialorder %v5807_v50, 1.0 }
  0xc5   :  { %5816 = vst [vmem:[#allocation40_spill] sm:$0xff] %v3433_v29  ;;  %v3448_v53 = vsel %vm5822_vm15, %v5821_v35, %v538_v5  ;;  %5824 = vst [vmem:[#allocation46_spill] sm:$0xff] %v3450_v36  ;;  %v490_v29 = vmul.f32 %v3450_v36, %v1915_v20  ;;  %v5828_v43 = vsub.f32 1.0, %v5827_v19  ;;  %v1931_v15 = vpop.eup %1930  ;;  %v496_v5 = vmul.f32 %v3461_v17, %v1921_v62  ;;  %v3464_v35 = vld [vmem:[#allocation2 + $0x150] sm:$0xff]  ;;  %v5832_v0 = vld [vmem:[#allocation52_spill] sm:$0xff] }
  0xc6   :  { %5823 = vst [vmem:[#allocation86_spill] sm:$0xff] %v3448_v53  ;;  %5826 = vst [vmem:[#allocation50_spill] sm:$0xff] %v3456_v25  ;;  %v498_v20 = vmul.f32 %v3464_v35, %v1923_v22  ;;  %v5831_v36 = vsub.f32 1.0, %v5581_v24  ;;  %v5833_v60 = vsub.f32 0.0, %v5832_v0  ;;  %v1933_v25 = vpop.eup %1932  ;;  %v502_v62 = vmul.f32 %v3478_v6, %v1927_v52  ;;  %v5846_v52 = vld [vmem:[#allocation92_spill] sm:$0xff] }
  0xc7   :  { %v541_v4 = vmul.f32 %v478_v2, %v5828_v43  ;;  %5829 = vst [vmem:[#allocation87_spill] sm:$0xff] %v3461_v17  ;;  %5830 = vst [vmem:[#allocation116_spill] sm:$0xff] %v3464_v35  ;;  %v3475_v2 = vld [vmem:[#allocation2 + $0x158] sm:$0xff]  ;;  %v5838_v22 = vsub.f32 1.0, %v5583_v30  ;;  %v5839_v17 = vld [vmem:[#allocation54_spill] sm:$0xff]  ;;  %v5844_v0 = vsub.f32 1.0, %v5584_v10 }
  0xc8   :  { %v542_v53 = vmul.f32 %v480_v51, %v5831_v36  ;;  %v3473_v7 = vsel %vm5834_vm0, %v5833_v60, %v539_v9  ;;  %5836 = vst [vmem:[#allocation117_spill] sm:$0xff] %v3475_v2  ;;  %v500_v43 = vmul.f32 %v3475_v2, %v1925_v63  ;;  %v5840_v51 = vsub.f32 0.0, %v5839_v17  ;;  %v3489_v9 = vld [vmem:[#allocation2 + $0x168] sm:$0xff]  ;;  %v3499_v17 = vld [vmem:[#allocation2 + $0x170] sm:$0xff] }
  0xc9   :  { %5835 = vst [vmem:[#allocation52_spill] sm:$0xff] %v3473_v7  ;;  %v543_v35 = vmul.f32 %v482_v42, %v5838_v22  ;;  %5843 = vst [vmem:[#allocation119_spill] sm:$0xff] %v3489_v9  ;;  %v504_v60 = vmul.f32 %v3489_v9, %v1929_v54  ;;  %v544_v63 = vmul.f32 %v484_v13, %v5844_v0  ;;  %v5845_v2 = vsub.f32 1.0, %v5586_v16 }
  0xca   :  { %v3487_v36 = vsel %vm5841_vm5, %v5840_v51, %v540_v23  ;;  %v5847_v6 = vsub.f32 1.0, %v5846_v52  ;;  %5848 = vst [vmem:[#allocation92_spill] sm:$0xff] %v3499_v17  ;;  %v506_v42 = vmul.f32 %v3499_v17, %v1931_v15  ;;  %v5849_v23 = vld [vmem:[#allocation93_spill] sm:$0xff]  ;;  %v5854_v13 = vsub.f32 1.0, %v5853_v41  ;;  %v5863_v17 = vld [vmem:[#allocation35_spill] sm:$0xff] }
  0xcb   :  { %5842 = vst [vmem:[#allocation54_spill] sm:$0xff] %v3487_v36  ;;  %v545_v7 = vmul.f32 %v486_v44, %v5845_v2  ;;  %v5850_v22 = vsub.f32 1.0, %v5849_v23  ;;  %v5851_v36 = vld [vmem:[#allocation94_spill] sm:$0xff]  ;;  %v5856_v44 = vld [vmem:[#allocation96_spill] sm:$0xff]  ;;  %v5858_v2 = vld [vmem:[#allocation97_spill] sm:$0xff]  ;;  %vm658_vm4 = vcmp.eq.f32.partialorder %v5863_v17, 0.0 }
  0xcc   :  { %v546_v38 = vmul.f32 %v488_v39, %v5847_v6  ;;  %v5852_v54 = vsub.f32 1.0, %v5851_v36  ;;  %v549_v0 = vmul.f32 %v494_v31, %v5854_v13  ;;  %v3512_v6 = vld [vmem:[#allocation2 + $0x178] sm:$0xff]  ;;  %vm663_vm0 = vcmp.eq.f32.partialorder %v5668_v12, 0.0  ;;  %v5945_v12 = vld [vmem:[#allocation20_spill] sm:$0xff] }
  0xcd   :  { %v547_v51 = vmul.f32 %v490_v29, %v5850_v22  ;;  %5855 = vst [vmem:[#allocation93_spill] sm:$0xff] %v3512_v6  ;;  %v508_v15 = vmul.f32 %v3512_v6, %v1933_v25  ;;  %v5857_v29 = vsub.f32 1.0, %v5856_v44  ;;  %v5865_v25 = vld [vmem:[#allocation98_spill] sm:$0xff]  ;;  %vm664_vm5 = vcmp.eq.f32.partialorder %v5670_v21, 0.0 }
  0xce   :  { %v548_v9 = vmul.f32 %v492_v27, %v5852_v54  ;;  %v5859_v27 = vsub.f32 1.0, %v5858_v2  ;;  %v5860_v54 = vld [vmem:[#allocation56_spill] sm:$0xff]  ;;  %v5866_v6 = vsub.f32 1.0, %v5865_v25 }
  0xcf   :  { %v550_v39 = vmul.f32 %v496_v5, %v5857_v29  ;;  %v5861_v31 = vsub.f32 0.0, %v5860_v54  ;;  %v5867_v29 = vld [vmem:[#allocation99_spill] sm:$0xff] }
  0xd0   :  { %v551_v22 = vmul.f32 %v498_v20, %v5859_v27  ;;  %v552_v5 = vmul.f32 %v500_v43, %v5866_v6  ;;  %v5868_v40 = vsub.f32 1.0, %v5867_v29  ;;  %v5869_v27 = vld [vmem:[#allocation58_spill] sm:$0xff] }
  0xd1   :  { %v3523_v13 = vsel %vm205_vm7, %v5861_v31, %v541_v4  ;;  %v5870_v54 = vsub.f32 0.0, %v5869_v27  ;;  %v5872_v31 = vld [vmem:[#allocation60_spill] sm:$0xff]  ;;  %vm662_vm7 = vcmp.eq.f32.partialorder %v5662_v59, 0.0  ;;  %v5877_v6 = vld [vmem:[#allocation62_spill] sm:$0xff] }
  0xd2   :  { %5862 = vst [vmem:[#allocation94_spill] sm:$0xff] %v3523_v13  ;;  %v553_v20 = vmul.f32 %v502_v62, %v5868_v40  ;;  %v5873_v13 = vsub.f32 0.0, %v5872_v31  ;;  %v5875_v40 = vld [vmem:[#allocation100_spill] sm:$0xff]  ;;  %v5883_v31 = vld [vmem:[#allocation66_spill] sm:$0xff] }
  0xd3   :  { %v3537_v4 = vsel %vm206_vm8, %v5870_v54, %v542_v53  ;;  %v5876_v43 = vsub.f32 1.0, %v5875_v40  ;;  %v5878_v53 = vsub.f32 0.0, %v5877_v6  ;;  %v5880_v54 = vld [vmem:[#allocation64_spill] sm:$0xff]  ;;  %vm666_vm8 = vcmp.eq.f32.partialorder %v5675_v28, 0.0  ;;  %v5889_v6 = vld [vmem:[#allocation101_spill] sm:$0xff]  ;;  %v5944_v59 = vld [vmem:[#allocation18_spill] sm:$0xff] }
  0xd4   :  { %5871 = vst [vmem:[#allocation95_spill] sm:$0xff] %v3537_v4  ;;  %v3543_v3 = vsel %vm207_vm9, %v5873_v13, %v543_v35  ;;  %v5881_v35 = vsub.f32 0.0, %v5880_v54 }
  0xd5   :  { %5874 = vst [vmem:[#allocation96_spill] sm:$0xff] %v3543_v3  ;;  %v554_v62 = vmul.f32 %v504_v60, %v5876_v43  ;;  %v3555_v27 = vsel %vm208_vm6, %v5878_v53, %v544_v63  ;;  %v5884_v3 = vsub.f32 0.0, %v5883_v31  ;;  %v5886_v60 = vld [vmem:[#allocation53_spill] sm:$0xff]  ;;  %v5887_v43 = vld [vmem:[#allocation55_spill] sm:$0xff]  ;;  %v5890_v53 = vsub.f32 1.0, %v5889_v6  ;;  %v5893_v31 = vld [vmem:[#allocation70_spill] sm:$0xff] }
  0xd6   :  { %5879 = vst [vmem:[#allocation97_spill] sm:$0xff] %v3555_v27  ;;  %v3561_v13 = vsel %vm209_vm10, %v5881_v35, %v545_v7  ;;  %vm667_vm9 = vcmp.eq.f32.partialorder %v5886_v60, 0.0  ;;  %vm668_vm15 = vcmp.eq.f32.partialorder %v5887_v43, 0.0  ;;  %v5891_v27 = vld [vmem:[#allocation68_spill] sm:$0xff]  ;;  %v5897_v43 = vld [vmem:[#allocation59_spill] sm:$0xff]  ;;  %vm5911_vm6 = vcmp.eq.f32.partialorder %v5875_v40, 1.0 }
  0xd7   :  { %5882 = vst [vmem:[#allocation56_spill] sm:$0xff] %v3561_v13  ;;  %v3567_v4 = vsel %vm210_vm2, %v5884_v3, %v546_v38  ;;  %v555_v54 = vmul.f32 %v506_v42, %v5890_v53  ;;  %v5892_v7 = vsub.f32 0.0, %v5891_v27  ;;  %v5894_v3 = vsub.f32 0.0, %v5893_v31  ;;  %v5898_v42 = vld [vmem:[#allocation102_spill] sm:$0xff] }
  0xd8   :  { %5885 = vst [vmem:[#allocation35_spill] sm:$0xff] %v3567_v4  ;;  %v5895_v4 = vld [vmem:[#allocation72_spill] sm:$0xff]  ;;  %v5900_v53 = vld [vmem:[#allocation74_spill] sm:$0xff]  ;;  %vm697_vm10 = vcmp.eq.f32.partialorder %v5867_v29, 0.0  ;;  %vm700_vm2 = vcmp.eq.f32.partialorder %v5898_v42, 0.0  ;;  %v3722_v21 = vsel %vm668_vm15, 1.0, %v5945_v12 }
  0xd9   :  { %v3579_v35 = vsel %vm211_vm11, %v5892_v7, %v547_v51  ;;  %v3585_v38 = vsel %vm212_vm1, %v5894_v3, %v548_v9  ;;  %v5896_v13 = vsub.f32 0.0, %v5895_v4  ;;  %v5899_v51 = vsub.f32 1.0, %v5898_v42  ;;  %v5902_v7 = vld [vmem:[#allocation75_spill] sm:$0xff] }
  0xda   :  { %v5901_v9 = vsub.f32 0.0, %v5900_v53  ;;  %v5906_v3 = vld [vmem:[#allocation79_spill] sm:$0xff]  ;;  %v5909_v53 = vld [vmem:[#allocation81_spill] sm:$0xff]  ;;  %vm691_vm11 = vcmp.eq.f32.partialorder %v5849_v23, 0.0  ;;  %vm5922_vm1 = vcmp.eq.f32.partialorder %v5611_v49, 0.0  ;;  %vm5957_vm15 = vcmp.eq.f32.partialorder %v5741_v48, 0.0 }
  0xdb   :  { %v3591_v63 = vsel %vm213_vm12, %v5896_v13, %v549_v0  ;;  %v556_v27 = vmul.f32 %v508_v15, %v5899_v51  ;;  %v5903_v0 = vsub.f32 0.0, %v5902_v7  ;;  %v5904_v15 = vld [vmem:[#allocation77_spill] sm:$0xff]  ;;  %v5907_v51 = vsub.f32 0.0, %v5906_v3  ;;  %v5930_v49 = vld [vmem:[#allocation39_spill] sm:$0xff] }
  0xdc   :  { %v3603_v4 = vsel %vm214_vm13, %v5901_v9, %v550_v39  ;;  %v5905_v31 = vsub.f32 0.0, %v5904_v15  ;;  %vm5908_vm13 = vcmp.eq.f32.partialorder %v5867_v29, 1.0  ;;  %v5910_v9 = vsub.f32 0.0, %v5909_v53  ;;  %v5923_v53 = vld [vmem:[#allocation29_spill] sm:$0xff]  ;;  %v6015_v29 = vld [vmem:[#allocation88_spill] sm:$0xff] }
  0xdd   :  { %v3609_v13 = vsel %vm215_vm14, %v5903_v0, %v551_v22  ;;  %v3625_v22 = vsel %vm5908_vm13, %v5907_v51, %v553_v20  ;;  %vm5914_vm13 = vcmp.eq.f32.partialorder %v5889_v6, 1.0  ;;  %vm5920_vm14 = vcmp.eq.f32.partialorder %v5608_v58, 0.0  ;;  %v5927_v58 = vld [vmem:[#allocation12_spill] sm:$0xff] }
  0xde   :  { %v3619_v39 = vsel %vm216_vm3, %v5905_v31, %v552_v5  ;;  %v3634_v7 = vsel %vm5911_vm6, %v5910_v9, %v554_v62  ;;  %v5912_v5 = vld [vmem:[#allocation83_spill] sm:$0xff]  ;;  %v5915_v62 = vld [vmem:[#allocation85_spill] sm:$0xff]  ;;  %vm5917_vm6 = vcmp.eq.f32.partialorder %v5898_v42, 1.0  ;;  %vm689_vm3 = vcmp.eq.f32.partialorder %v5586_v16, 0.0 }
  0xdf   :  { %v5913_v20 = vsub.f32 0.0, %v5912_v5  ;;  %v5916_v15 = vsub.f32 0.0, %v5915_v62  ;;  %v5925_v5 = vld [vmem:[#allocation8_spill] sm:$0xff]  ;;  %vm5926_vm12 = vcmp.eq.f32.partialorder %v5616_v61, 0.0  ;;  %v5928_v62 = vld [vmem:[#allocation33_spill] sm:$0xff]  ;;  %v5934_v61 = vld [vmem:[#allocation14_spill] sm:$0xff] }
  0xe1   :  { %v3643_v0 = vsel %vm5914_vm13, %v5913_v20, %v555_v54  ;;  %v3652_v31 = vsel %vm5917_vm6, %v5916_v15, %v556_v27  ;;  %v5919_v54 = vld [vmem:[#allocation25_spill] sm:$0xff]  ;;  %v5921_v27 = vld [vmem:[#allocation27_spill] sm:$0xff]  ;;  %vm5924_vm13 = vcmp.eq.f32.partialorder %v5613_v33, 0.0  ;;  %v704_v20 = vsel %vm5926_vm12, 1.0, %v5925_v5 }
  0xe2   :  { %5918 = vst [vmem:[#allocation98_spill] sm:$0xff] %v3652_v31  ;;  %v701_v3 = vsel %vm5920_vm14, 1.0, %v5919_v54  ;;  %v702_v51 = vsel %vm5922_vm1, 1.0, %v5921_v27  ;;  %v703_v9 = vsel %vm5924_vm13, 1.0, %v5923_v53  ;;  %vm5929_vm14 = vcmp.eq.f32.partialorder %v5928_v62, 0.0  ;;  %v5931_v33 = vld [vmem:[#allocation13_spill] sm:$0xff] }
  0xe3   :  { %v705_v15 = vsel %vm5929_vm14, 1.0, %v5927_v58  ;;  %vm696_vm6 = vcmp.eq.f32.partialorder %v5865_v25, 0.0  ;;  %v706_v54 = vsel %vm658_vm4, 1.0, %v5930_v49  ;;  %v5932_v27 = vld [vmem:[#allocation37_spill] sm:$0xff]  ;;  %vm5935_vm12 = vcmp.eq.f32.partialorder %v5654_v34, 0.0  ;;  %v5936_v62 = vld [vmem:[#allocation47_spill] sm:$0xff] }
  0xe4   :  { %vm5933_vm1 = vcmp.eq.f32.partialorder %v5932_v27, 0.0  ;;  %v708_v5 = vsel %vm5935_vm12, 1.0, %v5934_v61  ;;  %vm5937_vm13 = vcmp.eq.f32.partialorder %v5660_v46, 0.0  ;;  %vm699_vm14 = vcmp.eq.f32.partialorder %v5889_v6, 0.0  ;;  %v5938_v31 = vld [vmem:[#allocation49_spill] sm:$0xff]  ;;  %v5939_v49 = vld [vmem:[#allocation51_spill] sm:$0xff] }
  0xe5   :  { %v707_v53 = vsel %vm5933_vm1, 1.0, %v5931_v33  ;;  %v709_v58 = vsel %vm5937_vm13, 1.0, %v5936_v62  ;;  %v710_v17 = vsel %vm662_vm7, 1.0, %v5938_v31  ;;  %v711_v33 = vsel %vm663_vm0, 1.0, %v5939_v49  ;;  %v5940_v27 = vld [vmem:[#allocation15_spill] sm:$0xff]  ;;  %v5941_v61 = vld [vmem:[#allocation16_spill] sm:$0xff] }
  0xe6   :  { %v712_v34 = vsel %vm664_vm5, 1.0, %v5940_v27  ;;  %vm5942_vm4 = vcmp.eq.f32.partialorder %v5672_v37, 0.0  ;;  %v5943_v62 = vld [vmem:[#allocation17_spill] sm:$0xff]  ;;  %v3717_v31 = vsel %vm667_vm9, 1.0, %v5944_v59  ;;  %v5947_v27 = vld [vmem:[#allocation24_spill] sm:$0xff]  ;;  %vm5951_vm5 = vcmp.eq.f32.partialorder %v5897_v43, 0.0 }
  0xe7   :  { %v3707_v46 = vsel %vm5942_vm4, 1.0, %v5941_v61  ;;  %v3712_v42 = vsel %vm666_vm8, 1.0, %v5943_v62  ;;  %v5948_v6 = vld [vmem:[#allocation57_spill] sm:$0xff]  ;;  %v5950_v61 = vld [vmem:[#allocation67_spill] sm:$0xff]  ;;  %vm5953_vm7 = vcmp.eq.f32.partialorder %v5725_v55, 0.0  ;;  %vm5955_vm8 = vcmp.eq.f32.partialorder %v5738_v47, 0.0 }
  0xe8   :  { %vm5949_vm0 = vcmp.eq.f32.partialorder %v5948_v6, 0.0  ;;  %v3732_v28 = vsel %vm5951_vm5, 1.0, %v5950_v61  ;;  %v5952_v62 = vld [vmem:[#allocation71_spill] sm:$0xff]  ;;  %v5954_v59 = vld [vmem:[#allocation73_spill] sm:$0xff]  ;;  %v5956_v49 = vld [vmem:[#allocation76_spill] sm:$0xff]  ;;  %vm5959_vm9 = vcmp.eq.f32.partialorder %v5743_v14, 0.0  ;;  %1934 = vlog2.f32 %v701_v3 }
  0xe9   :  { %v3727_v37 = vsel %vm5949_vm0, 1.0, %v5947_v27  ;;  %v3737_v60 = vsel %vm5953_vm7, 1.0, %v5952_v62  ;;  %v3742_v12 = vsel %vm5955_vm8, 1.0, %v5954_v59  ;;  %v3747_v6 = vsel %vm5957_vm15, 1.0, %v5956_v49  ;;  %v5958_v27 = vld [vmem:[#allocation26_spill] sm:$0xff]  ;;  %v5960_v61 = vld [vmem:[#allocation80_spill] sm:$0xff] }
  0xea   :  { %v3752_v43 = vsel %vm5959_vm9, 1.0, %v5958_v27  ;;  %vm5961_vm1 = vcmp.eq.f32.partialorder %v5745_v26, 0.0  ;;  %v5962_v62 = vld [vmem:[#allocation28_spill] sm:$0xff]  ;;  %vm5963_vm12 = vcmp.eq.f32.partialorder %v5747_v8, 0.0  ;;  %v5964_v59 = vld [vmem:[#allocation82_spill] sm:$0xff]  ;;  %vm5965_vm13 = vcmp.eq.f32.partialorder %v5749_v32, 0.0 }
  0xeb   :  { %v3757_v55 = vsel %vm5961_vm1, 1.0, %v5960_v61  ;;  %v3762_v47 = vsel %vm5963_vm12, 1.0, %v5962_v62  ;;  %v3767_v48 = vsel %vm5965_vm13, 1.0, %v5964_v59  ;;  %v5966_v49 = vld [vmem:[#allocation32_spill] sm:$0xff]  ;;  %vm5967_vm4 = vcmp.eq.f32.partialorder %v2422_v57, 0.0  ;;  %v5968_v27 = vld [vmem:[#allocation34_spill] sm:$0xff] }
  0xec   :  { %v3772_v14 = vsel %vm5967_vm4, 1.0, %v5966_v49  ;;  %vm5969_vm0 = vcmp.eq.f32.partialorder %v5753_v11, 0.0  ;;  %v5970_v61 = vld [vmem:[#allocation38_spill] sm:$0xff]  ;;  %vm5971_vm5 = vcmp.eq.f32.partialorder %v5760_v56, 0.0  ;;  %v5972_v62 = vld [vmem:[#allocation40_spill] sm:$0xff]  ;;  %vm5973_vm7 = vcmp.eq.f32.partialorder %v5762_v18, 0.0 }
  0xed   :  { %v3777_v26 = vsel %vm5969_vm0, 1.0, %v5968_v27  ;;  %v3782_v8 = vsel %vm5971_vm5, 1.0, %v5970_v61  ;;  %v3787_v32 = vsel %vm5973_vm7, 1.0, %v5972_v62  ;;  %v5974_v59 = vld [vmem:[#allocation86_spill] sm:$0xff]  ;;  %vm5975_vm8 = vcmp.eq.f32.partialorder %v5768_v1, 0.0  ;;  %v5976_v49 = vld [vmem:[#allocation52_spill] sm:$0xff] }
  0xee   :  { %v3792_v57 = vsel %vm5975_vm8, 1.0, %v5974_v59  ;;  %vm5977_vm15 = vcmp.eq.f32.partialorder %v5796_v45, 0.0  ;;  %1936 = vlog2.f32 %v702_v51  ;;  %v5979_v56 = vld [vmem:[#allocation54_spill] sm:$0xff]  ;;  %vm5980_vm9 = vcmp.eq.f32.partialorder %v5807_v50, 0.0  ;;  %v5985_v61 = vld [vmem:[#allocation95_spill] sm:$0xff]  ;;  %v5988_v45 = vld [vmem:[#allocation96_spill] sm:$0xff] }
  0xef   :  { %v3797_v11 = vsel %vm5977_vm15, 1.0, %v5976_v49  ;;  %v3802_v3 = vsel %vm5980_vm9, 1.0, %v5979_v56  ;;  %v5982_v27 = vld [vmem:[#allocation94_spill] sm:$0xff]  ;;  %vm5983_vm1 = vcmp.eq.f32.partialorder %v5827_v19, 0.0  ;;  %vm5986_vm12 = vcmp.eq.f32.partialorder %v5581_v24, 0.0  ;;  %v5991_v62 = vld [vmem:[#allocation97_spill] sm:$0xff] }
  0xf0   :  { %5978 = vst [vmem:[#allocation99_spill] sm:$0xff] %v3797_v11  ;;  %5981 = vst [vmem:[#allocation58_spill] sm:$0xff] %v3802_v3  ;;  %v3807_v18 = vsel %vm5983_vm1, 1.0, %v5982_v27  ;;  %v3812_v1 = vsel %vm5986_vm12, 1.0, %v5985_v61  ;;  %1938 = vlog2.f32 %v703_v9  ;;  %vm5989_vm13 = vcmp.eq.f32.partialorder %v5583_v30, 0.0  ;;  %v5994_v59 = vld [vmem:[#allocation56_spill] sm:$0xff] }
  0xf1   :  { %5984 = vst [vmem:[#allocation60_spill] sm:$0xff] %v3807_v18  ;;  %5987 = vst [vmem:[#allocation100_spill] sm:$0xff] %v3812_v1  ;;  %v3817_v51 = vsel %vm5989_vm13, 1.0, %v5988_v45  ;;  %vm5992_vm4 = vcmp.eq.f32.partialorder %v5584_v10, 0.0  ;;  %v3827_v19 = vsel %vm689_vm3, 1.0, %v5994_v59  ;;  %1940 = vlog2.f32 %v704_v20  ;;  %v5995_v24 = vld [vmem:[#allocation35_spill] sm:$0xff] }
  0xf2   :  { %5990 = vst [vmem:[#allocation62_spill] sm:$0xff] %v3817_v51  ;;  %v3822_v50 = vsel %vm5992_vm4, 1.0, %v5991_v62  ;;  %vm5996_vm0 = vcmp.eq.f32.partialorder %v5846_v52, 0.0  ;;  %v3837_v30 = vsel %vm691_vm11, 1.0, %v3579_v35  ;;  %vm5998_vm5 = vcmp.eq.f32.partialorder %v5851_v36, 0.0  ;;  %v6012_v35 = vld [vmem:[#allocation98_spill] sm:$0xff] }
  0xf3   :  { %5993 = vst [vmem:[#allocation64_spill] sm:$0xff] %v3822_v50  ;;  %v3832_v9 = vsel %vm5996_vm0, 1.0, %v5995_v24  ;;  %5997 = vst [vmem:[#allocation66_spill] sm:$0xff] %v3837_v30  ;;  %v3842_v10 = vsel %vm5998_vm5, 1.0, %v3585_v38  ;;  %1942 = vlog2.f32 %v705_v15  ;;  %vm6000_vm3 = vcmp.eq.f32.partialorder %v5853_v41, 0.0  ;;  %v6022_v20 = vld [vmem:[#allocation113_spill] sm:$0xff]  ;;  %v1935_v24 = vpop.eup %1934 }
  0xf4   :  { %5999 = vst [vmem:[#allocation53_spill] sm:$0xff] %v3842_v10  ;;  %v3847_v16 = vsel %vm6000_vm3, 1.0, %v3591_v63  ;;  %vm6002_vm7 = vcmp.eq.f32.partialorder %v5856_v44, 0.0  ;;  %vm6004_vm11 = vcmp.eq.f32.partialorder %v5858_v2, 0.0  ;;  %1944 = vlog2.f32 %v706_v54  ;;  %v6025_v54 = vld [vmem:[#allocation114_spill] sm:$0xff]  ;;  %v6027_v49 = vld [vmem:[#allocation103_spill] sm:$0xff] }
  0xf5   :  { %6001 = vst [vmem:[#allocation68_spill] sm:$0xff] %v3847_v16  ;;  %v3852_v52 = vsel %vm6002_vm7, 1.0, %v3603_v4  ;;  %v3857_v23 = vsel %vm6004_vm11, 1.0, %v3609_v13  ;;  %v3862_v36 = vsel %vm696_vm6, 1.0, %v3619_v39  ;;  %v3867_v41 = vsel %vm697_vm10, 1.0, %v3625_v22  ;;  %v6016_v4 = vld [vmem:[#allocation111_spill] sm:$0xff] }
  0xf6   :  { %6003 = vst [vmem:[#allocation70_spill] sm:$0xff] %v3852_v52  ;;  %6005 = vst [vmem:[#allocation72_spill] sm:$0xff] %v3857_v23  ;;  %vm6008_vm8 = vcmp.eq.f32.partialorder %v5875_v40, 0.0  ;;  %1946 = vlog2.f32 %v707_v53  ;;  %v3877_v63 = vsel %vm699_vm14, 1.0, %v3643_v0  ;;  %v3882_v38 = vsel %vm700_vm2, 1.0, %v6012_v35  ;;  %v6018_v40 = vld [vmem:[#allocation89_spill] sm:$0xff] }
  0xf7   :  { %6006 = vst [vmem:[#allocation59_spill] sm:$0xff] %v3862_v36  ;;  %6007 = vst [vmem:[#allocation74_spill] sm:$0xff] %v3867_v41  ;;  %v3872_v44 = vsel %vm6008_vm8, 1.0, %v3634_v7  ;;  %1948 = vlog2.f32 %v708_v5  ;;  %v3886_v13 = vadd.f32 %v6016_v4, %v6015_v29  ;;  %v6019_v39 = vld [vmem:[#allocation112_spill] sm:$0xff]  ;;  %v6021_v7 = vld [vmem:[#allocation90_spill] sm:$0xff] }
  0xf8   :  { %6009 = vst [vmem:[#allocation75_spill] sm:$0xff] %v3872_v44  ;;  %6011 = vst [vmem:[#allocation77_spill] sm:$0xff] %v3877_v63  ;;  %1950 = vlog2.f32 %v709_v58  ;;  %v3890_v22 = vadd.f32 %v6019_v39, %v6018_v40  ;;  %v3894_v15 = vadd.f32 %v6022_v20, %v6021_v7  ;;  %v6024_v0 = vld [vmem:[#allocation91_spill] sm:$0xff]  ;;  %v6029_v27 = vld [vmem:[#allocation104_spill] sm:$0xff]  ;;  %v1937_v52 = vpop.eup %1936 }
  0xf9   :  { %6014 = vst [vmem:[#allocation79_spill] sm:$0xff] %v3882_v38  ;;  %6017 = vst [vmem:[#allocation81_spill] sm:$0xff] %v3886_v13  ;;  %v3898_v53 = vadd.f32 %v6025_v54, %v6024_v0  ;;  %1952 = vlog2.f32 %v710_v17  ;;  %v6028_v5 = vld [vmem:[#allocation115_spill] sm:$0xff]  ;;  %v6031_v58 = vld [vmem:[#allocation105_spill] sm:$0xff] }
  0xfa   :  { %6020 = vst [vmem:[#allocation83_spill] sm:$0xff] %v3890_v22  ;;  %6023 = vst [vmem:[#allocation85_spill] sm:$0xff] %v3894_v15  ;;  %v897_v56 = vadd.f32 %v6028_v5, %v6027_v49  ;;  %v6030_v61 = vld [vmem:[#allocation63_spill] sm:$0xff]  ;;  %v6032_v62 = vld [vmem:[#allocation65_spill] sm:$0xff]  ;;  %1954 = vlog2.f32 %v711_v33 }
  0xfb   :  { %6026 = vst [vmem:[#allocation25_spill] sm:$0xff] %v3898_v53  ;;  %v898_v45 = vadd.f32 %v6030_v61, %v6029_v27  ;;  %v3906_v59 = vadd.f32 %v6032_v62, %v6031_v58  ;;  %v6034_v2 = vld [vmem:[#allocation31_spill] sm:$0xff]  ;;  %v6035_v35 = vld [vmem:[#allocation69_spill] sm:$0xff]  ;;  %v6038_v0 = vld [vmem:[#allocation78_spill] sm:$0xff]  ;;  %1956 = vlog2.f32 %v712_v34 }
  0xfc   :  { %v3910_v25 = vadd.f32 %v6035_v35, %v6034_v2  ;;  %v6037_v7 = vld [vmem:[#allocation9_spill] sm:$0xff]  ;;  %v6040_v17 = vld [vmem:[#allocation107_spill] sm:$0xff]  ;;  %v6041_v23 = vld [vmem:[#allocation42_spill] sm:$0xff]  ;;  %1958 = vlog2.f32 %v3707_v46 }
  0xfd   :  { %6033 = vst [vmem:[#allocation27_spill] sm:$0xff] %v3906_v59  ;;  %v3914_v36 = vadd.f32 %v6038_v0, %v6037_v7  ;;  %v3918_v49 = vadd.f32 %v6041_v23, %v6040_v17  ;;  %v6042_v27 = vld [vmem:[#allocation10_spill] sm:$0xff]  ;;  %v6045_v59 = vld [vmem:[#allocation11_spill] sm:$0xff]  ;;  %v6046_v33 = vld [vmem:[#allocation36_spill] sm:$0xff]  ;;  %v1939_v7 = vpop.eup %1938  ;;  %1960 = vlog2.f32 %v3712_v42 }
  0xfe   :  { %6036 = vst [vmem:[#allocation29_spill] sm:$0xff] %v3910_v25  ;;  %v6043_v16 = vld [vmem:[#allocation30_spill] sm:$0xff]  ;;  %v3926_v50 = vadd.f32 %v6046_v33, %v6045_v59  ;;  %v6048_v2 = vld [vmem:[#allocation108_spill] sm:$0xff]  ;;  %v6050_v29 = vld [vmem:[#allocation109_spill] sm:$0xff]  ;;  %v1941_v59 = vpop.eup %1940  ;;  %1962 = vlog2.f32 %v3717_v31 }
  0xff   :  { %6039 = vst [vmem:[#allocation8_spill] sm:$0xff] %v3914_v36  ;;  %v3922_v58 = vadd.f32 %v6043_v16, %v6042_v27  ;;  %v6049_v25 = vld [vmem:[#allocation44_spill] sm:$0xff]  ;;  %v6051_v17 = vld [vmem:[#allocation46_spill] sm:$0xff]  ;;  %v6052_v34 = vld [vmem:[#allocation21_spill] sm:$0xff]  ;;  %v1025_v27 = vadd.f32 %v3918_v49, %v3886_v13  ;;  %v1943_v3 = vpop.eup %1942  ;;  %1964 = vlog2.f32 %v3722_v21 }
 0x100   :  { %6047 = vst [vmem:[#allocation33_spill] sm:$0xff] %v3926_v50  ;;  %v3930_v40 = vadd.f32 %v6049_v25, %v6048_v2  ;;  %v3935_v51 = vadd.f32 %v6051_v17, %v6050_v29  ;;  %v6053_v38 = vld [vmem:[#allocation118_spill] sm:$0xff]  ;;  %v6056_v2 = vld [vmem:[#allocation84_spill] sm:$0xff]  ;;  %v6059_v46 = vld [vmem:[#allocation119_spill] sm:$0xff]  ;;  %1966 = vlog2.f32 %v3727_v37 }
 0x101   :  { %6044 = vst [vmem:[#allocation12_spill] sm:$0xff] %v3922_v58  ;;  %v3939_v63 = vadd.f32 %v6053_v38, %v6052_v34  ;;  %v6055_v44 = vld [vmem:[#allocation106_spill] sm:$0xff]  ;;  %v6062_v38 = vld [vmem:[#allocation48_spill] sm:$0xff]  ;;  %v6063_v11 = vld [vmem:[#allocation23_spill] sm:$0xff]  ;;  %1968 = vlog2.f32 %v3732_v28  ;;  %v3999_v28 = vadd.f32 %v3922_v58, %v898_v45 }
 0x102   :  { %v3946_v41 = vadd.f32 %v6056_v2, %v6055_v44  ;;  %v6058_v1 = vld [vmem:[#allocation22_spill] sm:$0xff]  ;;  %v1026_v29 = vadd.f32 %v3930_v40, %v3890_v22  ;;  %v6064_v42 = vld [vmem:[#allocation92_spill] sm:$0xff]  ;;  %v1027_v44 = vadd.f32 %v3935_v51, %v3894_v15  ;;  %v6069_v10 = vld [vmem:[#allocation43_spill] sm:$0xff]  ;;  %1970 = vlog2.f32 %v3737_v60 }
 0x103   :  { %6054 = vst [vmem:[#allocation39_spill] sm:$0xff] %v3939_v63  ;;  %v3950_v18 = vadd.f32 %v6059_v46, %v6058_v1  ;;  %v6061_v34 = vld [vmem:[#allocation110_spill] sm:$0xff]  ;;  %v3961_v17 = vadd.f32 %v6064_v42, %v6063_v11  ;;  %v6066_v1 = vld [vmem:[#allocation41_spill] sm:$0xff]  ;;  %v6070_v31 = vld [vmem:[#allocation87_spill] sm:$0xff]  ;;  %1972 = vlog2.f32 %v3742_v12 }
 0x104   :  { %6057 = vst [vmem:[#allocation13_spill] sm:$0xff] %v3946_v41  ;;  %v3957_v13 = vadd.f32 %v6062_v38, %v6061_v34  ;;  %v1945_v41 = vpop.eup %1944  ;;  %v6067_v46 = vld [vmem:[#allocation50_spill] sm:$0xff]  ;;  %v3972_v50 = vadd.f32 %v6070_v31, %v6069_v10  ;;  %v6072_v34 = vld [vmem:[#allocation45_spill] sm:$0xff]  ;;  %v6073_v38 = vld [vmem:[#allocation116_spill] sm:$0xff]  ;;  %v752_v10 = vmul.f32 0.6931472, %v1937_v52  ;;  %v3996_v52 = vadd.f32 %v3914_v36, %v897_v56 }
 0x105   :  { %6060 = vst [vmem:[#allocation37_spill] sm:$0xff] %v3950_v18  ;;  %6065 = vst [vmem:[#allocation14_spill] sm:$0xff] %v3961_v17  ;;  %v3968_v22 = vadd.f32 %v6067_v46, %v6066_v1  ;;  %v3976_v30 = vadd.f32 %v6073_v38, %v6072_v34  ;;  %v1947_v11 = vpop.eup %1946  ;;  %v6075_v42 = vld [vmem:[#allocation61_spill] sm:$0xff]  ;;  %v1029_v1 = vsub.f32 %v1025_v27, %v3939_v63  ;;  %v750_v46 = vmul.f32 0.6931472, %v1935_v24  ;;  %v6078_v37 = vld [vmem:[#allocation19_spill] sm:$0xff] }
 0x106   :  { %6071 = vst [vmem:[#allocation49_spill] sm:$0xff] %v3972_v50  ;;  %v6076_v15 = vld [vmem:[#allocation93_spill] sm:$0xff]  ;;  %v1028_v21 = vadd.f32 %v3957_v13, %v3898_v53  ;;  %v1030_v34 = vsub.f32 %v1026_v29, %v3950_v18  ;;  %v754_v50 = vmul.f32 0.6931472, %v1939_v7  ;;  %6081 = vst [vmem:[#allocation17_spill] sm:$0xff] %v3996_v52  ;;  %1974 = vlog2.f32 %v3747_v6  ;;  %v6112_v18 = vld [vmem:[#allocation58_spill] sm:$0xff] }
 0x107   :  { %6068 = vst [vmem:[#allocation47_spill] sm:$0xff] %v3968_v22  ;;  %6074 = vst [vmem:[#allocation51_spill] sm:$0xff] %v3976_v30  ;;  %v3981_v25 = vadd.f32 %v6076_v15, %v6075_v42  ;;  %v1949_v22 = vpop.eup %1948  ;;  %v6079_v38 = vld [vmem:[#allocation117_spill] sm:$0xff]  ;;  %v1031_v42 = vsub.f32 %v1027_v44, %v3961_v17  ;;  %v756_v15 = vmul.f32 0.6931472, %v1941_v59  ;;  %v4005_v7 = vmax.f32 %v1029_v1, 0.0 }
 0x108   :  { %v1951_v30 = vpop.eup %1950  ;;  %v3991_v31 = vadd.f32 %v6079_v38, %v6078_v37  ;;  %6082 = vst [vmem:[#allocation18_spill] sm:$0xff] %v3999_v28  ;;  %v4001_v24 = vmul.f32 0.6931472, %v1943_v3  ;;  %1976 = vlog2.f32 %v3752_v43  ;;  %v4009_v12 = vadd.f32 %v6016_v4, %v750_v46 }
 0x109   :  { %6077 = vst [vmem:[#allocation15_spill] sm:$0xff] %v3981_v25  ;;  %v1953_v53 = vpop.eup %1952  ;;  %v1032_v60 = vsub.f32 %v1028_v21, %v3981_v25  ;;  %6084 = vst [vmem:[#allocation55_spill] sm:$0xff] %v4005_v7  ;;  %v4012_v56 = vadd.f32 %v6019_v39, %v752_v10  ;;  %v4014_v45 = vmax.f32 %v1030_v34, 0.0  ;;  %v4016_v3 = vmul.f32 0.6931472, %v1945_v41 }
 0x10a   :  { %6080 = vst [vmem:[#allocation16_spill] sm:$0xff] %v3991_v31  ;;  %v1955_v29 = vpop.eup %1954  ;;  %6083 = vst [vmem:[#allocation20_spill] sm:$0xff] %v4001_v24  ;;  %1978 = vlog2.f32 %v3757_v55  ;;  %v4020_v6 = vadd.f32 %v6022_v20, %v754_v50  ;;  %v4022_v44 = vmax.f32 %v1031_v42, 0.0  ;;  %v4026_v43 = vadd.f32 %v6025_v54, %v756_v15 }
 0x10b   :  { %v1957_v27 = vpop.eup %1956  ;;  %6085 = vst [vmem:[#allocation24_spill] sm:$0xff] %v4014_v45  ;;  %6086 = vst [vmem:[#allocation57_spill] sm:$0xff] %v4016_v3  ;;  %1980 = vlog2.f32 %v3762_v47  ;;  %v4030_v4 = vadd.f32 %v3918_v49, %v4009_v12  ;;  %v4034_v41 = vadd.f32 %v3930_v40, %v4012_v56  ;;  %v4036_v39 = vmul.f32 0.6931472, %v1947_v11 }
 0x10c   :  { %v1959_v59 = vpop.eup %1958  ;;  %6087 = vst [vmem:[#allocation67_spill] sm:$0xff] %v4022_v44  ;;  %v766_v50 = vmul.f32 0.6931472, %v1951_v30  ;;  %1982 = vlog2.f32 %v3767_v48  ;;  %v873_v47 = vadd.f32 %v6028_v5, %v4001_v24  ;;  %v768_v15 = vmul.f32 0.6931472, %v1953_v53  ;;  %v6139_v44 = vld [vmem:[#allocation64_spill] sm:$0xff] }
 0x10d   :  { %v1961_v21 = vpop.eup %1960  ;;  %6088 = vst [vmem:[#allocation71_spill] sm:$0xff] %v4030_v4  ;;  %6089 = vst [vmem:[#allocation73_spill] sm:$0xff] %v4034_v41  ;;  %v770_v54 = vmul.f32 0.6931472, %v1955_v29  ;;  %1984 = vlog2.f32 %v3772_v14  ;;  %v4044_v46 = vadd.f32 %v3935_v51, %v4020_v6  ;;  %v4046_v1 = vmul.f32 0.6931472, %v1949_v22 }
 0x10e   :  { %v1963_v55 = vpop.eup %1962  ;;  %6090 = vst [vmem:[#allocation76_spill] sm:$0xff] %v4036_v39  ;;  %v772_v11 = vmul.f32 0.6931472, %v1957_v27  ;;  %1986 = vlog2.f32 %v3777_v26  ;;  %v874_v48 = vadd.f32 %v6030_v61, %v4016_v3  ;;  %v4051_v5 = vmul.f32 0.6931472, %v1959_v59 }
 0x10f   :  { %v1965_v20 = vpop.eup %1964  ;;  %6091 = vst [vmem:[#allocation26_spill] sm:$0xff] %v4044_v46  ;;  %6092 = vst [vmem:[#allocation80_spill] sm:$0xff] %v4046_v1  ;;  %v4053_v53 = vmul.f32 0.6931472, %v1961_v21  ;;  %1988 = vlog2.f32 %v3782_v8  ;;  %v4058_v14 = vadd.f32 %v3957_v13, %v4026_v43  ;;  %v875_v26 = vadd.f32 %v6032_v62, %v4036_v39 }
 0x110   :  { %v1967_v42 = vpop.eup %1966  ;;  %1990 = vlog2.f32 %v3787_v32  ;;  %v877_v22 = vadd.f32 %v6038_v0, %v766_v50  ;;  %v4064_v61 = vmax.f32 %v1032_v60, 0.0  ;;  %v4066_v37 = vmul.f32 0.6931472, %v1963_v55 }
 0x111   :  { %v1969_v30 = vpop.eup %1968  ;;  %6093 = vst [vmem:[#allocation28_spill] sm:$0xff] %v4058_v14  ;;  %1992 = vlog2.f32 %v3792_v57  ;;  %v878_v8 = vadd.f32 %v6043_v16, %v768_v15  ;;  %v879_v29 = vadd.f32 %v6046_v33, %v770_v54  ;;  %v4071_v59 = vmul.f32 0.6931472, %v1965_v20  ;;  %v6096_v16 = vld [vmem:[#allocation44_spill] sm:$0xff]  ;;  %v6103_v20 = vld [vmem:[#allocation53_spill] sm:$0xff] }
 0x112   :  { %v1971_v10 = vpop.eup %1970  ;;  %6094 = vst [vmem:[#allocation82_spill] sm:$0xff] %v4064_v61  ;;  %1994 = vlog2.f32 %v3827_v19  ;;  %v4076_v32 = vadd.f32 %v6035_v35, %v4046_v1  ;;  %v880_v62 = vadd.f32 %v6056_v2, %v772_v11  ;;  %v881_v57 = vadd.f32 %v6041_v23, %v4051_v5  ;;  %v6098_v19 = vld [vmem:[#allocation66_spill] sm:$0xff]  ;;  %v6101_v2 = vld [vmem:[#allocation33_spill] sm:$0xff] }
 0x113   :  { %v1973_v34 = vpop.eup %1972  ;;  %1996 = vlog2.f32 %v3832_v9  ;;  %v882_v33 = vadd.f32 %v6096_v16, %v4053_v53  ;;  %v4085_v60 = vadd.f32 %v3914_v36, %v873_v47  ;;  %v4088_v55 = vadd.f32 %v877_v22, %v873_v47  ;;  %v6104_v23 = vld [vmem:[#allocation46_spill] sm:$0xff]  ;;  %v6108_v47 = vld [vmem:[#allocation99_spill] sm:$0xff]  ;;  %v6109_v22 = vld [vmem:[#allocation48_spill] sm:$0xff] }
 0x114   :  { %v1975_v27 = vpop.eup %1974  ;;  %6095 = vst [vmem:[#allocation32_spill] sm:$0xff] %v4076_v32  ;;  %1998 = vlog2.f32 %v6098_v19  ;;  %v4091_v35 = vadd.f32 %v3922_v58, %v874_v48  ;;  %v4094_v50 = vadd.f32 %v6101_v2, %v875_v26  ;;  %v883_v15 = vadd.f32 %v6104_v23, %v4066_v37 }
 0x115   :  { %v1977_v0 = vpop.eup %1976  ;;  %6097 = vst [vmem:[#allocation34_spill] sm:$0xff] %v4085_v60  ;;  %6099 = vst [vmem:[#allocation38_spill] sm:$0xff] %v4088_v55  ;;  %2000 = vlog2.f32 %v6103_v20  ;;  %v4099_v54 = vadd.f32 %v878_v8, %v874_v48  ;;  %v4101_v11 = vadd.f32 %v879_v29, %v875_v26  ;;  %v4103_v19 = vmul.f32 0.6931472, %v1967_v42 }
 0x116   :  { %v1979_v21 = vpop.eup %1978  ;;  %6100 = vst [vmem:[#allocation40_spill] sm:$0xff] %v4091_v35  ;;  %6102 = vst [vmem:[#allocation86_spill] sm:$0xff] %v4094_v50  ;;  %2002 = vlog2.f32 %v6108_v47  ;;  %v884_v25 = vadd.f32 %v6109_v22, %v4071_v59  ;;  %v4109_v17 = vadd.f32 %v880_v62, %v4076_v32  ;;  %v4111_v20 = vmul.f32 0.6931472, %v1969_v30  ;;  %v6116_v62 = vld [vmem:[#allocation60_spill] sm:$0xff]  ;;  %v6127_v35 = vld [vmem:[#allocation77_spill] sm:$0xff] }
 0x117   :  { %v1981_v9 = vpop.eup %1980  ;;  %6105 = vst [vmem:[#allocation52_spill] sm:$0xff] %v4099_v54  ;;  %6106 = vst [vmem:[#allocation54_spill] sm:$0xff] %v4101_v11  ;;  %2004 = vlog2.f32 %v6112_v18  ;;  %v4115_v48 = vadd.f32 %v881_v57, %v4009_v12  ;;  %v4118_v26 = vadd.f32 %v882_v33, %v4012_v56  ;;  %v4120_v8 = vmul.f32 0.6931472, %v1971_v10  ;;  %v6119_v18 = vld [vmem:[#allocation100_spill] sm:$0xff]  ;;  %v6131_v32 = vld [vmem:[#allocation79_spill] sm:$0xff] }
 0x118   :  { %v1983_v16 = vpop.eup %1982  ;;  %6107 = vst [vmem:[#allocation94_spill] sm:$0xff] %v4103_v19  ;;  %6110 = vst [vmem:[#allocation95_spill] sm:$0xff] %v4109_v17  ;;  %v4122_v29 = vmul.f32 0.6931472, %v1975_v27  ;;  %v4124_v23 = vmul.f32 0.6931472, %v1977_v0  ;;  %2006 = vlog2.f32 %v6116_v62  ;;  %v4133_v12 = vadd.f32 %v883_v15, %v4020_v6 }
 0x119   :  { %v1985_v28 = vpop.eup %1984  ;;  %6111 = vst [vmem:[#allocation96_spill] sm:$0xff] %v4111_v20  ;;  %6113 = vst [vmem:[#allocation97_spill] sm:$0xff] %v4115_v48  ;;  %v4127_v30 = vmul.f32 0.6931472, %v1979_v21  ;;  %v4129_v22 = vmul.f32 0.6931472, %v1981_v9  ;;  %2008 = vlog2.f32 %v6119_v18  ;;  %v4139_v0 = vadd.f32 %v884_v25, %v4026_v43 }
 0x11a   :  { %6114 = vst [vmem:[#allocation56_spill] sm:$0xff] %v4118_v26  ;;  %v1987_v42 = vpop.eup %1986  ;;  %6115 = vst [vmem:[#allocation35_spill] sm:$0xff] %v4120_v8  ;;  %v4135_v52 = vmul.f32 0.6931472, %v1973_v34  ;;  %v798_v10 = vmul.f32 0.6931472, %v1983_v16 }
 0x11b   :  { %v1989_v47 = vpop.eup %1988  ;;  %6117 = vst [vmem:[#allocation101_spill] sm:$0xff] %v4127_v30  ;;  %6118 = vst [vmem:[#allocation98_spill] sm:$0xff] %v4129_v22  ;;  %v6122_v27 = vld [vmem:[#allocation74_spill] sm:$0xff]  ;;  %v800_v63 = vmul.f32 0.6931472, %v1985_v28  ;;  %v6124_v21 = vld [vmem:[#allocation75_spill] sm:$0xff] }
 0x11c   :  { %6120 = vst [vmem:[#allocation102_spill] sm:$0xff] %v4133_v12  ;;  %v1991_v56 = vpop.eup %1990  ;;  %6121 = vst [vmem:[#allocation111_spill] sm:$0xff] %v4135_v52  ;;  %2010 = vlog2.f32 %v6122_v27  ;;  %v6125_v9 = vld [vmem:[#allocation81_spill] sm:$0xff]  ;;  %v6126_v18 = vld [vmem:[#allocation83_spill] sm:$0xff]  ;;  %v802_v54 = vmul.f32 0.6931472, %v1987_v42 }
 0x11d   :  { %6123 = vst [vmem:[#allocation112_spill] sm:$0xff] %v4139_v0  ;;  %v1993_v62 = vpop.eup %1992  ;;  %2012 = vlog2.f32 %v6124_v21  ;;  %v4143_v31 = vadd.f32 %v6125_v9, %v881_v57  ;;  %v4146_v50 = vadd.f32 %v6126_v18, %v882_v33  ;;  %v6128_v34 = vld [vmem:[#allocation118_spill] sm:$0xff]  ;;  %v6129_v43 = vld [vmem:[#allocation119_spill] sm:$0xff]  ;;  %v6130_v28 = vld [vmem:[#allocation85_spill] sm:$0xff]  ;;  %v804_v39 = vmul.f32 0.6931472, %v1989_v47 }
 0x11e   :  { %v1995_v6 = vpop.eup %1994  ;;  %2014 = vlog2.f32 %v6127_v35  ;;  %v4151_v16 = vadd.f32 %v6128_v34, %v4122_v29  ;;  %v4155_v27 = vadd.f32 %v6129_v43, %v4124_v23  ;;  %v4158_v60 = vadd.f32 %v6130_v28, %v883_v15  ;;  %v6132_v33 = vld [vmem:[#allocation92_spill] sm:$0xff]  ;;  %v6133_v35 = vld [vmem:[#allocation93_spill] sm:$0xff]  ;;  %v6134_v43 = vld [vmem:[#allocation62_spill] sm:$0xff] }
 0x11f   :  { %v1997_v21 = vpop.eup %1996  ;;  %v4160_v57 = vmul.f32 0.6931472, %v1995_v6  ;;  %2016 = vlog2.f32 %v6131_v32  ;;  %v4165_v17 = vadd.f32 %v6132_v33, %v4127_v30  ;;  %v4169_v34 = vadd.f32 %v6133_v35, %v4129_v22  ;;  %v6135_v15 = vld [vmem:[#allocation88_spill] sm:$0xff]  ;;  %v6136_v32 = vld [vmem:[#allocation89_spill] sm:$0xff]  ;;  %v6140_v47 = vld [vmem:[#allocation107_spill] sm:$0xff] }
 0x120   :  { %v1999_v11 = vpop.eup %1998  ;;  %2018 = vlog2.f32 %v6134_v43  ;;  %v4172_v1 = vmul.f32 0.6931472, %v1997_v21  ;;  %v845_v55 = vadd.f32 %v6135_v15, %v798_v10  ;;  %v846_v3 = vadd.f32 %v6136_v32, %v800_v63  ;;  %v6137_v33 = vld [vmem:[#allocation25_spill] sm:$0xff]  ;;  %v2174_v15 = vld [vmem:[#allocation2 + $0x10] sm:$0xff]  ;;  %v6142_v32 = vld [vmem:[#allocation108_spill] sm:$0xff] }
 0x121   :  { %v2001_v6 = vpop.eup %2000  ;;  %v4175_v61 = vmul.f32 0.6931472, %v1999_v11  ;;  %v4179_v24 = vadd.f32 %v6137_v33, %v884_v25  ;;  %v4181_v35 = vmul.f32 0.6931472, %v1991_v56  ;;  %2020 = vlog2.f32 %v6139_v44  ;;  %v6144_v63 = vld [vmem:[#allocation68_spill] sm:$0xff]  ;;  %v2175_v25 = vld [vmem:[#allocation2 + $0x18] sm:$0xff] }
 0x122   :  { %v2003_v2 = vpop.eup %2002  ;;  %v4184_v42 = vmul.f32 0.6931472, %v2001_v6  ;;  %v4190_v11 = vadd.f32 %v6140_v47, %v4160_v57  ;;  %v4198_v43 = vmul.f32 0.6931472, %v1993_v62  ;;  %v847_v6 = vadd.f32 %v2174_v15, %v802_v54  ;;  %v6145_v56 = vld [vmem:[#allocation109_spill] sm:$0xff] }
 0x123   :  { %6138 = vst [vmem:[#allocation90_spill] sm:$0xff] %v4181_v35  ;;  %v2005_v10 = vpop.eup %2004  ;;  %v4202_v21 = vadd.f32 %v6142_v32, %v4172_v1  ;;  %v4205_v47 = vadd.f32 %v3918_v49, %v845_v55  ;;  %2022 = vlog2.f32 %v6144_v63  ;;  %v848_v36 = vadd.f32 %v2175_v25, %v804_v39  ;;  %v6148_v32 = vld [vmem:[#allocation70_spill] sm:$0xff]  ;;  %v6149_v49 = vld [vmem:[#allocation103_spill] sm:$0xff] }
 0x124   :  { %v2007_v44 = vpop.eup %2006  ;;  %6141 = vst [vmem:[#allocation113_spill] sm:$0xff] %v4198_v43  ;;  %v4212_v45 = vadd.f32 %v6145_v56, %v4175_v61  ;;  %v4215_v62 = vadd.f32 %v3930_v40, %v846_v3  ;;  %v4217_v15 = vmul.f32 0.6931472, %v2003_v2  ;;  %2024 = vlog2.f32 %v6148_v32  ;;  %v6151_v63 = vld [vmem:[#allocation110_spill] sm:$0xff]  ;;  %v6152_v56 = vld [vmem:[#allocation72_spill] sm:$0xff] }
 0x125   :  { %6143 = vst [vmem:[#allocation91_spill] sm:$0xff] %v4205_v47  ;;  %v4207_v58 = vpop.eup %2008  ;;  %v4222_v7 = vadd.f32 %v6149_v49, %v4181_v35  ;;  %v860_v38 = vadd.f32 %v6151_v63, %v4184_v42  ;;  %v4226_v25 = vmul.f32 0.6931472, %v2005_v10  ;;  %2026 = vlog2.f32 %v6152_v56  ;;  %v6155_v49 = vld [vmem:[#allocation104_spill] sm:$0xff] }
 0x126   :  { %6146 = vst [vmem:[#allocation114_spill] sm:$0xff] %v4215_v62  ;;  %v2011_v54 = vpop.eup %2010  ;;  %6147 = vst [vmem:[#allocation115_spill] sm:$0xff] %v4217_v15  ;;  %v4232_v40 = vadd.f32 %v4190_v11, %v845_v55  ;;  %v4234_v8 = vmul.f32 0.6931472, %v2007_v44  ;;  %v4240_v35 = vadd.f32 %v6155_v49, %v4198_v43  ;;  %v4243_v63 = vadd.f32 %v4202_v21, %v846_v3  ;;  %v6163_v49 = vld [vmem:[#allocation22_spill] sm:$0xff] }
 0x127   :  { %6150 = vst [vmem:[#allocation63_spill] sm:$0xff] %v4222_v7  ;;  %v2013_v39 = vpop.eup %2012  ;;  %v4229_v52 = vmul.f32 0.6931472, %v2011_v54  ;;  %v6159_v54 = vld [vmem:[#allocation21_spill] sm:$0xff]  ;;  %v4252_v55 = vadd.f32 %v4212_v45, %v847_v6  ;;  %v4255_v44 = vadd.f32 %v3935_v51, %v847_v6  ;;  %v4263_v43 = vadd.f32 %v860_v38, %v848_v36 }
 0x128   :  { %6153 = vst [vmem:[#allocation105_spill] sm:$0xff] %v4232_v40  ;;  %v2015_v2 = vpop.eup %2014  ;;  %v4236_v32 = vmul.f32 0.6931472, %v2013_v39  ;;  %6156 = vst [vmem:[#allocation31_spill] sm:$0xff] %v4240_v35  ;;  %v6167_v35 = vld [vmem:[#allocation23_spill] sm:$0xff] }
 0x129   :  { %6157 = vst [vmem:[#allocation69_spill] sm:$0xff] %v4243_v63  ;;  %v2017_v10 = vpop.eup %2016  ;;  %v4245_v20 = vmul.f32 0.6931472, %v2015_v2  ;;  %v4249_v56 = vadd.f32 %v6159_v54, %v4229_v52  ;;  %6160 = vst [vmem:[#allocation78_spill] sm:$0xff] %v4252_v55  ;;  %v4266_v2 = vadd.f32 %v3957_v13, %v848_v36  ;;  %v6166_v54 = vld [vmem:[#allocation59_spill] sm:$0xff]  ;;  %v6169_v36 = vld [vmem:[#allocation61_spill] sm:$0xff] }
 0x12a   :  { %6154 = vst [vmem:[#allocation65_spill] sm:$0xff] %v4236_v32  ;;  %6161 = vst [vmem:[#allocation42_spill] sm:$0xff] %v4255_v44  ;;  %v2019_v39 = vpop.eup %2018  ;;  %v4257_v19 = vmul.f32 0.6931472, %v2017_v10  ;;  %v4261_v3 = vadd.f32 %v6163_v49, %v4236_v32  ;;  %2028 = vlog2.f32 %v6166_v54  ;;  %v2176_v49 = vld [vmem:[#allocation2 + $0x30] sm:$0xff] }
 0x12b   :  { %6158 = vst [vmem:[#allocation9_spill] sm:$0xff] %v4245_v20  ;;  %6164 = vst [vmem:[#allocation30_spill] sm:$0xff] %v4263_v43  ;;  %v4271_v7 = vadd.f32 %v6167_v35, %v4245_v20  ;;  %v933_v51 = vsub.f32 %v4232_v40, %v4249_v56  ;;  %v949_v6 = vsub.f32 %v4205_v47, %v4249_v56  ;;  %v2021_v10 = vpop.eup %2020 }
 0x12c   :  { %6162 = vst [vmem:[#allocation10_spill] sm:$0xff] %v4257_v19  ;;  %6165 = vst [vmem:[#allocation11_spill] sm:$0xff] %v4266_v2  ;;  %v4278_v22 = vadd.f32 %v2176_v49, %v4217_v15  ;;  %v4282_v13 = vadd.f32 %v6169_v36, %v4257_v19  ;;  %v934_v54 = vsub.f32 %v4243_v63, %v4261_v3 }
 0x12d   :  { %v950_v35 = vsub.f32 %v4215_v62, %v4261_v3  ;;  %v935_v40 = vsub.f32 %v4252_v55, %v4271_v7  ;;  %v937_v20 = vmax.f32 %v933_v51, 0.0  ;;  %v951_v47 = vsub.f32 %v4255_v44, %v4271_v7  ;;  %v4296_v63 = vpop.eup %2022 }
 0x12e   :  { %6168 = vst [vmem:[#allocation36_spill] sm:$0xff] %v4278_v22  ;;  %v953_v30 = vmax.f32 %v949_v6, 0.0  ;;  %v936_v49 = vsub.f32 %v4263_v43, %v4282_v13  ;;  %v938_v15 = vmax.f32 %v934_v54, 0.0  ;;  %v952_v36 = vsub.f32 %v4266_v2, %v4282_v13  ;;  %v4303_v6 = vpop.eup %2024 }
 0x12f   :  { %v954_v22 = vmax.f32 %v950_v35, 0.0  ;;  %v939_v19 = vmax.f32 %v935_v40, 0.0  ;;  %v955_v62 = vmax.f32 %v951_v47, 0.0  ;;  %v6170_v55 = vsub.f32 %v4115_v48, %v4151_v16  ;;  %v4309_v35 = vpop.eup %2026 }
 0x130   :  { %v981_v44 = vsub.f32 %v4030_v4, %v4151_v16  ;;  %v940_v32 = vmax.f32 %v936_v49, 0.0  ;;  %v956_v43 = vmax.f32 %v952_v36, 0.0  ;;  %v957_v54 = vadd.f32 %v953_v30, %v937_v20  ;;  %6172 = vst [vmem:[#allocation84_spill] sm:$0xff] %v4309_v35  ;;  %v2178_v35 = vld [vmem:[#allocation2 + $0x40] sm:$0xff] }
 0x131   :  { %v969_v51 = vmax.f32 %v6170_v55, 0.0  ;;  %v4307_v2 = vadd.f32 %v6125_v9, %v4190_v11  ;;  %v958_v40 = vadd.f32 %v954_v22, %v938_v15  ;;  %v6173_v47 = vsub.f32 %v4118_v26, %v4155_v27 }
 0x132   :  { %v982_v55 = vsub.f32 %v4034_v41, %v4155_v27  ;;  %v4318_v4 = vadd.f32 %v6126_v18, %v4202_v21  ;;  %v816_v20 = vmul.f32 0.6931472, %v4207_v58  ;;  %v6174_v30 = vsub.f32 %v4133_v12, %v4165_v17 }
 0x133   :  { %6171 = vst [vmem:[#allocation106_spill] sm:$0xff] %v4307_v2  ;;  %v970_v48 = vmax.f32 %v6173_v47, 0.0  ;;  %v6175_v22 = vsub.f32 %v4139_v0, %v4169_v34  ;;  %v983_v49 = vsub.f32 %v4044_v46, %v4165_v17  ;;  %v959_v36 = vadd.f32 %v955_v62, %v939_v19  ;;  %v2177_v46 = vld [vmem:[#allocation2 + $0x38] sm:$0xff] }
 0x134   :  { %v971_v11 = vmax.f32 %v6174_v30, 0.0  ;;  %v984_v47 = vsub.f32 %v4058_v14, %v4169_v34  ;;  %v4333_v21 = vadd.f32 %v6130_v28, %v4212_v45  ;;  %v4336_v58 = vadd.f32 %v6137_v33, %v860_v38  ;;  %v4340_v0 = vpop.eup %2028 }
 0x135   :  { %v972_v15 = vmax.f32 %v6175_v22, 0.0  ;;  %v960_v41 = vadd.f32 %v956_v43, %v940_v32  ;;  %v973_v30 = vadd.f32 %v969_v51, %v957_v54  ;;  %v985_v12 = vmax.f32 %v981_v44, 0.0 }
 0x136   :  { %v997_v22 = vsub.f32 %v4307_v2, %v4249_v56  ;;  %v4343_v19 = vadd.f32 %v2177_v46, %v4226_v25  ;;  %v974_v62 = vadd.f32 %v970_v48, %v958_v40  ;;  %v986_v14 = vmax.f32 %v982_v55, 0.0 }
 0x137   :  { %v998_v45 = vsub.f32 %v4318_v4, %v4261_v3  ;;  %v818_v26 = vmul.f32 0.6931472, %v2019_v39  ;;  %v820_v38 = vmul.f32 0.6931472, %v2021_v10  ;;  %v853_v43 = vadd.f32 %v2178_v35, %v4234_v8 }
 0x138   :  { %v987_v32 = vmax.f32 %v983_v49, 0.0  ;;  %v975_v44 = vadd.f32 %v971_v11, %v959_v36  ;;  %v988_v51 = vmax.f32 %v984_v47, 0.0  ;;  %v999_v54 = vsub.f32 %v4333_v21, %v4271_v7  ;;  %v2179_v11 = vld [vmem:[#allocation2 + $0x48] sm:$0xff] }
 0x139   :  { %v1000_v46 = vsub.f32 %v4336_v58, %v4282_v13  ;;  %v976_v2 = vadd.f32 %v972_v15, %v960_v41  ;;  %v989_v48 = vadd.f32 %v985_v12, %v973_v30  ;;  %v1001_v40 = vmax.f32 %v997_v22, 0.0 }
 0x13a   :  { %v1013_v55 = vsub.f32 %v4143_v31, %v4151_v16  ;;  %v921_v39 = vadd.f32 %v4160_v57, %v4051_v5  ;;  %v990_v10 = vadd.f32 %v986_v14, %v974_v62  ;;  %v1002_v8 = vmax.f32 %v998_v45, 0.0  ;;  %v6177_v62 = vld [vmem:[#allocation65_spill] sm:$0xff] }
 0x13b   :  { %v1014_v35 = vsub.f32 %v4146_v50, %v4155_v27  ;;  %v854_v49 = vadd.f32 %v2179_v11, %v816_v20  ;;  %v922_v36 = vadd.f32 %v4172_v1, %v4053_v53  ;;  %v923_v41 = vadd.f32 %v4175_v61, %v4066_v37 }
 0x13c   :  { %v924_v12 = vadd.f32 %v4184_v42, %v4071_v59  ;;  %v991_v15 = vadd.f32 %v987_v32, %v975_v44  ;;  %v1003_v47 = vmax.f32 %v999_v54, 0.0  ;;  %v1004_v30 = vmax.f32 %v1000_v46, 0.0  ;;  %v2180_v59 = vld [vmem:[#allocation2 + $0x50] sm:$0xff]  ;;  %v6179_v32 = vld [vmem:[#allocation9_spill] sm:$0xff] }
 0x13d   :  { %v1015_v5 = vsub.f32 %v4158_v60, %v4165_v17  ;;  %v992_v14 = vadd.f32 %v988_v51, %v976_v2  ;;  %v1005_v57 = vadd.f32 %v1001_v40, %v989_v48  ;;  %v1016_v20 = vsub.f32 %v4179_v24, %v4169_v34  ;;  %v6178_v2 = vld [vmem:[#allocation101_spill] sm:$0xff] }
 0x13e   :  { %v1017_v22 = vmax.f32 %v1013_v55, 0.0  ;;  %v4370_v1 = vadd.f32 %v4229_v52, %v4122_v29  ;;  %v1006_v53 = vadd.f32 %v1002_v8, %v990_v10  ;;  %v1018_v61 = vmax.f32 %v1014_v35, 0.0  ;;  %v6181_v52 = vld [vmem:[#allocation98_spill] sm:$0xff]  ;;  %v6185_v35 = vld [vmem:[#allocation63_spill] sm:$0xff] }
 0x13f   :  { %v4373_v37 = vadd.f32 %v921_v39, %v6125_v9  ;;  %v855_v42 = vadd.f32 %v2180_v59, %v818_v26  ;;  %v4377_v45 = vadd.f32 %v6177_v62, %v4124_v23  ;;  %v4381_v44 = vadd.f32 %v6179_v32, %v6178_v2  ;;  %v6182_v29 = vld [vmem:[#allocation10_spill] sm:$0xff]  ;;  %v2181_v39 = vld [vmem:[#allocation2 + $0x58] sm:$0xff]  ;;  %v6196_v59 = vld [vmem:[#allocation117_spill] sm:$0xff] }
 0x140   :  { %v4384_v51 = vadd.f32 %v922_v36, %v6126_v18  ;;  %v4388_v54 = vadd.f32 %v6182_v29, %v6181_v52  ;;  %v1007_v46 = vadd.f32 %v1003_v47, %v991_v15  ;;  %v1019_v9 = vmax.f32 %v1015_v5, 0.0  ;;  %v6186_v36 = vld [vmem:[#allocation94_spill] sm:$0xff]  ;;  %v6191_v5 = vld [vmem:[#allocation35_spill] sm:$0xff]  ;;  %v6198_v29 = vld [vmem:[#allocation24_spill] sm:$0xff] }
 0x141   :  { %6176 = vst [vmem:[#allocation41_spill] sm:$0xff] %v4373_v37  ;;  %v4391_v48 = vadd.f32 %v923_v41, %v6130_v28  ;;  %v1008_v26 = vadd.f32 %v1004_v30, %v992_v14  ;;  %v1020_v40 = vmax.f32 %v1016_v20, 0.0  ;;  %v1021_v23 = vadd.f32 %v1017_v22, %v1005_v57  ;;  %v6187_v15 = vld [vmem:[#allocation50_spill] sm:$0xff]  ;;  %v6188_v28 = vld [vmem:[#allocation96_spill] sm:$0xff]  ;;  %v6189_v41 = vld [vmem:[#allocation87_spill] sm:$0xff] }
 0x142   :  { %6180 = vst [vmem:[#allocation43_spill] sm:$0xff] %v4384_v51  ;;  %v4394_v55 = vadd.f32 %v924_v12, %v6137_v33  ;;  %v856_v10 = vadd.f32 %v2181_v39, %v820_v38  ;;  %v1022_v8 = vadd.f32 %v1018_v61, %v1006_v53  ;;  %v1045_v18 = vsub.f32 %v4373_v37, %v4370_v1  ;;  %v6190_v12 = vld [vmem:[#allocation31_spill] sm:$0xff]  ;;  %v6192_v14 = vld [vmem:[#allocation116_spill] sm:$0xff] }
 0x143   :  { %6183 = vst [vmem:[#allocation45_spill] sm:$0xff] %v4391_v48  ;;  %v4399_v11 = vadd.f32 %v853_v43, %v6185_v35  ;;  %v4403_v47 = vadd.f32 %v6187_v15, %v6186_v36  ;;  %v4407_v30 = vadd.f32 %v6189_v41, %v6188_v28  ;;  %v1046_v33 = vsub.f32 %v4384_v51, %v4377_v45  ;;  %v6193_v22 = vld [vmem:[#allocation36_spill] sm:$0xff]  ;;  %v6195_v61 = vld [vmem:[#allocation111_spill] sm:$0xff]  ;;  %v6211_v51 = vld [vmem:[#allocation13_spill] sm:$0xff] }
 0x144   :  { %6184 = vst [vmem:[#allocation19_spill] sm:$0xff] %v4394_v55  ;;  %v4412_v38 = vadd.f32 %v854_v49, %v6190_v12  ;;  %v4416_v57 = vadd.f32 %v6192_v14, %v6191_v5  ;;  %v1023_v43 = vadd.f32 %v1019_v9, %v1007_v46  ;;  %v1047_v20 = vsub.f32 %v4391_v48, %v4381_v44  ;;  %v6197_v32 = vld [vmem:[#allocation55_spill] sm:$0xff]  ;;  %v6204_v5 = vld [vmem:[#allocation33_spill] sm:$0xff]  ;;  %v6206_v14 = vld [vmem:[#allocation20_spill] sm:$0xff] }
 0x145   :  { %v4421_v53 = vadd.f32 %v855_v42, %v6193_v22  ;;  %v4425_v62 = vadd.f32 %v6196_v59, %v6195_v61  ;;  %v1024_v2 = vadd.f32 %v1020_v40, %v1008_v26  ;;  %v1037_v52 = vadd.f32 %v6197_v32, %v1021_v23  ;;  %v6199_v26 = vld [vmem:[#allocation8_spill] sm:$0xff]  ;;  %v6207_v61 = vld [vmem:[#allocation90_spill] sm:$0xff]  ;;  %v6209_v32 = vld [vmem:[#allocation113_spill] sm:$0xff] }
 0x146   :  { %v1048_v49 = vsub.f32 %v4394_v55, %v4388_v54  ;;  %v1038_v39 = vadd.f32 %v6198_v29, %v1022_v8  ;;  %v1049_v36 = vmax.f32 %v1045_v18, 0.0  ;;  %v4432_v46 = vadd.f32 %v856_v10, %v4343_v19  ;;  %v6201_v23 = vld [vmem:[#allocation12_spill] sm:$0xff]  ;;  %v6203_v8 = vld [vmem:[#allocation67_spill] sm:$0xff] }
 0x147   :  { %6194 = vst [vmem:[#allocation44_spill] sm:$0xff] %v4421_v53  ;;  %v1061_v42 = vsub.f32 %v4399_v11, %v4249_v56  ;;  %v1050_v9 = vmax.f32 %v1046_v33, 0.0  ;;  %v1062_v15 = vsub.f32 %v4412_v38, %v4261_v3  ;;  %v4440_v40 = vadd.f32 %v6199_v26, %v6185_v35  ;;  %v6208_v35 = vld [vmem:[#allocation57_spill] sm:$0xff] }
 0x148   :  { %v4444_v28 = vadd.f32 %v6201_v23, %v6190_v12  ;;  %v1039_v18 = vadd.f32 %v6203_v8, %v1023_v43  ;;  %v1051_v41 = vmax.f32 %v1047_v20, 0.0  ;;  %v1063_v10 = vsub.f32 %v4421_v53, %v4271_v7  ;;  %v6210_v12 = vld [vmem:[#allocation82_spill] sm:$0xff] }
 0x149   :  { %6200 = vst [vmem:[#allocation66_spill] sm:$0xff] %v4440_v40  ;;  %v4451_v33 = vadd.f32 %v6204_v5, %v6193_v22  ;;  %v4455_v59 = vadd.f32 %v6207_v61, %v6206_v14  ;;  %v4459_v29 = vadd.f32 %v6209_v32, %v6208_v35  ;;  %v1040_v55 = vadd.f32 %v6210_v12, %v1024_v2  ;;  %v6213_v35 = vld [vmem:[#allocation84_spill] sm:$0xff] }
 0x14a   :  { %6202 = vst [vmem:[#allocation53_spill] sm:$0xff] %v4444_v28  ;;  %v1052_v48 = vmax.f32 %v1048_v49, 0.0  ;;  %v1053_v43 = vadd.f32 %v1049_v36, %v1037_v52  ;;  %v1064_v20 = vsub.f32 %v4432_v46, %v4282_v13  ;;  %v1065_v8 = vmax.f32 %v1061_v42, 0.0 }
 0x14b   :  { %6205 = vst [vmem:[#allocation46_spill] sm:$0xff] %v4451_v33  ;;  %v4466_v22 = vadd.f32 %v6211_v51, %v4343_v19  ;;  %v1054_v37 = vadd.f32 %v1050_v9, %v1038_v39  ;;  %v1066_v53 = vmax.f32 %v1062_v15, 0.0  ;;  %v1077_v14 = vsub.f32 %v4440_v40, %v4249_v56  ;;  %v6214_v9 = vld [vmem:[#allocation76_spill] sm:$0xff]  ;;  %v6215_v15 = vld [vmem:[#allocation115_spill] sm:$0xff] }
 0x14c   :  { %v1078_v61 = vsub.f32 %v4444_v28, %v4261_v3  ;;  %v830_v2 = vmul.f32 0.6931472, %v4296_v63  ;;  %v1055_v49 = vadd.f32 %v1051_v41, %v1039_v18  ;;  %v1067_v52 = vmax.f32 %v1063_v10, 0.0 }
 0x14d   :  { %6212 = vst [vmem:[#allocation99_spill] sm:$0xff] %v4466_v22  ;;  %v1079_v36 = vsub.f32 %v4451_v33, %v4271_v7  ;;  %v832_v42 = vmul.f32 0.6931472, %v4303_v6  ;;  %v834_v19 = vmul.f32 0.6931472, %v6213_v35  ;;  %v4480_v32 = vadd.f32 %v6215_v15, %v6214_v9  ;;  %v6216_v7 = vld [vmem:[#allocation38_spill] sm:$0xff] }
 0x14e   :  { %v836_v39 = vmul.f32 0.6931472, %v4340_v0  ;;  %v1056_v56 = vadd.f32 %v1052_v48, %v1040_v55  ;;  %v1068_v12 = vmax.f32 %v1064_v20, 0.0  ;;  %v1069_v3 = vadd.f32 %v1065_v8, %v1053_v43  ;;  %v6217_v33 = vld [vmem:[#allocation80_spill] sm:$0xff]  ;;  %v2183_v20 = vld [vmem:[#allocation2 + $0x88] sm:$0xff]  ;;  %v6219_v8 = vld [vmem:[#allocation54_spill] sm:$0xff] }
 0x14f   :  { %v1080_v63 = vsub.f32 %v4466_v22, %v4282_v13  ;;  %v1070_v18 = vadd.f32 %v1066_v53, %v1054_v37  ;;  %v1081_v41 = vmax.f32 %v1077_v14, 0.0  ;;  %v1082_v10 = vmax.f32 %v1078_v61, 0.0  ;;  %v6218_v9 = vld [vmem:[#allocation52_spill] sm:$0xff]  ;;  %v2184_v37 = vld [vmem:[#allocation2 + $0x90] sm:$0xff]  ;;  %v2185_v61 = vld [vmem:[#allocation2 + $0x98] sm:$0xff] }
 0x150   :  { %v1093_v6 = vsub.f32 %v6216_v7, %v4151_v16  ;;  %v4488_v35 = vadd.f32 %v4226_v25, %v6217_v33  ;;  %v1071_v0 = vadd.f32 %v1067_v52, %v1055_v49  ;;  %v1083_v28 = vmax.f32 %v1079_v36, 0.0  ;;  %v2182_v55 = vld [vmem:[#allocation2 + $0x80] sm:$0xff]  ;;  %v6220_v52 = vld [vmem:[#allocation95_spill] sm:$0xff] }
 0x151   :  { %v1094_v48 = vsub.f32 %v6218_v9, %v4155_v27  ;;  %v4492_v43 = vadd.f32 %v2182_v55, %v830_v2  ;;  %v4494_v13 = vadd.f32 %v2183_v20, %v832_v42  ;;  %v4496_v53 = vadd.f32 %v2184_v37, %v834_v19  ;;  %v6221_v7 = vld [vmem:[#allocation32_spill] sm:$0xff] }
 0x152   :  { %v1095_v14 = vsub.f32 %v6219_v8, %v4165_v17  ;;  %v4500_v25 = vadd.f32 %v2185_v61, %v836_v39  ;;  %v1072_v33 = vadd.f32 %v1068_v12, %v1056_v56  ;;  %v1084_v49 = vmax.f32 %v1080_v63, 0.0  ;;  %v6223_v63 = vld [vmem:[#allocation34_spill] sm:$0xff]  ;;  %v6227_v61 = vld [vmem:[#allocation49_spill] sm:$0xff] }
 0x153   :  { %v1096_v36 = vsub.f32 %v6220_v52, %v4169_v34  ;;  %v1085_v15 = vadd.f32 %v1081_v41, %v1069_v3  ;;  %v1086_v2 = vadd.f32 %v1082_v10, %v1070_v18  ;;  %v1097_v55 = vmax.f32 %v1093_v6, 0.0  ;;  %v6224_v41 = vld [vmem:[#allocation40_spill] sm:$0xff]  ;;  %v6225_v6 = vld [vmem:[#allocation86_spill] sm:$0xff] }
 0x154   :  { %v1153_v42 = vmul.f32 1.442695, %v4403_v47  ;;  %v1087_v20 = vadd.f32 %v1083_v28, %v1071_v0  ;;  %v1098_v9 = vmax.f32 %v1094_v48, 0.0  ;;  %v1155_v19 = vmul.f32 1.442695, %v4407_v30 }
 0x155   :  { %v1157_v37 = vmul.f32 1.442695, %v4416_v57  ;;  %v1099_v8 = vmax.f32 %v1095_v14, 0.0  ;;  %v4509_v39 = vadd.f32 %v6211_v51, %v6221_v7  ;;  %v1159_v56 = vmul.f32 1.442695, %v4425_v62  ;;  %v6226_v7 = vld [vmem:[#allocation47_spill] sm:$0xff] }
 0x156   :  { %2030 = vpow2.f32 %v1153_v42  ;;  %v1088_v12 = vadd.f32 %v1084_v49, %v1072_v33  ;;  %v1100_v3 = vmax.f32 %v1096_v36, 0.0  ;;  %v1109_v18 = vsub.f32 %v6223_v63, %v4151_v16  ;;  %v6228_v16 = vld [vmem:[#allocation51_spill] sm:$0xff] }
 0x157   :  { %6222 = vst [vmem:[#allocation48_spill] sm:$0xff] %v4509_v39  ;;  %2032 = vpow2.f32 %v1155_v19  ;;  %v1101_v28 = vadd.f32 %v1097_v55, %v1085_v15  ;;  %v1110_v10 = vsub.f32 %v6224_v41, %v4155_v27  ;;  %v1111_v0 = vsub.f32 %v6225_v6, %v4165_v17  ;;  %v6229_v15 = vld [vmem:[#allocation16_spill] sm:$0xff]  ;;  %v6230_v27 = vld [vmem:[#allocation27_spill] sm:$0xff]  ;;  %v6236_v6 = vld [vmem:[#allocation18_spill] sm:$0xff] }
 0x158   :  { %2034 = vpow2.f32 %v1157_v37  ;;  %v1102_v48 = vadd.f32 %v1098_v9, %v1086_v2  ;;  %v1229_v14 = vmul.f32 1.442695, %v6226_v7  ;;  %v1231_v42 = vmul.f32 1.442695, %v6227_v61  ;;  %v6231_v9 = vld [vmem:[#allocation29_spill] sm:$0xff]  ;;  %v6232_v37 = vld [vmem:[#allocation39_spill] sm:$0xff] }
 0x159   :  { %2036 = vpow2.f32 %v1159_v56  ;;  %v1103_v33 = vadd.f32 %v1099_v8, %v1087_v20  ;;  %v1112_v49 = vsub.f32 %v4509_v39, %v4169_v34  ;;  %v1233_v36 = vmul.f32 1.442695, %v6228_v16  ;;  %v6233_v56 = vld [vmem:[#allocation17_spill] sm:$0xff] }
 0x15a   :  { %v1235_v55 = vmul.f32 1.442695, %v6229_v15  ;;  %v1113_v19 = vmax.f32 %v1109_v18, 0.0  ;;  %v1123_v41 = vadd.f32 %v6204_v5, %v6230_v27  ;;  %2038 = vpow2.f32 %v1229_v14  ;;  %v6235_v14 = vld [vmem:[#allocation37_spill] sm:$0xff] }
 0x15b   :  { %v1329_v17 = vmul.f32 1.442695, %v4492_v43  ;;  %v1124_v2 = vadd.f32 %v6211_v51, %v6231_v9  ;;  %v1125_v8 = vsub.f32 %v6233_v56, %v6232_v37  ;;  %2040 = vpow2.f32 %v1231_v42  ;;  %v6238_v56 = vld [vmem:[#allocation14_spill] sm:$0xff] }
 0x15c   :  { %v1331_v34 = vmul.f32 1.442695, %v4494_v13  ;;  %v1104_v20 = vadd.f32 %v1100_v3, %v1088_v12  ;;  %v1114_v39 = vmax.f32 %v1110_v10, 0.0  ;;  %v4534_v18 = vadd.f32 %v4455_v59, %v6199_v26  ;;  %v6239_v3 = vld [vmem:[#allocation15_spill] sm:$0xff] }
 0x15d   :  { %2042 = vpow2.f32 %v1233_v36  ;;  %v1115_v27 = vmax.f32 %v1111_v0, 0.0  ;;  %v1126_v63 = vsub.f32 %v6236_v6, %v6235_v14  ;;  %v4540_v9 = vadd.f32 %v4459_v29, %v6201_v23 }
 0x15e   :  { %6234 = vst [vmem:[#allocation58_spill] sm:$0xff] %v4534_v18  ;;  %2044 = vpow2.f32 %v1235_v55  ;;  %v1116_v37 = vmax.f32 %v1112_v49, 0.0  ;;  %v1117_v42 = vadd.f32 %v1113_v19, %v1101_v28  ;;  %v1127_v52 = vsub.f32 %v1123_v41, %v6238_v56 }
 0x15f   :  { %6237 = vst [vmem:[#allocation60_spill] sm:$0xff] %v4540_v9  ;;  %2046 = vpow2.f32 %v1329_v17  ;;  %v1128_v26 = vsub.f32 %v1124_v2, %v6239_v3  ;;  %v1129_v59 = vmax.f32 %v1125_v8, 0.0  ;;  %v4548_v10 = vadd.f32 %v4480_v32, %v6204_v5 }
 0x160   :  { %v4543_v12 = vpop.eup %2030  ;;  %2048 = vpow2.f32 %v1331_v34  ;;  %v4554_v23 = vadd.f32 %v4488_v35, %v6211_v51  ;;  %v1141_v29 = vsub.f32 %v4534_v18, %v4370_v1  ;;  %v1333_v28 = vmul.f32 1.442695, %v4496_v53 }
 0x161   :  { %6240 = vst [vmem:[#allocation100_spill] sm:$0xff] %v4548_v10  ;;  %v4550_v6 = vpop.eup %2032  ;;  %2050 = vlog2.f32 %v4543_v12  ;;  %v1118_v0 = vadd.f32 %v1114_v39, %v1102_v48  ;;  %v1130_v49 = vmax.f32 %v1126_v63, 0.0  ;;  %v1142_v5 = vsub.f32 %v4540_v9, %v4377_v45 }
 0x162   :  { %6241 = vst [vmem:[#allocation74_spill] sm:$0xff] %v4554_v23  ;;  %v4560_v41 = vpop.eup %2034  ;;  %2052 = vlog2.f32 %v4550_v6  ;;  %v1119_v51 = vadd.f32 %v1115_v27, %v1103_v33  ;;  %v1120_v35 = vadd.f32 %v1116_v37, %v1104_v20  ;;  %v1131_v1 = vmax.f32 %v1127_v52, 0.0 }
 0x163   :  { %v4565_v32 = vpop.eup %2036  ;;  %2054 = vlog2.f32 %v4560_v41  ;;  %v1132_v36 = vmax.f32 %v1128_v26, 0.0  ;;  %v1133_v55 = vadd.f32 %v1129_v59, %v1117_v42  ;;  %v1143_v39 = vsub.f32 %v4548_v10, %v4381_v44 }
 0x164   :  { %2056 = vlog2.f32 %v4565_v32  ;;  %v4569_v19 = vpop.eup %2038  ;;  %v1144_v45 = vsub.f32 %v4554_v23, %v4388_v54  ;;  %v1145_v63 = vmax.f32 %v1141_v29, 0.0  ;;  %v1134_v33 = vadd.f32 %v1130_v49, %v1118_v0 }
 0x165   :  { %2058 = vpow2.f32 %v1333_v28  ;;  %v4575_v48 = vpop.eup %2040  ;;  %v1146_v17 = vmax.f32 %v1142_v5, 0.0  ;;  %v1335_v52 = vmul.f32 1.442695, %v4500_v25  ;;  %v4584_v44 = vadd.f32 %v1131_v1, %v1119_v51 }
 0x166   :  { %2060 = vlog2.f32 %v4569_v19  ;;  %v4586_v34 = vadd.f32 %v1132_v36, %v1120_v35  ;;  %v4591_v20 = vmax.f32 %v1143_v39, 0.0  ;;  %v4593_v27 = vmax.f32 %v1144_v45, 0.0 }
 0x167   :  { %v4579_v2 = vpop.eup %2042  ;;  %2062 = vlog2.f32 %v4575_v48  ;;  %v4595_v14 = vadd.f32 %v1145_v63, %v1133_v55  ;;  %v4600_v42 = vadd.f32 %v1146_v17, %v1134_v33  ;;  %vm1161_vm2 = vcmp.eq.f32.partialorder %v4543_v12, 1.0 }
 0x168   :  { %v4582_v8 = vpop.eup %2044  ;;  %2064 = vlog2.f32 %v4579_v2  ;;  %vm1162_vm10 = vcmp.eq.f32.partialorder %v4550_v6, 1.0  ;;  %vm1163_vm6 = vcmp.eq.f32.partialorder %v4560_v41, 1.0  ;;  %vm1164_vm14 = vcmp.eq.f32.partialorder %v4565_v32, 1.0 }
 0x169   :  { %v4589_v54 = vpop.eup %2046  ;;  %2066 = vlog2.f32 %v4582_v8  ;;  %vm1237_vm15 = vcmp.eq.f32.partialorder %v4569_v19, 1.0  ;;  %vm1238_vm9 = vcmp.eq.f32.partialorder %v4575_v48, 1.0  ;;  %vm1239_vm1 = vcmp.eq.f32.partialorder %v4579_v2, 1.0 }
 0x16a   :  { %v4598_v37 = vpop.eup %2048  ;;  %2068 = vpow2.f32 %v1335_v52  ;;  %vm1240_vm12 = vcmp.eq.f32.partialorder %v4582_v8, 1.0  ;;  %vm1201_vm13 = vcmp.eq.f32.partialorder %v4543_v12, 0.0  ;;  %vm5424_vm4 = vcmp.eq.f32.partialorder %v4589_v54, 1.0 }
 0x16b   :  { %v2051_v26 = vpop.eup %2050  ;;  %2070 = vlog2.f32 %v4589_v54  ;;  %vm5425_vm0 = vcmp.eq.f32.partialorder %v4598_v37, 1.0  ;;  %vm1202_vm5 = vcmp.eq.f32.partialorder %v4550_v6, 0.0  ;;  %v1180_v35 = vsub.f32 1.0, %v4565_v32 }
 0x16c   :  { %v2053_v28 = vpop.eup %2052  ;;  %v1166_v0 = vmul.f32 0.6931472, %v2051_v26  ;;  %2072 = vlog2.f32 %v4598_v37  ;;  %vm1203_vm3 = vcmp.eq.f32.partialorder %v4560_v41, 0.0  ;;  %vm1204_vm7 = vcmp.eq.f32.partialorder %v4565_v32, 0.0 }
 0x16d   :  { %v2055_v5 = vpop.eup %2054  ;;  %v1168_v51 = vmul.f32 0.6931472, %v2053_v28  ;;  %vm1277_vm11 = vcmp.eq.f32.partialorder %v4569_v19, 0.0  ;;  %v1255_v29 = vsub.f32 1.0, %v4579_v2  ;;  %vm1278_vm8 = vcmp.eq.f32.partialorder %v4575_v48, 0.0 }
 0x16e   :  { %v2057_v36 = vpop.eup %2056  ;;  %v1170_v55 = vmul.f32 0.6931472, %v2055_v5  ;;  %v1173_v39 = vsel %vm1161_vm2, 1.0, %v1166_v0  ;;  %v1354_v23 = vsub.f32 1.0, %v4598_v37  ;;  %v6242_v18 = vsub.f32 0.0, %v4403_v47 }
 0x16f   :  { %v4618_v63 = vpop.eup %2058  ;;  %v1172_v33 = vmul.f32 0.6931472, %v2057_v36  ;;  %v1174_v17 = vsel %vm1162_vm10, 1.0, %v1168_v51  ;;  %2074 = vrcp.f32 %v1173_v39  ;;  %v1177_v39 = vsub.f32 1.0, %v4543_v12 }
 0x170   :  { %v2061_v26 = vpop.eup %2060  ;;  %v1175_v28 = vsel %vm1163_vm6, 1.0, %v1170_v55  ;;  %2076 = vrcp.f32 %v1174_v17  ;;  %v6243_v40 = vsub.f32 0.0, %v4407_v30  ;;  %v6245_v12 = vsub.f32 0.0, %v4425_v62 }
 0x171   :  { %v2063_v5 = vpop.eup %2062  ;;  %v1176_v45 = vsel %vm1164_vm14, 1.0, %v1172_v33  ;;  %2078 = vrcp.f32 %v1175_v28  ;;  %v1242_v51 = vmul.f32 0.6931472, %v2061_v26 }
 0x172   :  { %v2065_v36 = vpop.eup %2064  ;;  %2080 = vrcp.f32 %v1176_v45  ;;  %v1244_v55 = vmul.f32 0.6931472, %v2063_v5  ;;  %v1178_v5 = vsub.f32 1.0, %v4550_v6 }
 0x173   :  { %v2067_v17 = vpop.eup %2066  ;;  %v1246_v52 = vmul.f32 0.6931472, %v2065_v36  ;;  %v1249_v0 = vsel %vm1237_vm15, 1.0, %v1242_v51  ;;  %2082 = vlog2.f32 %v4618_v63 }
 0x174   :  { %v4636_v33 = vpop.eup %2068  ;;  %v1248_v26 = vmul.f32 0.6931472, %v2067_v17  ;;  %v1250_v45 = vsel %vm1238_vm9, 1.0, %v1244_v55  ;;  %2084 = vrcp.f32 %v1249_v0  ;;  %v1179_v55 = vsub.f32 1.0, %v4560_v41 }
 0x175   :  { %v2071_v28 = vpop.eup %2070  ;;  %v1251_v36 = vsel %vm1239_vm1, 1.0, %v1246_v52  ;;  %2086 = vrcp.f32 %v1250_v45  ;;  %v1253_v45 = vsub.f32 1.0, %v4569_v19 }
 0x176   :  { %v2073_v51 = vpop.eup %2072  ;;  %v1252_v1 = vsel %vm1240_vm12, 1.0, %v1248_v26  ;;  %2088 = vrcp.f32 %v1251_v36  ;;  %v1342_v17 = vmul.f32 0.6931472, %v2071_v28 }
 0x177   :  { %2090 = vrcp.f32 %v1252_v1  ;;  %v1344_v0 = vmul.f32 0.6931472, %v2073_v51  ;;  %v1254_v51 = vsub.f32 1.0, %v4575_v48 }
 0x178   :  { %2092 = vlog2.f32 %v4636_v33  ;;  %v1349_v52 = vsel %vm5424_vm4, 1.0, %v1342_v17  ;;  %vm1339_vm4 = vcmp.eq.f32.partialorder %v4618_v63, 1.0 }
 0x179   :  { %v2075_v26 = vpop.eup %2074  ;;  %v1350_v28 = vsel %vm5425_vm0, 1.0, %v1344_v0  ;;  %2094 = vrcp.f32 %v1349_v52  ;;  %vm1377_vm0 = vcmp.eq.f32.partialorder %v4589_v54, 0.0 }
 0x17a   :  { %v2077_v1 = vpop.eup %2076  ;;  %v1182_v36 = vmul.f32 %v2075_v26, %v4403_v47  ;;  %2096 = vrcp.f32 %v1350_v28  ;;  %v1256_v26 = vsub.f32 1.0, %v4582_v8 }
 0x17b   :  { %v2079_v49 = vpop.eup %2078  ;;  %v1184_v17 = vmul.f32 %v2077_v1, %v4407_v30  ;;  %v1353_v1 = vsub.f32 1.0, %v4589_v54 }
 0x17c   :  { %v2081_v59 = vpop.eup %2080  ;;  %v1186_v0 = vmul.f32 %v2079_v49, %v4416_v57  ;;  %v1189_v52 = vmul.f32 %v1182_v36, %v1177_v39 }
 0x17d   :  { %v2083_v3 = vpop.eup %2082  ;;  %v1188_v28 = vmul.f32 %v2081_v59, %v4425_v62  ;;  %v1190_v56 = vmul.f32 %v1184_v17, %v1178_v5 }
 0x17e   :  { %v2085_v10 = vpop.eup %2084  ;;  %v1191_v9 = vmul.f32 %v1186_v0, %v1179_v55  ;;  %v1197_v49 = vsel %vm1161_vm2, %v6242_v18, %v1189_v52  ;;  %v1346_v39 = vmul.f32 0.6931472, %v2083_v3  ;;  %v6244_v18 = vsub.f32 0.0, %v4416_v57 }
 0x17f   :  { %v2087_v36 = vpop.eup %2086  ;;  %v1192_v22 = vmul.f32 %v1188_v28, %v1180_v35  ;;  %v1198_v59 = vsel %vm1162_vm10, %v6243_v40, %v1190_v56  ;;  %v1205_v5 = vsel %vm1201_vm13, 1.0, %v1197_v49  ;;  %v1258_v55 = vmul.f32 %v2085_v10, %v6226_v7 }
 0x180   :  { %v2089_v47 = vpop.eup %2088  ;;  %v1199_v3 = vsel %vm1163_vm6, %v6244_v18, %v1191_v9  ;;  %v1206_v35 = vsel %vm1202_vm5, 1.0, %v1198_v59  ;;  %2098 = vlog2.f32 %v1205_v5  ;;  %v1260_v30 = vmul.f32 %v2087_v36, %v6227_v61 }
 0x181   :  { %v2091_v40 = vpop.eup %2090  ;;  %v1200_v10 = vsel %vm1164_vm14, %v6245_v12, %v1192_v22  ;;  %v1207_v56 = vsel %vm1203_vm3, 1.0, %v1199_v3  ;;  %2100 = vlog2.f32 %v1206_v35  ;;  %v1262_v57 = vmul.f32 %v2089_v47, %v6228_v16 }
 0x182   :  { %v2093_v17 = vpop.eup %2092  ;;  %v1208_v9 = vsel %vm1204_vm7, 1.0, %v1200_v10  ;;  %2102 = vlog2.f32 %v1207_v56  ;;  %v1264_v6 = vmul.f32 %v2091_v40, %v6229_v15  ;;  %v1265_v0 = vmul.f32 %v1258_v55, %v1253_v45 }
 0x183   :  { %v2095_v52 = vpop.eup %2094  ;;  %2104 = vlog2.f32 %v1208_v9  ;;  %v1266_v62 = vmul.f32 %v1260_v30, %v1254_v51  ;;  %v1267_v28 = vmul.f32 %v1262_v57, %v1255_v29  ;;  %vm1340_vm2 = vcmp.eq.f32.partialorder %v4636_v33, 1.0  ;;  %v6256_v9 = vld [vmem:[#allocation105_spill] sm:$0xff] }
 0x184   :  { %v2097_v22 = vpop.eup %2096  ;;  %v1268_v41 = vmul.f32 %v1264_v6, %v1256_v26  ;;  %v6246_v49 = vsub.f32 0.0, %v6226_v7  ;;  %v1348_v59 = vmul.f32 0.6931472, %v2093_v17  ;;  %v1358_v32 = vmul.f32 %v2095_v52, %v4492_v43 }
 0x185   :  { %v6247_v5 = vsub.f32 0.0, %v6227_v61  ;;  %v6248_v51 = vsub.f32 0.0, %v6228_v16  ;;  %v1351_v7 = vsel %vm1339_vm4, 1.0, %v1346_v39  ;;  %v6249_v55 = vsub.f32 0.0, %v6229_v15 }
 0x186   :  { %v1273_v36 = vsel %vm1237_vm15, %v6246_v49, %v1265_v0  ;;  %vm6250_vm10 = vcmp.eq.f32.partialorder %v4579_v2, 0.0  ;;  %vm6251_vm6 = vcmp.eq.f32.partialorder %v4582_v8, 0.0  ;;  %v1360_v19 = vmul.f32 %v2097_v22, %v4494_v13  ;;  %v6257_v0 = vld [vmem:[#allocation91_spill] sm:$0xff] }
 0x187   :  { %v1274_v45 = vsel %vm1238_vm9, %v6247_v5, %v1266_v62  ;;  %v1275_v29 = vsel %vm1239_vm1, %v6248_v51, %v1267_v28  ;;  %v1281_v26 = vsel %vm1277_vm11, 1.0, %v1273_v36  ;;  %v1276_v47 = vsel %vm1240_vm12, %v6249_v55, %v1268_v41  ;;  %v6259_v28 = vld [vmem:[#allocation114_spill] sm:$0xff] }
 0x188   :  { %v1282_v61 = vsel %vm1278_vm8, 1.0, %v1274_v45  ;;  %v1283_v16 = vsel %vm6250_vm10, 1.0, %v1275_v29  ;;  %2106 = vlog2.f32 %v1281_v26  ;;  %v1284_v18 = vsel %vm6251_vm6, 1.0, %v1276_v47  ;;  %v6260_v41 = vld [vmem:[#allocation106_spill] sm:$0xff]  ;;  %v6264_v47 = vld [vmem:[#allocation11_spill] sm:$0xff] }
 0x189   :  { %2108 = vlog2.f32 %v1282_v61  ;;  %v1365_v3 = vmul.f32 %v1358_v32, %v1353_v1  ;;  %v1151_v15 = vadd.f32 %v4591_v20, %v4584_v44  ;;  %v1152_v39 = vadd.f32 %v4593_v27, %v4586_v34  ;;  %v6261_v36 = vld [vmem:[#allocation78_spill] sm:$0xff] }
 0x18a   :  { %2110 = vlog2.f32 %v1283_v16  ;;  %v1352_v48 = vsel %vm1340_vm2, 1.0, %v1348_v59  ;;  %v1366_v2 = vmul.f32 %v1360_v19, %v1354_v23  ;;  %v6252_v35 = vsub.f32 0.0, %v4492_v43  ;;  %v2099_v1 = vpop.eup %2098  ;;  %v6262_v5 = vld [vmem:[#allocation42_spill] sm:$0xff] }
 0x18b   :  { %2112 = vlog2.f32 %v1284_v18  ;;  %vm6253_vm14 = vcmp.eq.f32.partialorder %v4589_v54, 1.0  ;;  %vm1378_vm15 = vcmp.eq.f32.partialorder %v4598_v37, 0.0  ;;  %v1371_v44 = vsub.f32 0.0, %v4496_v53  ;;  %v2101_v27 = vpop.eup %2100  ;;  %v6263_v26 = vld [vmem:[#allocation30_spill] sm:$0xff] }
 0x18c   :  { %v1373_v8 = vsel %vm6253_vm14, %v6252_v35, %v1365_v3  ;;  %2114 = vrcp.f32 %v1351_v7  ;;  %v1372_v20 = vsub.f32 0.0, %v4500_v25  ;;  %v4746_v30 = vmul.f32 0.6931472, %v2099_v1  ;;  %v2103_v12 = vpop.eup %2102 }
 0x18d   :  { %v1381_v34 = vsel %vm1377_vm0, 1.0, %v1373_v8  ;;  %v1355_v23 = vsub.f32 1.0, %v4618_v63  ;;  %2116 = vrcp.f32 %v1352_v48  ;;  %v6254_v43 = vsub.f32 0.0, %v4494_v13  ;;  %v2105_v54 = vpop.eup %2104 }
 0x18e   :  { %vm6255_vm9 = vcmp.eq.f32.partialorder %v4598_v37, 1.0  ;;  %v4753_v10 = vmul.f32 0.6931472, %v2101_v27  ;;  %v1356_v56 = vsub.f32 1.0, %v4636_v33  ;;  %2118 = vlog2.f32 %v1381_v34  ;;  %v6258_v37 = vld [vmem:[#allocation69_spill] sm:$0xff] }
 0x18f   :  { %v1374_v40 = vsel %vm6255_vm9, %v6254_v43, %v1366_v2  ;;  %v4756_v17 = vmul.f32 0.6931472, %v2103_v12  ;;  %v1217_v6 = vsub.f32 %v6256_v9, %v4746_v30  ;;  %v1305_v52 = vsub.f32 %v6257_v0, %v4746_v30 }
 0x190   :  { %v1382_v57 = vsel %vm1378_vm15, 1.0, %v1374_v40  ;;  %v4762_v13 = vmul.f32 0.6931472, %v2105_v54  ;;  %v1218_v62 = vsub.f32 %v6258_v37, %v4753_v10  ;;  %v1306_v22 = vsub.f32 %v6259_v28, %v4753_v10 }
 0x191   :  { %2120 = vlog2.f32 %v1382_v57  ;;  %v1441_v49 = vsub.f32 %v6260_v41, %v4746_v30  ;;  %v1219_v59 = vsub.f32 %v6261_v36, %v4756_v17  ;;  %v1221_v32 = vmax.f32 %v1217_v6, 0.0 }
 0x192   :  { %v1307_v45 = vsub.f32 %v6262_v5, %v4756_v17  ;;  %v1309_v51 = vmax.f32 %v1305_v52, 0.0  ;;  %v2107_v29 = vpop.eup %2106  ;;  %v1220_v7 = vsub.f32 %v6263_v26, %v4762_v13  ;;  %v1222_v55 = vmax.f32 %v1218_v62, 0.0 }
 0x193   :  { %v1308_v61 = vsub.f32 %v6264_v47, %v4762_v13  ;;  %v1310_v16 = vmax.f32 %v1306_v22, 0.0  ;;  %v2109_v18 = vpop.eup %2108  ;;  %v1223_v19 = vmax.f32 %v1219_v59, 0.0  ;;  %v1225_v3 = vadd.f32 %v1221_v32, %v4595_v14 }
 0x194   :  { %v4779_v48 = vmul.f32 0.6931472, %v2107_v29  ;;  %v1311_v2 = vmax.f32 %v1307_v45, 0.0  ;;  %vm1379_vm1 = vcmp.eq.f32.partialorder %v4618_v63, 0.0  ;;  %v2111_v35 = vpop.eup %2110  ;;  %v1224_v8 = vmax.f32 %v1220_v7, 0.0 }
 0x195   :  { %v1226_v1 = vadd.f32 %v1222_v55, %v4600_v42  ;;  %v4783_v34 = vmul.f32 0.6931472, %v2109_v18  ;;  %v1312_v27 = vmax.f32 %v1308_v61, 0.0  ;;  %vm1380_vm12 = vcmp.eq.f32.partialorder %v4636_v33, 0.0  ;;  %v2113_v43 = vpop.eup %2112  ;;  %v6268_v33 = vld [vmem:[#allocation112_spill] sm:$0xff] }
 0x196   :  { %v1227_v40 = vadd.f32 %v1223_v19, %v1151_v15  ;;  %v4786_v12 = vmul.f32 0.6931472, %v2111_v35  ;;  %v1293_v14 = vsub.f32 %v6256_v9, %v4779_v48  ;;  %v1317_v57 = vsub.f32 %v6257_v0, %v4779_v48  ;;  %v2115_v54 = vpop.eup %2114 }
 0x197   :  { %v1228_v6 = vadd.f32 %v1224_v8, %v1152_v39  ;;  %v4792_v52 = vmul.f32 0.6931472, %v2113_v43  ;;  %v1294_v42 = vsub.f32 %v6258_v37, %v4783_v34  ;;  %v1318_v62 = vsub.f32 %v6259_v28, %v4783_v34  ;;  %v2117_v22 = vpop.eup %2116 }
 0x198   :  { %v1295_v15 = vsub.f32 %v6261_v36, %v4786_v12  ;;  %v1297_v59 = vmax.f32 %v1293_v14, 0.0  ;;  %v1319_v9 = vsub.f32 %v6262_v5, %v4786_v12  ;;  %v1321_v32 = vmax.f32 %v1317_v57, 0.0  ;;  %v2119_v0 = vpop.eup %2118 }
 0x199   :  { %v1296_v39 = vsub.f32 %v6263_v26, %v4792_v52  ;;  %v1298_v45 = vmax.f32 %v1294_v42, 0.0  ;;  %v1320_v37 = vsub.f32 %v6264_v47, %v4792_v52  ;;  %v1322_v29 = vmax.f32 %v1318_v62, 0.0 }
 0x19a   :  { %v1299_v28 = vmax.f32 %v1295_v15, 0.0  ;;  %v1301_v55 = vadd.f32 %v1297_v59, %v1225_v3  ;;  %v1323_v61 = vmax.f32 %v1319_v9, 0.0  ;;  %v1362_v36 = vmul.f32 %v2115_v54, %v4496_v53  ;;  %v6267_v59 = vld [vmem:[#allocation102_spill] sm:$0xff] }
 0x19b   :  { %v2121_v7 = vpop.eup %2120  ;;  %v1300_v18 = vmax.f32 %v1296_v39, 0.0  ;;  %v1302_v19 = vadd.f32 %v1298_v45, %v1226_v1  ;;  %v1324_v35 = vmax.f32 %v1320_v37, 0.0  ;;  %v1364_v5 = vmul.f32 %v2117_v22, %v4500_v25  ;;  %v6269_v45 = vld [vmem:[#allocation71_spill] sm:$0xff] }
 0x19c   :  { %v1303_v8 = vadd.f32 %v1299_v28, %v1227_v40  ;;  %v1313_v43 = vadd.f32 %v1309_v51, %v1301_v55  ;;  %v1367_v26 = vmul.f32 %v1362_v36, %v1355_v23  ;;  %v4810_v14 = vmul.f32 0.6931472, %v2119_v0  ;;  %v6265_v51 = vld [vmem:[#allocation97_spill] sm:$0xff] }
 0x19d   :  { %v1304_v47 = vadd.f32 %v1300_v18, %v1228_v6  ;;  %v1314_v57 = vadd.f32 %v1310_v16, %v1302_v19  ;;  %v1368_v3 = vmul.f32 %v1364_v5, %v1356_v56  ;;  %v4814_v42 = vmul.f32 0.6931472, %v2121_v7 }
 0x19e   :  { %v1315_v54 = vadd.f32 %v1311_v2, %v1303_v8  ;;  %v1325_v62 = vadd.f32 %v1321_v32, %v1313_v43  ;;  %v1375_v1 = vsel %vm1339_vm4, %v1371_v44, %v1367_v26  ;;  %v1393_v40 = vsub.f32 %v6265_v51, %v4810_v14  ;;  %v6266_v44 = vld [vmem:[#allocation56_spill] sm:$0xff]  ;;  %v6271_v26 = vld [vmem:[#allocation26_spill] sm:$0xff] }
 0x19f   :  { %v1316_v23 = vadd.f32 %v1312_v27, %v1304_v47  ;;  %v1326_v22 = vadd.f32 %v1322_v29, %v1314_v57  ;;  %v1376_v16 = vsel %vm1340_vm2, %v1372_v20, %v1368_v3  ;;  %v1383_v56 = vsel %vm1379_vm1, 1.0, %v1375_v1  ;;  %v6270_v29 = vld [vmem:[#allocation73_spill] sm:$0xff]  ;;  %v6272_v57 = vld [vmem:[#allocation28_spill] sm:$0xff] }
 0x1a0   :  { %v4828_v2 = vadd.f32 %v1323_v61, %v1315_v54  ;;  %v1384_v53 = vsel %vm1380_vm12, 1.0, %v1376_v16  ;;  %2122 = vlog2.f32 %v1383_v56  ;;  %v1394_v6 = vsub.f32 %v6266_v44, %v4814_v42 }
 0x1a1   :  { %v4834_v15 = vadd.f32 %v1324_v35, %v1316_v23  ;;  %2124 = vlog2.f32 %v1384_v53  ;;  %v1397_v27 = vmax.f32 %v1393_v40, 0.0  ;;  %v1405_v25 = vsub.f32 %v6265_v51, %v4779_v48 }
 0x1a2   :  { %v1398_v20 = vmax.f32 %v1394_v6, 0.0  ;;  %v1406_v63 = vsub.f32 %v6266_v44, %v4783_v34  ;;  %v1407_v9 = vsub.f32 %v6267_v59, %v4786_v12  ;;  %v1408_v32 = vsub.f32 %v6268_v33, %v4792_v52 }
 0x1a3   :  { %v1401_v0 = vadd.f32 %v1397_v27, %v1325_v62  ;;  %v1409_v39 = vmax.f32 %v1405_v25, 0.0  ;;  %v1417_v37 = vsub.f32 %v6269_v45, %v4810_v14  ;;  %v1418_v7 = vsub.f32 %v6270_v29, %v4814_v42 }
 0x1a4   :  { %v1402_v28 = vadd.f32 %v1398_v20, %v1326_v22  ;;  %v1410_v55 = vmax.f32 %v1406_v63, 0.0  ;;  %v1411_v61 = vmax.f32 %v1407_v9, 0.0  ;;  %v4848_v36 = vmax.f32 %v1408_v32, 0.0 }
 0x1a5   :  { %v1413_v18 = vadd.f32 %v1409_v39, %v1401_v0  ;;  %v1421_v19 = vmax.f32 %v1417_v37, 0.0  ;;  %v1422_v35 = vmax.f32 %v1418_v7, 0.0  ;;  %v1429_v5 = vsub.f32 %v6269_v45, %v4779_v48 }
 0x1a6   :  { %v1414_v8 = vadd.f32 %v1410_v55, %v1402_v28  ;;  %v1430_v43 = vsub.f32 %v6270_v29, %v4783_v34  ;;  %v1431_v47 = vsub.f32 %v6271_v26, %v4786_v12  ;;  %v1432_v3 = vsub.f32 %v6272_v57, %v4792_v52 }
 0x1a7   :  { %v1425_v54 = vadd.f32 %v1421_v19, %v1413_v18  ;;  %v1433_v62 = vmax.f32 %v1429_v5, 0.0  ;;  %v1442_v1 = vsub.f32 %v4318_v4, %v4753_v10  ;;  %v1443_v51 = vsub.f32 %v4333_v21, %v4756_v17 }
 0x1a8   :  { %v1426_v40 = vadd.f32 %v1422_v35, %v1414_v8  ;;  %v1434_v23 = vmax.f32 %v1430_v43, 0.0  ;;  %v1435_v22 = vmax.f32 %v1431_v47, 0.0  ;;  %v4862_v16 = vmax.f32 %v1432_v3, 0.0 }
 0x1a9   :  { %v1437_v56 = vadd.f32 %v1433_v62, %v1425_v54  ;;  %v1444_v53 = vsub.f32 %v4336_v58, %v4762_v13  ;;  %v1445_v44 = vmax.f32 %v1441_v49, 0.0  ;;  %v1446_v6 = vmax.f32 %v1442_v1, 0.0 }
 0x1aa   :  { %v2123_v27 = vpop.eup %2122  ;;  %v1438_v25 = vadd.f32 %v1434_v23, %v1426_v40  ;;  %v1447_v20 = vmax.f32 %v1443_v51, 0.0  ;;  %v1453_v63 = vsub.f32 %v6260_v41, %v4779_v48  ;;  %v1454_v9 = vsub.f32 %v4318_v4, %v4783_v34 }
 0x1ab   :  { %v2125_v32 = vpop.eup %2124  ;;  %v4873_v0 = vmul.f32 0.6931472, %v2123_v27  ;;  %v1448_v39 = vmax.f32 %v1444_v53, 0.0  ;;  %v1449_v45 = vadd.f32 %v1445_v44, %v1437_v56  ;;  %v1455_v37 = vsub.f32 %v4333_v21, %v4786_v12 }
 0x1ac   :  { %v4877_v29 = vmul.f32 0.6931472, %v2125_v32  ;;  %v1450_v49 = vadd.f32 %v1446_v6, %v1438_v25  ;;  %v1456_v7 = vsub.f32 %v4336_v58, %v4792_v52  ;;  %v1457_v28 = vmax.f32 %v1453_v63, 0.0 }
 0x1ad   :  { %v1395_v41 = vsub.f32 %v6267_v59, %v4873_v0  ;;  %v1419_v4 = vsub.f32 %v6271_v26, %v4873_v0  ;;  %v1458_v55 = vmax.f32 %v1454_v9, 0.0  ;;  %v1459_v18 = vmax.f32 %v1455_v37, 0.0 }
 0x1ae   :  { %v1396_v19 = vsub.f32 %v6268_v33, %v4877_v29  ;;  %v1420_v21 = vsub.f32 %v6272_v57, %v4877_v29  ;;  %v1460_v35 = vmax.f32 %v1456_v7, 0.0  ;;  %v1461_v5 = vadd.f32 %v1457_v28, %v1449_v45 }
 0x1af   :  { %v1399_v8 = vmax.f32 %v1395_v41, 0.0  ;;  %v1423_v43 = vmax.f32 %v1419_v4, 0.0  ;;  %v1462_v58 = vadd.f32 %v1458_v55, %v1450_v49  ;;  %v1465_v47 = vsub.f32 %v4143_v31, %v4810_v14 }
 0x1b0   :  { %v1400_v59 = vmax.f32 %v1396_v19, 0.0  ;;  %v1424_v3 = vmax.f32 %v1420_v21, 0.0  ;;  %v1466_v26 = vsub.f32 %v4146_v50, %v4814_v42  ;;  %v1467_v54 = vsub.f32 %v4158_v60, %v4873_v0 }
 0x1b1   :  { %v1403_v33 = vadd.f32 %v1399_v8, %v4828_v2  ;;  %v1468_v57 = vsub.f32 %v4179_v24, %v4877_v29  ;;  %v1469_v62 = vmax.f32 %v1465_v47, 0.0  ;;  %v1477_v1 = vsub.f32 %v4143_v31, %v4779_v48 }
 0x1b2   :  { %v1404_v51 = vadd.f32 %v1400_v59, %v4834_v15  ;;  %v1470_v40 = vmax.f32 %v1466_v26, 0.0  ;;  %v1471_v23 = vmax.f32 %v1467_v54, 0.0  ;;  %v1478_v56 = vsub.f32 %v4146_v50, %v4783_v34 }
 0x1b3   :  { %v1415_v53 = vadd.f32 %v1411_v61, %v1403_v33  ;;  %v1472_v44 = vmax.f32 %v1468_v57, 0.0  ;;  %v1473_v6 = vadd.f32 %v1469_v62, %v1461_v5  ;;  %v1479_v2 = vsub.f32 %v4158_v60, %v4786_v12  ;;  %v6275_v62 = vld [vmem:[#allocation53_spill] sm:$0xff] }
 0x1b4   :  { %v1416_v27 = vadd.f32 %v4848_v36, %v1404_v51  ;;  %v1474_v25 = vadd.f32 %v1470_v40, %v1462_v58  ;;  %v1480_v63 = vsub.f32 %v4179_v24, %v4792_v52  ;;  %v1481_v31 = vmax.f32 %v1477_v1, 0.0  ;;  %v6273_v36 = vld [vmem:[#allocation44_spill] sm:$0xff] }
 0x1b5   :  { %v1427_v9 = vadd.f32 %v1423_v43, %v1415_v53  ;;  %v1482_v15 = vmax.f32 %v1478_v56, 0.0  ;;  %v1483_v32 = vmax.f32 %v1479_v2, 0.0  ;;  %v1489_v45 = vsub.f32 %v4399_v11, %v4746_v30 }
 0x1b6   :  { %v1428_v50 = vadd.f32 %v1424_v3, %v1416_v27  ;;  %v1484_v61 = vmax.f32 %v1480_v63, 0.0  ;;  %v1485_v37 = vadd.f32 %v1481_v31, %v1473_v6  ;;  %v1490_v49 = vsub.f32 %v4412_v38, %v4753_v10 }
 0x1b7   :  { %v1439_v60 = vadd.f32 %v1435_v22, %v1427_v9  ;;  %v1486_v7 = vadd.f32 %v1482_v15, %v1474_v25  ;;  %v1491_v28 = vsub.f32 %v6273_v36, %v4756_v17  ;;  %v1492_v24 = vsub.f32 %v4432_v46, %v4762_v13 }
 0x1b8   :  { %v1440_v41 = vadd.f32 %v4862_v16, %v1428_v50  ;;  %v1493_v4 = vmax.f32 %v1489_v45, 0.0  ;;  %v1494_v55 = vmax.f32 %v1490_v49, 0.0  ;;  %v1501_v19 = vsub.f32 %v4399_v11, %v4779_v48  ;;  %v6278_v50 = vld [vmem:[#allocation38_spill] sm:$0xff] }
 0x1b9   :  { %v1451_v21 = vadd.f32 %v1447_v20, %v1439_v60  ;;  %v1495_v5 = vmax.f32 %v1491_v28, 0.0  ;;  %v1496_v8 = vmax.f32 %v1492_v24, 0.0  ;;  %v1502_v22 = vsub.f32 %v4412_v38, %v4783_v34  ;;  %v6274_v20 = vld [vmem:[#allocation66_spill] sm:$0xff] }
 0x1ba   :  { %v1452_v43 = vadd.f32 %v1448_v39, %v1440_v41  ;;  %v1497_v58 = vadd.f32 %v1493_v4, %v1485_v37  ;;  %v1498_v47 = vadd.f32 %v1494_v55, %v1486_v7  ;;  %v1503_v59 = vsub.f32 %v6273_v36, %v4786_v12  ;;  %v6279_v7 = vld [vmem:[#allocation52_spill] sm:$0xff]  ;;  %v6280_v4 = vld [vmem:[#allocation54_spill] sm:$0xff] }
 0x1bb   :  { %v1463_v3 = vadd.f32 %v1459_v18, %v1451_v21  ;;  %v1504_v16 = vsub.f32 %v4432_v46, %v4792_v52  ;;  %v1505_v26 = vmax.f32 %v1501_v19, 0.0  ;;  %v1506_v54 = vmax.f32 %v1502_v22, 0.0  ;;  %v6276_v18 = vld [vmem:[#allocation46_spill] sm:$0xff]  ;;  %v6277_v46 = vld [vmem:[#allocation99_spill] sm:$0xff] }
 0x1bc   :  { %v1464_v33 = vadd.f32 %v1460_v35, %v1452_v43  ;;  %v1507_v11 = vmax.f32 %v1503_v59, 0.0  ;;  %v1513_v57 = vsub.f32 %v6274_v20, %v4746_v30  ;;  %v1514_v38 = vsub.f32 %v6275_v62, %v4753_v10  ;;  %v6281_v21 = vld [vmem:[#allocation95_spill] sm:$0xff] }
 0x1bd   :  { %v1475_v39 = vadd.f32 %v1471_v23, %v1463_v3  ;;  %v1508_v1 = vmax.f32 %v1504_v16, 0.0  ;;  %v1509_v51 = vadd.f32 %v1505_v26, %v1497_v58  ;;  %v1510_v40 = vadd.f32 %v1506_v54, %v1498_v47 }
 0x1be   :  { %v1476_v56 = vadd.f32 %v1472_v44, %v1464_v33  ;;  %v1515_v53 = vsub.f32 %v6276_v18, %v4756_v17  ;;  %v1516_v6 = vsub.f32 %v6277_v46, %v4762_v13  ;;  %v1517_v2 = vmax.f32 %v1513_v57, 0.0 }
 0x1bf   :  { %v1487_v35 = vadd.f32 %v1483_v32, %v1475_v39  ;;  %v1518_v27 = vmax.f32 %v1514_v38, 0.0  ;;  %v1525_v30 = vsub.f32 %v6274_v20, %v4779_v48  ;;  %v1526_v10 = vsub.f32 %v6275_v62, %v4783_v34  ;;  %v6282_v39 = vld [vmem:[#allocation34_spill] sm:$0xff] }
 0x1c0   :  { %v1488_v23 = vadd.f32 %v1484_v61, %v1476_v56  ;;  %v1519_v25 = vmax.f32 %v1515_v53, 0.0  ;;  %v1520_v63 = vmax.f32 %v1516_v6, 0.0  ;;  %v1521_v31 = vadd.f32 %v1517_v2, %v1509_v51  ;;  %v6283_v51 = vld [vmem:[#allocation40_spill] sm:$0xff]  ;;  %v6284_v2 = vld [vmem:[#allocation86_spill] sm:$0xff] }
 0x1c1   :  { %v1499_v44 = vadd.f32 %v1495_v5, %v1487_v35  ;;  %v1522_v9 = vadd.f32 %v1518_v27, %v1510_v40  ;;  %v1527_v17 = vsub.f32 %v6276_v18, %v4786_v12  ;;  %v1528_v13 = vsub.f32 %v6277_v46, %v4792_v52  ;;  %v6285_v27 = vld [vmem:[#allocation48_spill] sm:$0xff] }
 0x1c2   :  { %v1500_v15 = vadd.f32 %v1496_v8, %v1488_v23  ;;  %v1529_v32 = vmax.f32 %v1525_v30, 0.0  ;;  %v1530_v45 = vmax.f32 %v1526_v10, 0.0  ;;  %v1537_v37 = vsub.f32 %v6278_v50, %v4810_v14 }
 0x1c3   :  { %v1511_v49 = vadd.f32 %v1507_v11, %v1499_v44  ;;  %v1531_v60 = vmax.f32 %v1527_v17, 0.0  ;;  %v1532_v61 = vmax.f32 %v1528_v13, 0.0  ;;  %v1538_v36 = vsub.f32 %v6279_v7, %v4814_v42 }
 0x1c4   :  { %v1512_v28 = vadd.f32 %v1508_v1, %v1500_v15  ;;  %v1533_v24 = vadd.f32 %v1529_v32, %v1521_v31  ;;  %v1534_v41 = vadd.f32 %v1530_v45, %v1522_v9  ;;  %v1539_v55 = vsub.f32 %v6280_v4, %v4873_v0 }
 0x1c5   :  { %v1523_v19 = vadd.f32 %v1519_v25, %v1511_v49  ;;  %v1540_v5 = vsub.f32 %v6281_v21, %v4877_v29  ;;  %v1541_v8 = vmax.f32 %v1537_v37, 0.0  ;;  %v1542_v22 = vmax.f32 %v1538_v36, 0.0 }
 0x1c6   :  { %v1524_v43 = vadd.f32 %v1520_v63, %v1512_v28  ;;  %v1543_v58 = vmax.f32 %v1539_v55, 0.0  ;;  %v1549_v47 = vsub.f32 %v6278_v50, %v4779_v48  ;;  %v1550_v59 = vsub.f32 %v6279_v7, %v4783_v34  ;;  %v6286_v50 = vld [vmem:[#allocation41_spill] sm:$0xff]  ;;  %v6287_v7 = vld [vmem:[#allocation43_spill] sm:$0xff] }
 0x1c7   :  { %v1535_v3 = vadd.f32 %v1531_v60, %v1523_v19  ;;  %v1544_v16 = vmax.f32 %v1540_v5, 0.0  ;;  %v1545_v26 = vadd.f32 %v1541_v8, %v1533_v24  ;;  %v1546_v54 = vadd.f32 %v1542_v22, %v1534_v41  ;;  %v6288_v24 = vld [vmem:[#allocation45_spill] sm:$0xff]  ;;  %v6290_v22 = vld [vmem:[#allocation58_spill] sm:$0xff] }
 0x1c8   :  { %v1536_v33 = vadd.f32 %v1532_v61, %v1524_v43  ;;  %v1551_v11 = vsub.f32 %v6280_v4, %v4786_v12  ;;  %v1552_v20 = vsub.f32 %v6281_v21, %v4792_v52  ;;  %v1553_v57 = vmax.f32 %v1549_v47, 0.0  ;;  %v6289_v4 = vld [vmem:[#allocation19_spill] sm:$0xff] }
 0x1c9   :  { %v1547_v62 = vadd.f32 %v1543_v58, %v1535_v3  ;;  %v1554_v38 = vmax.f32 %v1550_v59, 0.0  ;;  %v1561_v1 = vsub.f32 %v6282_v39, %v4810_v14  ;;  %v1562_v40 = vsub.f32 %v6283_v51, %v4814_v42  ;;  %v6291_v3 = vld [vmem:[#allocation60_spill] sm:$0xff] }
 0x1ca   :  { %v1548_v56 = vadd.f32 %v1544_v16, %v1536_v33  ;;  %v1555_v18 = vmax.f32 %v1551_v11, 0.0  ;;  %v1556_v53 = vmax.f32 %v1552_v20, 0.0  ;;  %v1557_v46 = vadd.f32 %v1553_v57, %v1545_v26  ;;  %v6293_v11 = vld [vmem:[#allocation74_spill] sm:$0xff] }
 0x1cb   :  { %v1558_v6 = vadd.f32 %v1554_v38, %v1546_v54  ;;  %v1563_v35 = vsub.f32 %v6284_v2, %v4873_v0  ;;  %v1564_v30 = vsub.f32 %v6285_v27, %v4877_v29  ;;  %v1565_v10 = vmax.f32 %v1561_v1, 0.0  ;;  %v6292_v54 = vld [vmem:[#allocation100_spill] sm:$0xff] }
 0x1cc   :  { %v1559_v23 = vadd.f32 %v1555_v18, %v1547_v62  ;;  %v1560_v25 = vadd.f32 %v1556_v53, %v1548_v56  ;;  %v1566_v63 = vmax.f32 %v1562_v40, 0.0  ;;  %v1573_v14 = vsub.f32 %v6282_v39, %v4779_v48 }
 0x1cd   :  { %v1567_v31 = vmax.f32 %v1563_v35, 0.0  ;;  %v1568_v42 = vmax.f32 %v1564_v30, 0.0  ;;  %v1569_v44 = vadd.f32 %v1565_v10, %v1557_v46  ;;  %v1574_v9 = vsub.f32 %v6283_v51, %v4783_v34 }
 0x1ce   :  { %v1570_v17 = vadd.f32 %v1566_v63, %v1558_v6  ;;  %v1575_v0 = vsub.f32 %v6284_v2, %v4786_v12  ;;  %v1576_v29 = vsub.f32 %v6285_v27, %v4792_v52  ;;  %v1577_v13 = vmax.f32 %v1573_v14, 0.0 }
 0x1cf   :  { %v1571_v15 = vadd.f32 %v1567_v31, %v1559_v23  ;;  %v1572_v32 = vadd.f32 %v1568_v42, %v1560_v25  ;;  %v1578_v45 = vmax.f32 %v1574_v9, 0.0  ;;  %v1585_v37 = vsub.f32 %v6286_v50, %v4779_v48 }
 0x1d0   :  { %v1579_v49 = vmax.f32 %v1575_v0, 0.0  ;;  %v1580_v60 = vmax.f32 %v1576_v29, 0.0  ;;  %v1581_v61 = vadd.f32 %v1577_v13, %v1569_v44  ;;  %v1586_v36 = vsub.f32 %v6287_v7, %v4783_v34 }
 0x1d1   :  { %v1582_v28 = vadd.f32 %v1578_v45, %v1570_v17  ;;  %v1587_v41 = vsub.f32 %v6288_v24, %v4786_v12  ;;  %v1588_v55 = vsub.f32 %v6289_v4, %v4792_v52  ;;  %v1589_v19 = vmax.f32 %v1585_v37, 0.0 }
 0x1d2   :  { %v1583_v21 = vadd.f32 %v1579_v49, %v1571_v15  ;;  %v1584_v5 = vadd.f32 %v1580_v60, %v1572_v32  ;;  %v1590_v8 = vmax.f32 %v1586_v36, 0.0  ;;  %v1597_v43 = vsub.f32 %v6290_v22, %v4779_v48 }
 0x1d3   :  { %v1591_v58 = vmax.f32 %v1587_v41, 0.0  ;;  %v1592_v47 = vmax.f32 %v1588_v55, 0.0  ;;  %v1593_v59 = vadd.f32 %v1589_v19, %v1581_v61  ;;  %v1598_v16 = vsub.f32 %v6291_v3, %v4783_v34 }
 0x1d4   :  { %v1594_v26 = vadd.f32 %v1590_v8, %v1582_v28  ;;  %v1599_v33 = vsub.f32 %v6292_v54, %v4786_v12  ;;  %v1600_v20 = vsub.f32 %v6293_v11, %v4792_v52  ;;  %v1601_v57 = vmax.f32 %v1597_v43, 0.0 }
 0x1d5   :  { %v1595_v62 = vadd.f32 %v1591_v58, %v1583_v21  ;;  %v1596_v38 = vadd.f32 %v1592_v47, %v1584_v5  ;;  %v1602_v39 = vmax.f32 %v1598_v16, 0.0 }
 0x1d6   :  { %v1603_v1 = vmax.f32 %v1599_v33, 0.0  ;;  %v1604_v51 = vmax.f32 %v1600_v20, 0.0  ;;  %v1605_v48 = vadd.f32 %v1601_v57, %v1593_v59 }
 0x1d7   :  { %v1606_v40 = vadd.f32 %v1602_v39, %v1594_v26 }
 0x1d8   :  { %v1607_v56 = vadd.f32 %v1603_v1, %v1595_v62  ;;  %v1608_v18 = vadd.f32 %v1604_v51, %v1596_v38 }
 0x1d9   :  { %v1610_v53 = vadd.f32 %v1606_v40, %v1605_v48 }
 0x1db   :  { %v1611_v46 = vadd.f32 %v1610_v53, %v1607_v56 }
 0x1dd   :  { %v1612_v34 = vadd.f32 %v1611_v46, %v1608_v18 }
 0x1df   :  { %1613 = vadd.xlane.f32.xlu0 %v1612_v34 }
 0x26c   :  { %v1614_v6 = vpop.xlane.xlu0 %1613 }
 0x26d   :  { %v1615_v2 = vrot.slane %v1614_v6, 4 }
 0x26f   :  { %v1616_v12 = vadd.f32 %v1615_v2, %v1614_v6 }
 0x271   :  { %v1617_v35 = vrot.slane %v1616_v12, 2 }
 0x273   :  { %v1618_v27 = vadd.f32 %v1617_v35, %v1616_v12 }
 0x275   :  { %v1619_v52 = vrot.slane %v1618_v27, 1 }
 0x277   :  { %v1620_v30 = vadd.f32 %v1619_v52, %v1618_v27 }
 0x279   :  { %1639 = vpush %v1620_v30 }
 0x2aa   :  { %s1640_s21 = spop %1639 }
 0x2ab   :  { %s1622_s22 = sadd.f32 %s1640_s21, %s1609_s0 }
 0x2ad   :  { %1624 = sst [smem:[#allocation5]] %s1622_s22 }
 0x2ae   :  { %2217 = shalt.err (!%p2214_p10)
}
 0x2af   :  { %s2226_s30 = smov [#allocation5]  }
 0x2b0   :  { %1632 = dma.smem_to_hbm %s2226_s30, 16, %s5002_s1, [#allocation4]  }
 0x2b1   :  { %2220 = dma.done.wait [#allocation4], 16  }
 0x2b2   :  { %2221 = vsyncadd [#allocation4], 4294967280 }
 0x2b3   :  { %1636 = sfence }
 0x2b4   :  { %1637 = vsyncpa [#allocation3], 1 }
 0x2b5   :  { %1638 = vsyncpa [#allocation4], 1 }

</bundles_post_ra>
